<compile_context>
chip_gen: v5e
topology: v5e:2x2
jax: 0.10.0
libtpu: 0.0.40
codegen_flags: <defaults>
</compile_context>

<pallas_src>
import functools

import jax
import jax.numpy as jnp
from jax.experimental import pallas as pl
from jax.experimental.pallas import tpu as pltpu


def _round_up(x, m):
    return ((x + m - 1) // m) * m


def _pad_gates_last(a, h, hp):
    """Zero-pad each of the 3 stacked GRU gate blocks along the last axis H->Hp."""
    if h == hp:
        return a
    parts = []
    for g in range(3):
        blk = a[..., g * h:(g + 1) * h]
        pad = [(0, 0)] * (a.ndim - 1) + [(0, hp - h)]
        parts.append(jnp.pad(blk, pad))
    return jnp.concatenate(parts, axis=-1)


# ----------------------------------------------------------------------------
# Pallas kernel: fused (bi)directional GRU layer, streamed over T-chunks.
# ----------------------------------------------------------------------------
def _gru_kernel(*refs, t_chunk, bp, hp, n_dirs):
    """One grid step = one T-chunk (forward dir: chunk i, reverse dir: chunk nc-1-i).

    Input refs:
      x chunk per direction        [Tc*Bp, Dp]  bf16   (fwd / reverse index_maps)
      lengths                      [Bp, 1]      int32
      per direction d:
        W_ih^T (HBM, pl.ANY)       [Dp, 3Hp]    bf16   copied to VMEM at i==0
        W_hh^T (HBM, pl.ANY)       [Hp, 3Hp]    bf16   copied to VMEM at i==0
        b_gx                       [1, 3Hp]     f32    (b_ih with b_hh folded r/z)
        b_hn                       [1, Hp]      f32    (hidden bias of the n gate)
    Output refs: per direction, out chunk [Tc*Bp, Hp] bf16
    Scratch: per dir W_ih^T / W_hh^T VMEM copies, h [Bp,Hp] f32,
             gx [Tc*Bp,3Hp] f32; one DMA sem array.
    """
    p = 0
    x_refs = refs[p:p + n_dirs]; p += n_dirs
    len_ref = refs[p]; p += 1
    w_refs = refs[p:p + 4 * n_dirs]; p += 4 * n_dirs
    out_refs = refs[p:p + n_dirs]; p += n_dirs
    wih_vmem = refs[p:p + n_dirs]; p += n_dirs
    whh_vmem = refs[p:p + n_dirs]; p += n_dirs
    h_refs = refs[p:p + n_dirs]; p += n_dirs
    gx_refs = refs[p:p + n_dirs]; p += n_dirs
    dma_sem = refs[p]

    i = pl.program_id(0)
    nc = pl.num_programs(0)

    @pl.when(i == 0)
    def _init():
        # Single-buffered weights: one DMA each into resident VMEM scratch.
        copies = []
        for d in range(n_dirs):
            wih_hbm, whh_hbm = w_refs[4 * d], w_refs[4 * d + 1]
            c1 = pltpu.make_async_copy(wih_hbm, wih_vmem[d], dma_sem.at[2 * d])
            c2 = pltpu.make_async_copy(whh_hbm, whh_vmem[d], dma_sem.at[2 * d + 1])
            c1.start()
            c2.start()
            copies += [c1, c2]
        for c in copies:
            c.wait()
        for d in range(n_dirs):
            h_refs[d][...] = jnp.zeros_like(h_refs[d])

    len_col = len_ref[...]                                  # [Bp, 1] int32 (hoisted)

    # ---- Phase 1: both directions' chunk input matmuls (big MXU ops) --------
    for d in range(n_dirs):
        b_gx = w_refs[4 * d + 2][...]                       # [1, 3Hp] f32
        gx_refs[d][...] = (
            jnp.dot(x_refs[d][...], wih_vmem[d][...],
                    preferred_element_type=jnp.float32) + b_gx)

    # Hoisted loop invariants.
    b_hns = [w_refs[4 * d + 3][...] for d in range(n_dirs)]          # [1, Hp]
    bases = [((nc - 1 - i) if d == 1 else i) * t_chunk for d in range(n_dirs)]

    # ---- Phase 2: recurrences, interleaved across directions per step -------
    for step in range(t_chunk):
        for d in range(n_dirs):
            reverse = (d == 1)
            t = (t_chunk - 1 - step) if reverse else step
            row = t * bp                                    # static, 8-aligned
            gx_t = gx_refs[d][pl.ds(row, bp), :]            # [Bp, 3Hp] f32
            h = h_refs[d][...]                              # [Bp, Hp] f32
            gh = jnp.dot(h.astype(jnp.bfloat16), whh_vmem[d][...],
                         preferred_element_type=jnp.float32)
            r = jax.nn.sigmoid(gx_t[:, :hp] + gh[:, :hp])
            z = jax.nn.sigmoid(gx_t[:, hp:2 * hp] + gh[:, hp:2 * hp])
            n = jnp.tanh(gx_t[:, 2 * hp:] + r * (gh[:, 2 * hp:] + b_hns[d]))
            h_new = (1.0 - z) * n + z * h
            # packed-sequence semantics: freeze h past the length, zero output.
            valid = len_col > (bases[d] + t)                # [Bp, 1] bool
            h_refs[d][...] = jnp.where(valid, h_new, h)
            out_refs[d][pl.ds(row, bp), :] = jnp.where(
                valid, h_new, 0.0).astype(out_refs[d].dtype)


def _run_gru_layer(layer_in, lengths, dir_params, *, t_chunk):
    """Run one (possibly bidirectional) GRU layer with the fused Pallas kernel.

    layer_in: [T, B, D] f32, lengths: [B] int -> [T, B, H * n_dirs] f32.
    """
    T, B, D = layer_in.shape
    H = dir_params[0]["w_hh"].shape[1]
    n_dirs = len(dir_params)

    Bp = _round_up(B, 8)
    Dp = _round_up(D, 128)
    Hp = _round_up(H, 128)
    # Clamp the chunk so short sequences don't pay huge T-padding, while long
    # sequences keep the MXU-filling default.
    t_chunk = max(1, min(int(t_chunk), _round_up(T, 8)))
    nc = -(-T // t_chunk)
    Tp = nc * t_chunk

    # ---- layout prep (plain JAX glue): pad + flatten to lane-dense 2-D ------
    x = jnp.pad(layer_in.astype(jnp.float32),
                ((0, Tp - T), (0, Bp - B), (0, Dp - D)))
    x2d = x.reshape(Tp * Bp, Dp).astype(jnp.bfloat16)            # [Tp*Bp, Dp]
    len_col = jnp.pad(lengths.astype(jnp.int32), (0, Bp - B)).reshape(Bp, 1)

    ins = [x2d] * n_dirs + [len_col]
    x_spec_fwd = pl.BlockSpec((t_chunk * Bp, Dp), lambda i: (i, 0))
    x_spec_bwd = pl.BlockSpec((t_chunk * Bp, Dp), lambda i, nc=nc: (nc - 1 - i, 0))
    in_specs = [x_spec_bwd if d == 1 else x_spec_fwd for d in range(n_dirs)]
    in_specs.append(pl.BlockSpec((Bp, 1), lambda i: (0, 0)))

    for p in dir_params:
        f32 = jnp.float32
        wih_t = _pad_gates_last(
            jnp.pad(p["w_ih"].astype(f32).T, ((0, Dp - D), (0, 0))), H, Hp
        ).astype(jnp.bfloat16)
        whh_t = _pad_gates_last(
            jnp.pad(p["w_hh"].astype(f32).T, ((0, Hp - H), (0, 0))), H, Hp
        ).astype(jnp.bfloat16)
        b_ih, b_hh = p["b_ih"].astype(f32), p["b_hh"].astype(f32)
        # Fold b_hh into the pre-pass bias for the r/z gates (PyTorch math allows
        # it); only the n-gate hidden bias must stay inside r * (.).
        b_gx = jnp.concatenate(
            [b_ih[:H] + b_hh[:H], b_ih[H:2 * H] + b_hh[H:2 * H], b_ih[2 * H:]])
        b_gx = _pad_gates_last(b_gx.reshape(1, 3 * H), H, Hp)          # [1, 3Hp]
        b_hn = jnp.pad(b_hh[2 * H:].reshape(1, H), ((0, 0), (0, Hp - H)))

        ins += [wih_t, whh_t, b_gx, b_hn]
        in_specs += [
            pl.BlockSpec(memory_space=pl.ANY),     # W_ih^T: resident, copied once
            pl.BlockSpec(memory_space=pl.ANY),     # W_hh^T: resident, copied once
            pl.BlockSpec((1, 3 * Hp), lambda i: (0, 0)),
            pl.BlockSpec((1, Hp), lambda i: (0, 0)),
        ]

    out_shape = tuple(jax.ShapeDtypeStruct((Tp * Bp, Hp), jnp.bfloat16)
                      for _ in range(n_dirs))
    o_spec_fwd = pl.BlockSpec((t_chunk * Bp, Hp), lambda i: (i, 0))
    o_spec_bwd = pl.BlockSpec((t_chunk * Bp, Hp), lambda i, nc=nc: (nc - 1 - i, 0))
    out_specs = tuple(o_spec_bwd if d == 1 else o_spec_fwd for d in range(n_dirs))

    scratch = (
        [pltpu.VMEM((Dp, 3 * Hp), jnp.bfloat16) for _ in range(n_dirs)]   # W_ih^T
        + [pltpu.VMEM((Hp, 3 * Hp), jnp.bfloat16) for _ in range(n_dirs)]  # W_hh^T
        + [pltpu.VMEM((Bp, Hp), jnp.float32) for _ in range(n_dirs)]       # h
        + [pltpu.VMEM((t_chunk * Bp, 3 * Hp), jnp.float32)
           for _ in range(n_dirs)]                                         # gx
        + [pltpu.SemaphoreType.DMA((2 * n_dirs,))]
    )

    # VMEM budget: double-buffered bf16 x/out chunk streams, single-copy bf16
    # weights (scratch), double-buffered tiny f32 biases, f32 h + gx scratch.
    est = (2 * n_dirs * 2 * t_chunk * Bp * Dp            # x chunks (bf16, 2-buf)
           + 2 * n_dirs * 2 * t_chunk * Bp * Hp          # out chunks (bf16, 2-buf)
           + 2 * n_dirs * (Dp * 3 * Hp + Hp * 3 * Hp)    # weights (bf16, 1-buf)
           + 4 * 2 * n_dirs * (3 * Hp + Hp)              # biases (f32, 2-buf)
           + 4 * n_dirs * (Bp * Hp + t_chunk * Bp * 3 * Hp)   # h + gx scratch
           + 4 * Bp)                                     # lengths
    try:
        vmem_cap = int(pltpu.get_tpu_info().vmem_capacity_bytes)
    except Exception:  # noqa: BLE001 - conservative fallback
        vmem_cap = 64 * 1024 * 1024
    vmem_limit = int(min(max(int(1.5 * est), 4 * 1024 * 1024),
                         (3 * vmem_cap) // 4))

    cost = pl.CostEstimate(
        flops=int(2 * n_dirs * Tp * Bp * (3 * Hp * Dp + 3 * Hp * Hp)),
        transcendentals=int(3 * n_dirs * Tp * Bp * Hp),
        bytes_accessed=int(2 * n_dirs * Tp * Bp * (Dp + Hp)
                           + 2 * n_dirs * (Dp * 3 * Hp + Hp * 3 * Hp)
                           + 4 * n_dirs * 4 * Hp + 4 * Bp))

    kernel = functools.partial(_gru_kernel, t_chunk=t_chunk, bp=Bp, hp=Hp,
                               n_dirs=n_dirs)
    outs = pl.pallas_call(
        kernel,
        out_shape=out_shape,
        grid=(nc,),
        in_specs=in_specs,
        out_specs=out_specs,
        scratch_shapes=scratch,
        compiler_params=pltpu.CompilerParams(
            dimension_semantics=("arbitrary",),
            vmem_limit_bytes=vmem_limit),
        cost_estimate=cost,
    )(*ins)

    if not isinstance(outs, (tuple, list)):
        outs = (outs,)
    per_dir = [o.astype(jnp.float32).reshape(Tp, Bp, Hp)[:T, :B, :H]
               for o in outs]
    return jnp.concatenate(per_dir, axis=-1)                  # [T, B, H*n_dirs]


# ----------------------------------------------------------------------------
# EncoderText forward (embedding/transpose glue in JAX, recurrence in Pallas).
# ----------------------------------------------------------------------------
def init_encoder_text_params(key, vocab_size, word_dim, embed_size, num_layers,
                             use_bi_gru):
    num_dirs = 2 if use_bi_gru else 1
    k_embed, key = jax.random.split(key)
    params = {
        # nn.Embedding weight, init_weights(): uniform_(-0.1, 0.1)
        "embed": jax.random.uniform(k_embed, (vocab_size, word_dim),
                                    jnp.float32, -0.1, 0.1),
        "gru": [],
    }
    k = 1.0 / jnp.sqrt(embed_size)       # PyTorch GRU default init bound
    for layer in range(num_layers):
        in_dim = word_dim if layer == 0 else embed_size * num_dirs
        dirs = []
        for _ in range(num_dirs):
            key, k1, k2, k3, k4 = jax.random.split(key, 5)
            dirs.append({
                "w_ih": jax.random.uniform(k1, (3 * embed_size, in_dim),
                                           jnp.float32, -k, k),
                "w_hh": jax.random.uniform(k2, (3 * embed_size, embed_size),
                                           jnp.float32, -k, k),
                "b_ih": jax.random.uniform(k3, (3 * embed_size,),
                                           jnp.float32, -k, k),
                "b_hh": jax.random.uniform(k4, (3 * embed_size,),
                                           jnp.float32, -k, k),
            })
        params["gru"].append(dirs)
    return params


def encoder_text_forward(params, x_tokens, lengths, *, use_bi_gru, t_chunk=32):
    """x_tokens: [B, T] int32, lengths: [B] int32 (descending, as in
    pack_padded_sequence).  Returns (cap_emb [B, T, embed_size], cap_len [B])."""
    embed_size = params["gru"][0][0]["w_hh"].shape[1]

    emb = jnp.take(params["embed"], x_tokens, axis=0)             # [B, T, D]
    layer_in = jnp.transpose(emb, (1, 0, 2)).astype(jnp.float32)  # [T, B, D]

    for dirs in params["gru"]:
        layer_in = _run_gru_layer(layer_in, lengths, dirs, t_chunk=t_chunk)

    cap_emb = jnp.transpose(layer_in, (1, 0, 2))                  # [B, T, H*dirs]
    if use_bi_gru:
        cap_emb = (cap_emb[:, :, :embed_size] + cap_emb[:, :, embed_size:]) / 2.0
    return cap_emb, lengths


# ----------------------------------------------------------------------------
# Pure-JAX reference (sanity check of the kernel's recurrence).
# ----------------------------------------------------------------------------
def _ref_gru_dir(x_seq, mask, w_ih, w_hh, b_ih, b_hh, reverse):
    T, B, _ = x_seq.shape
    H = w_hh.shape[1]
    h = jnp.zeros((B, H), jnp.float32)
    out = jnp.zeros((T, B, H), jnp.float32)
    order = range(T - 1, -1, -1) if reverse else range(T)
    for t in order:
        gx = x_seq[t] @ w_ih.T + b_ih
        gh = h @ w_hh.T + b_hh
        r = jax.nn.sigmoid(gx[:, :H] + gh[:, :H])
        z = jax.nn.sigmoid(gx[:, H:2 * H] + gh[:, H:2 * H])
        n = jnp.tanh(gx[:, 2 * H:] + r * gh[:, 2 * H:])
        h_new = (1.0 - z) * n + z * h
        m = mask[t]
        h = m * h_new + (1.0 - m) * h
        out = out.at[t].set(m * h_new)
    return out


def _ref_forward(params, x_tokens, lengths, use_bi_gru):
    B, T = x_tokens.shape
    embed_size = params["gru"][0][0]["w_hh"].shape[1]
    emb = jnp.take(params["embed"], x_tokens, axis=0)
    layer_in = jnp.transpose(emb, (1, 0, 2)).astype(jnp.float32)
    mask = (jnp.arange(T)[:, None] < lengths[None, :]).astype(jnp.float32)
    mask = mask[:, :, None]
    for dirs in params["gru"]:
        outs = [
            _ref_gru_dir(layer_in, mask, p["w_ih"], p["w_hh"], p["b_ih"],
                         p["b_hh"], reverse=(d == 1))
            for d, p in enumerate(dirs)
        ]
        layer_in = jnp.concatenate(outs, axis=-1)
    cap_emb = jnp.transpose(layer_in, (1, 0, 2))
    if use_bi_gru:
        cap_emb = (cap_emb[:, :, :embed_size] + cap_emb[:, :, embed_size:]) / 2.0
    return cap_emb, lengths


if __name__ == "__main__":
    # Small, forward-consistent shapes.
    vocab_size, word_dim, embed_size = 50, 32, 32
    num_layers, use_bi_gru = 1, True
    B, T = 4, 8

    key = jax.random.PRNGKey(0)
    k_params, k_tokens = jax.random.split(key)
    params = init_encoder_text_params(k_params, vocab_size, word_dim,
                                      embed_size, num_layers, use_bi_gru)

    x_tokens = jax.random.randint(k_tokens, (B, T), 0, vocab_size, jnp.int32)
    lengths = jnp.array([8, 6, 5, 3], jnp.int32)   # descending, as pack_padded expects

    # t_chunk=4 -> a 2-step grid, exercising the chunked streaming + h carry
    # (including the reverse-direction index_map and the single-shot weight DMA)
    # even at demo sizes.
    cap_emb, cap_len = encoder_text_forward(params, x_tokens, lengths,
                                            use_bi_gru=use_bi_gru, t_chunk=4)
    cap_emb = jax.block_until_ready(cap_emb)
    cap_len = jax.block_until_ready(cap_len)

    assert cap_emb.shape == (B, T, embed_size)
    assert cap_len.shape == (B,)

    # Sanity-check against a pure-JAX f32 reference of the same math.
    # Tolerance reflects bf16 storage of x / weights / outputs (f32 accumulation).
    ref_emb, _ = _ref_forward(params, x_tokens, lengths, use_bi_gru)
    assert jnp.allclose(cap_emb, ref_emb, rtol=2e-2, atol=2e-2), (
        float(jnp.max(jnp.abs(cap_emb - ref_emb))))

    print("KERNEL_OK")
</pallas_src>

<mosaic_0001>
module attributes {stable_mosaic.version = 11 : i64} {
  func.func @_gru_kernel(%arg0: i32, %arg1: memref<32x128xbf16, #tpu.memory_space<vmem>>, %arg2: memref<32x128xbf16, #tpu.memory_space<vmem>>, %arg3: memref<8x1xi32, #tpu.memory_space<vmem>>, %arg4: memref<128x384xbf16, #tpu.memory_space<any>>, %arg5: memref<128x384xbf16, #tpu.memory_space<any>>, %arg6: memref<1x384xf32, #tpu.memory_space<vmem>>, %arg7: memref<1x128xf32, #tpu.memory_space<vmem>>, %arg8: memref<128x384xbf16, #tpu.memory_space<any>>, %arg9: memref<128x384xbf16, #tpu.memory_space<any>>, %arg10: memref<1x384xf32, #tpu.memory_space<vmem>>, %arg11: memref<1x128xf32, #tpu.memory_space<vmem>>, %arg12: memref<32x128xbf16, #tpu.memory_space<vmem>>, %arg13: memref<32x128xbf16, #tpu.memory_space<vmem>>, %arg14: memref<128x384xbf16, #tpu.memory_space<vmem>>, %arg15: memref<128x384xbf16, #tpu.memory_space<vmem>>, %arg16: memref<128x384xbf16, #tpu.memory_space<vmem>>, %arg17: memref<128x384xbf16, #tpu.memory_space<vmem>>, %arg18: memref<8x128xf32, #tpu.memory_space<vmem>>, %arg19: memref<8x128xf32, #tpu.memory_space<vmem>>, %arg20: memref<32x384xf32, #tpu.memory_space<vmem>>, %arg21: memref<32x384xf32, #tpu.memory_space<vmem>>, %arg22: memref<4x!tpu.dma_semaphore, #tpu.memory_space<semaphore_mem>>) attributes {dimension_semantics = [#tpu.dimension_semantics<arbitrary>], iteration_bounds = array<i64: 2>, scalar_prefetch = 0 : i64, scratch_operands = 9 : i64, tpu.core_type = #tpu.core_type<tc>, window_params = [{transform_indices = @transform_0, window_bounds = array<i64: 32, 128>}, {transform_indices = @transform_1, window_bounds = array<i64: 32, 128>}, {pipeline_mode = #tpu.pipeline_mode<synchronous>, transform_indices = @transform_2, window_bounds = array<i64: 8, 1>}, {}, {}, {pipeline_mode = #tpu.pipeline_mode<synchronous>, transform_indices = @transform_5, window_bounds = array<i64: 1, 384>}, {pipeline_mode = #tpu.pipeline_mode<synchronous>, transform_indices = @transform_6, window_bounds = array<i64: 1, 128>}, {}, {}, {pipeline_mode = #tpu.pipeline_mode<synchronous>, transform_indices = @transform_9, window_bounds = array<i64: 1, 384>}, {pipeline_mode = #tpu.pipeline_mode<synchronous>, transform_indices = @transform_10, window_bounds = array<i64: 1, 128>}, {transform_indices = @transform_11, window_bounds = array<i64: 32, 128>}, {transform_indices = @transform_12, window_bounds = array<i64: 32, 128>}]} {
    %c0_i32 = arith.constant 0 : i32
    %0 = arith.cmpi eq, %arg0, %c0_i32 : i32
    %1 = arith.extui %0 : i1 to i32
    %c0_i32_0 = arith.constant 0 : i32
    %2 = arith.cmpi ne, %1, %c0_i32_0 : i32
    scf.if %2 {
      %c0_i32_147 = arith.constant 0 : i32
      %391 = tpu.memref_slice %arg22[%c0_i32_147] : memref<4x!tpu.dma_semaphore, #tpu.memory_space<semaphore_mem>> -> memref<1x!tpu.dma_semaphore, #tpu.memory_space<semaphore_mem>>
      %392 = tpu.memref_squeeze %391 : memref<1x!tpu.dma_semaphore, #tpu.memory_space<semaphore_mem>> -> memref<!tpu.dma_semaphore, #tpu.memory_space<semaphore_mem>>
      tpu.enqueue_dma source(%arg4 : memref<128x384xbf16, #tpu.memory_space<any>>) target(%arg14 : memref<128x384xbf16, #tpu.memory_space<vmem>>) target_semaphore(%392 : memref<!tpu.dma_semaphore, #tpu.memory_space<semaphore_mem>>)
      %c1_i32_148 = arith.constant 1 : i32
      %393 = tpu.memref_slice %arg22[%c1_i32_148] : memref<4x!tpu.dma_semaphore, #tpu.memory_space<semaphore_mem>> -> memref<1x!tpu.dma_semaphore, #tpu.memory_space<semaphore_mem>>
      %394 = tpu.memref_squeeze %393 : memref<1x!tpu.dma_semaphore, #tpu.memory_space<semaphore_mem>> -> memref<!tpu.dma_semaphore, #tpu.memory_space<semaphore_mem>>
      tpu.enqueue_dma source(%arg5 : memref<128x384xbf16, #tpu.memory_space<any>>) target(%arg16 : memref<128x384xbf16, #tpu.memory_space<vmem>>) target_semaphore(%394 : memref<!tpu.dma_semaphore, #tpu.memory_space<semaphore_mem>>)
      %c2_i32_149 = arith.constant 2 : i32
      %395 = tpu.memref_slice %arg22[%c2_i32_149] : memref<4x!tpu.dma_semaphore, #tpu.memory_space<semaphore_mem>> -> memref<1x!tpu.dma_semaphore, #tpu.memory_space<semaphore_mem>>
      %396 = tpu.memref_squeeze %395 : memref<1x!tpu.dma_semaphore, #tpu.memory_space<semaphore_mem>> -> memref<!tpu.dma_semaphore, #tpu.memory_space<semaphore_mem>>
      tpu.enqueue_dma source(%arg8 : memref<128x384xbf16, #tpu.memory_space<any>>) target(%arg15 : memref<128x384xbf16, #tpu.memory_space<vmem>>) target_semaphore(%396 : memref<!tpu.dma_semaphore, #tpu.memory_space<semaphore_mem>>)
      %c3_i32_150 = arith.constant 3 : i32
      %397 = tpu.memref_slice %arg22[%c3_i32_150] : memref<4x!tpu.dma_semaphore, #tpu.memory_space<semaphore_mem>> -> memref<1x!tpu.dma_semaphore, #tpu.memory_space<semaphore_mem>>
      %398 = tpu.memref_squeeze %397 : memref<1x!tpu.dma_semaphore, #tpu.memory_space<semaphore_mem>> -> memref<!tpu.dma_semaphore, #tpu.memory_space<semaphore_mem>>
      tpu.enqueue_dma source(%arg9 : memref<128x384xbf16, #tpu.memory_space<any>>) target(%arg17 : memref<128x384xbf16, #tpu.memory_space<vmem>>) target_semaphore(%398 : memref<!tpu.dma_semaphore, #tpu.memory_space<semaphore_mem>>)
      %c0_i32_151 = arith.constant 0 : i32
      %399 = tpu.memref_slice %arg22[%c0_i32_151] : memref<4x!tpu.dma_semaphore, #tpu.memory_space<semaphore_mem>> -> memref<1x!tpu.dma_semaphore, #tpu.memory_space<semaphore_mem>>
      %400 = tpu.memref_squeeze %399 : memref<1x!tpu.dma_semaphore, #tpu.memory_space<semaphore_mem>> -> memref<!tpu.dma_semaphore, #tpu.memory_space<semaphore_mem>>
      tpu.wait_dma2 semaphore(%400 : memref<!tpu.dma_semaphore, #tpu.memory_space<semaphore_mem>>) src(%arg4 : memref<128x384xbf16, #tpu.memory_space<any>>) dst(%arg14 : memref<128x384xbf16, #tpu.memory_space<vmem>>)
      %c1_i32_152 = arith.constant 1 : i32
      %401 = tpu.memref_slice %arg22[%c1_i32_152] : memref<4x!tpu.dma_semaphore, #tpu.memory_space<semaphore_mem>> -> memref<1x!tpu.dma_semaphore, #tpu.memory_space<semaphore_mem>>
      %402 = tpu.memref_squeeze %401 : memref<1x!tpu.dma_semaphore, #tpu.memory_space<semaphore_mem>> -> memref<!tpu.dma_semaphore, #tpu.memory_space<semaphore_mem>>
      tpu.wait_dma2 semaphore(%402 : memref<!tpu.dma_semaphore, #tpu.memory_space<semaphore_mem>>) src(%arg5 : memref<128x384xbf16, #tpu.memory_space<any>>) dst(%arg16 : memref<128x384xbf16, #tpu.memory_space<vmem>>)
      %c2_i32_153 = arith.constant 2 : i32
      %403 = tpu.memref_slice %arg22[%c2_i32_153] : memref<4x!tpu.dma_semaphore, #tpu.memory_space<semaphore_mem>> -> memref<1x!tpu.dma_semaphore, #tpu.memory_space<semaphore_mem>>
      %404 = tpu.memref_squeeze %403 : memref<1x!tpu.dma_semaphore, #tpu.memory_space<semaphore_mem>> -> memref<!tpu.dma_semaphore, #tpu.memory_space<semaphore_mem>>
      tpu.wait_dma2 semaphore(%404 : memref<!tpu.dma_semaphore, #tpu.memory_space<semaphore_mem>>) src(%arg8 : memref<128x384xbf16, #tpu.memory_space<any>>) dst(%arg15 : memref<128x384xbf16, #tpu.memory_space<vmem>>)
      %c3_i32_154 = arith.constant 3 : i32
      %405 = tpu.memref_slice %arg22[%c3_i32_154] : memref<4x!tpu.dma_semaphore, #tpu.memory_space<semaphore_mem>> -> memref<1x!tpu.dma_semaphore, #tpu.memory_space<semaphore_mem>>
      %406 = tpu.memref_squeeze %405 : memref<1x!tpu.dma_semaphore, #tpu.memory_space<semaphore_mem>> -> memref<!tpu.dma_semaphore, #tpu.memory_space<semaphore_mem>>
      tpu.wait_dma2 semaphore(%406 : memref<!tpu.dma_semaphore, #tpu.memory_space<semaphore_mem>>) src(%arg9 : memref<128x384xbf16, #tpu.memory_space<any>>) dst(%arg17 : memref<128x384xbf16, #tpu.memory_space<vmem>>)
      %cst_155 = arith.constant 0.000000e+00 : f32
      %407 = vector.broadcast %cst_155 : f32 to vector<8x128xf32>
      %c0_156 = arith.constant 0 : index
      %c0_157 = arith.constant 0 : index
      %408 = vector.load %arg18[%c0_156, %c0_157] : memref<8x128xf32, #tpu.memory_space<vmem>>, vector<8x128xf32>
      tpu.vector_store %arg18[%c0_156, %c0_157], %407 {strides = array<i32>} : memref<8x128xf32, #tpu.memory_space<vmem>>, vector<8x128xf32>,
      %cst_158 = arith.constant 0.000000e+00 : f32
      %409 = vector.broadcast %cst_158 : f32 to vector<8x128xf32>
      %c0_159 = arith.constant 0 : index
      %c0_160 = arith.constant 0 : index
      %410 = vector.load %arg19[%c0_159, %c0_160] : memref<8x128xf32, #tpu.memory_space<vmem>>, vector<8x128xf32>
      tpu.vector_store %arg19[%c0_159, %c0_160], %409 {strides = array<i32>} : memref<8x128xf32, #tpu.memory_space<vmem>>, vector<8x128xf32>,
    } else {
    }
    %c0 = arith.constant 0 : index
    %c0_1 = arith.constant 0 : index
    %3 = vector.load %arg3[%c0, %c0_1] : memref<8x1xi32, #tpu.memory_space<vmem>>, vector<8x1xi32>
    %c0_2 = arith.constant 0 : index
    %c0_3 = arith.constant 0 : index
    %4 = vector.load %arg6[%c0_2, %c0_3] : memref<1x384xf32, #tpu.memory_space<vmem>>, vector<1x384xf32>
    %c0_4 = arith.constant 0 : index
    %c0_5 = arith.constant 0 : index
    %5 = vector.load %arg1[%c0_4, %c0_5] : memref<32x128xbf16, #tpu.memory_space<vmem>>, vector<32x128xbf16>
    %c0_6 = arith.constant 0 : index
    %c0_7 = arith.constant 0 : index
    %6 = vector.load %arg14[%c0_6, %c0_7] : memref<128x384xbf16, #tpu.memory_space<vmem>>, vector<128x384xbf16>
    %cst = arith.constant dense<0.000000e+00> : vector<32x384xf32>
    %7 = tpu.matmul %5, %6, %cst {dimension_numbers = #tpu.dot_dimension_numbers<[1], [0], [0], [1], [0, 0, 1, 1], [], []>} : vector<32x128xbf16>, vector<128x384xbf16>, vector<32x384xf32> -> vector<32x384xf32>
    %8 = vector.broadcast %4 : vector<1x384xf32> to vector<32x384xf32>
    %9 = arith.addf %7, %8 : vector<32x384xf32>
    %c0_8 = arith.constant 0 : index
    %c0_9 = arith.constant 0 : index
    %10 = vector.load %arg20[%c0_8, %c0_9] : memref<32x384xf32, #tpu.memory_space<vmem>>, vector<32x384xf32>
    tpu.vector_store %arg20[%c0_8, %c0_9], %9 {strides = array<i32>} : memref<32x384xf32, #tpu.memory_space<vmem>>, vector<32x384xf32>,
    %c0_10 = arith.constant 0 : index
    %c0_11 = arith.constant 0 : index
    %11 = vector.load %arg10[%c0_10, %c0_11] : memref<1x384xf32, #tpu.memory_space<vmem>>, vector<1x384xf32>
    %c0_12 = arith.constant 0 : index
    %c0_13 = arith.constant 0 : index
    %12 = vector.load %arg2[%c0_12, %c0_13] : memref<32x128xbf16, #tpu.memory_space<vmem>>, vector<32x128xbf16>
    %c0_14 = arith.constant 0 : index
    %c0_15 = arith.constant 0 : index
    %13 = vector.load %arg15[%c0_14, %c0_15] : memref<128x384xbf16, #tpu.memory_space<vmem>>, vector<128x384xbf16>
    %cst_16 = arith.constant dense<0.000000e+00> : vector<32x384xf32>
    %14 = tpu.matmul %12, %13, %cst_16 {dimension_numbers = #tpu.dot_dimension_numbers<[1], [0], [0], [1], [0, 0, 1, 1], [], []>} : vector<32x128xbf16>, vector<128x384xbf16>, vector<32x384xf32> -> vector<32x384xf32>
    %15 = vector.broadcast %11 : vector<1x384xf32> to vector<32x384xf32>
    %16 = arith.addf %14, %15 : vector<32x384xf32>
    %c0_17 = arith.constant 0 : index
    %c0_18 = arith.constant 0 : index
    %17 = vector.load %arg21[%c0_17, %c0_18] : memref<32x384xf32, #tpu.memory_space<vmem>>, vector<32x384xf32>
    tpu.vector_store %arg21[%c0_17, %c0_18], %16 {strides = array<i32>} : memref<32x384xf32, #tpu.memory_space<vmem>>, vector<32x384xf32>,
    %c0_19 = arith.constant 0 : index
    %c0_20 = arith.constant 0 : index
    %18 = vector.load %arg7[%c0_19, %c0_20] : memref<1x128xf32, #tpu.memory_space<vmem>>, vector<1x128xf32>
    %c0_21 = arith.constant 0 : index
    %c0_22 = arith.constant 0 : index
    %19 = vector.load %arg11[%c0_21, %c0_22] : memref<1x128xf32, #tpu.memory_space<vmem>>, vector<1x128xf32>
    %c4_i32 = arith.constant 4 : i32
    %20 = arith.muli %arg0, %c4_i32 : i32
    %c1_i32 = arith.constant 1 : i32
    %21 = arith.subi %c1_i32, %arg0 : i32
    %c4_i32_23 = arith.constant 4 : i32
    %22 = arith.muli %21, %c4_i32_23 : i32
    %c0_24 = arith.constant 0 : index
    %c0_25 = arith.constant 0 : index
    %23 = vector.load %arg20[%c0_24, %c0_25] : memref<32x384xf32, #tpu.memory_space<vmem>>, vector<8x384xf32>
    %c0_26 = arith.constant 0 : index
    %c0_27 = arith.constant 0 : index
    %24 = vector.load %arg18[%c0_26, %c0_27] : memref<8x128xf32, #tpu.memory_space<vmem>>, vector<8x128xf32>
    %25 = arith.truncf %24 : vector<8x128xf32> to vector<8x128xbf16>
    %c0_28 = arith.constant 0 : index
    %c0_29 = arith.constant 0 : index
    %26 = vector.load %arg16[%c0_28, %c0_29] : memref<128x384xbf16, #tpu.memory_space<vmem>>, vector<128x384xbf16>
    %cst_30 = arith.constant dense<0.000000e+00> : vector<8x384xf32>
    %27 = tpu.matmul %25, %26, %cst_30 {dimension_numbers = #tpu.dot_dimension_numbers<[1], [0], [0], [1], [0, 0, 1, 1], [], []>} : vector<8x128xbf16>, vector<128x384xbf16>, vector<8x384xf32> -> vector<8x384xf32>
    %28 = vector.extract_strided_slice %23 {offsets = [0, 0], sizes = [8, 128], strides = [1, 1]} : vector<8x384xf32> to vector<8x128xf32>
    %29 = vector.extract_strided_slice %27 {offsets = [0, 0], sizes = [8, 128], strides = [1, 1]} : vector<8x384xf32> to vector<8x128xf32>
    %30 = arith.addf %28, %29 : vector<8x128xf32>
    %31 = arith.negf %30 : vector<8x128xf32>
    %32 = math.exp %31 : vector<8x128xf32>
    %cst_31 = arith.constant 1.000000e+00 : f32
    %33 = vector.broadcast %cst_31 : f32 to vector<8x128xf32>
    %34 = arith.addf %33, %32 : vector<8x128xf32>
    %35 = arith.divf %33, %34 : vector<8x128xf32>
    %36 = vector.extract_strided_slice %23 {offsets = [0, 128], sizes = [8, 128], strides = [1, 1]} : vector<8x384xf32> to vector<8x128xf32>
    %37 = vector.extract_strided_slice %27 {offsets = [0, 128], sizes = [8, 128], strides = [1, 1]} : vector<8x384xf32> to vector<8x128xf32>
    %38 = arith.addf %36, %37 : vector<8x128xf32>
    %39 = arith.negf %38 : vector<8x128xf32>
    %40 = math.exp %39 : vector<8x128xf32>
    %cst_32 = arith.constant 1.000000e+00 : f32
    %41 = vector.broadcast %cst_32 : f32 to vector<8x128xf32>
    %42 = arith.addf %41, %40 : vector<8x128xf32>
    %43 = arith.divf %41, %42 : vector<8x128xf32>
    %44 = vector.extract_strided_slice %23 {offsets = [0, 256], sizes = [8, 128], strides = [1, 1]} : vector<8x384xf32> to vector<8x128xf32>
    %45 = vector.extract_strided_slice %27 {offsets = [0, 256], sizes = [8, 128], strides = [1, 1]} : vector<8x384xf32> to vector<8x128xf32>
    %46 = vector.broadcast %18 : vector<1x128xf32> to vector<8x128xf32>
    %47 = arith.addf %45, %46 : vector<8x128xf32>
    %48 = arith.mulf %35, %47 : vector<8x128xf32>
    %49 = arith.addf %44, %48 : vector<8x128xf32>
    %50 = math.tanh %49 : vector<8x128xf32>
    %cst_33 = arith.constant 1.000000e+00 : f32
    %51 = vector.broadcast %cst_33 : f32 to vector<8x128xf32>
    %52 = arith.subf %51, %43 : vector<8x128xf32>
    %53 = arith.mulf %52, %50 : vector<8x128xf32>
    %54 = arith.mulf %43, %24 : vector<8x128xf32>
    %55 = arith.addf %53, %54 : vector<8x128xf32>
    %c0_i32_34 = arith.constant 0 : i32
    %56 = arith.addi %20, %c0_i32_34 : i32
    %57 = vector.broadcast %56 : i32 to vector<8x1xi32>
    %58 = arith.cmpi sgt, %3, %57 : vector<8x1xi32>
    %59 = vector.shape_cast %58 : vector<8x1xi1> to vector<8x1xi1>
    %60 = vector.broadcast %59 : vector<8x1xi1> to vector<8x128xi1>
    %61 = arith.select %60, %55, %24 : vector<8x128xi1>, vector<8x128xf32>
    %c0_35 = arith.constant 0 : index
    %c0_36 = arith.constant 0 : index
    %62 = vector.load %arg18[%c0_35, %c0_36] : memref<8x128xf32, #tpu.memory_space<vmem>>, vector<8x128xf32>
    tpu.vector_store %arg18[%c0_35, %c0_36], %61 {strides = array<i32>} : memref<8x128xf32, #tpu.memory_space<vmem>>, vector<8x128xf32>,
    %cst_37 = arith.constant 0.000000e+00 : f32
    %63 = vector.shape_cast %58 : vector<8x1xi1> to vector<8x1xi1>
    %64 = vector.broadcast %63 : vector<8x1xi1> to vector<8x128xi1>
    %65 = vector.broadcast %cst_37 : f32 to vector<8x128xf32>
    %66 = arith.select %64, %55, %65 : vector<8x128xi1>, vector<8x128xf32>
    %67 = arith.truncf %66 : vector<8x128xf32> to vector<8x128xbf16>
    %c0_38 = arith.constant 0 : index
    %c0_39 = arith.constant 0 : index
    %68 = vector.load %arg12[%c0_38, %c0_39] : memref<32x128xbf16, #tpu.memory_space<vmem>>, vector<8x128xbf16>
    tpu.vector_store %arg12[%c0_38, %c0_39], %67 {strides = array<i32>} : memref<32x128xbf16, #tpu.memory_space<vmem>>, vector<8x128xbf16>,
    %c24 = arith.constant 24 : index
    %c0_40 = arith.constant 0 : index
    %69 = vector.load %arg21[%c24, %c0_40] : memref<32x384xf32, #tpu.memory_space<vmem>>, vector<8x384xf32>
    %c0_41 = arith.constant 0 : index
    %c0_42 = arith.constant 0 : index
    %70 = vector.load %arg19[%c0_41, %c0_42] : memref<8x128xf32, #tpu.memory_space<vmem>>, vector<8x128xf32>
    %71 = arith.truncf %70 : vector<8x128xf32> to vector<8x128xbf16>
    %c0_43 = arith.constant 0 : index
    %c0_44 = arith.constant 0 : index
    %72 = vector.load %arg17[%c0_43, %c0_44] : memref<128x384xbf16, #tpu.memory_space<vmem>>, vector<128x384xbf16>
    %cst_45 = arith.constant dense<0.000000e+00> : vector<8x384xf32>
    %73 = tpu.matmul %71, %72, %cst_45 {dimension_numbers = #tpu.dot_dimension_numbers<[1], [0], [0], [1], [0, 0, 1, 1], [], []>} : vector<8x128xbf16>, vector<128x384xbf16>, vector<8x384xf32> -> vector<8x384xf32>
    %74 = vector.extract_strided_slice %69 {offsets = [0, 0], sizes = [8, 128], strides = [1, 1]} : vector<8x384xf32> to vector<8x128xf32>
    %75 = vector.extract_strided_slice %73 {offsets = [0, 0], sizes = [8, 128], strides = [1, 1]} : vector<8x384xf32> to vector<8x128xf32>
    %76 = arith.addf %74, %75 : vector<8x128xf32>
    %77 = arith.negf %76 : vector<8x128xf32>
    %78 = math.exp %77 : vector<8x128xf32>
    %cst_46 = arith.constant 1.000000e+00 : f32
    %79 = vector.broadcast %cst_46 : f32 to vector<8x128xf32>
    %80 = arith.addf %79, %78 : vector<8x128xf32>
    %81 = arith.divf %79, %80 : vector<8x128xf32>
    %82 = vector.extract_strided_slice %69 {offsets = [0, 128], sizes = [8, 128], strides = [1, 1]} : vector<8x384xf32> to vector<8x128xf32>
    %83 = vector.extract_strided_slice %73 {offsets = [0, 128], sizes = [8, 128], strides = [1, 1]} : vector<8x384xf32> to vector<8x128xf32>
    %84 = arith.addf %82, %83 : vector<8x128xf32>
    %85 = arith.negf %84 : vector<8x128xf32>
    %86 = math.exp %85 : vector<8x128xf32>
    %cst_47 = arith.constant 1.000000e+00 : f32
    %87 = vector.broadcast %cst_47 : f32 to vector<8x128xf32>
    %88 = arith.addf %87, %86 : vector<8x128xf32>
    %89 = arith.divf %87, %88 : vector<8x128xf32>
    %90 = vector.extract_strided_slice %69 {offsets = [0, 256], sizes = [8, 128], strides = [1, 1]} : vector<8x384xf32> to vector<8x128xf32>
    %91 = vector.extract_strided_slice %73 {offsets = [0, 256], sizes = [8, 128], strides = [1, 1]} : vector<8x384xf32> to vector<8x128xf32>
    %92 = vector.broadcast %19 : vector<1x128xf32> to vector<8x128xf32>
    %93 = arith.addf %91, %92 : vector<8x128xf32>
    %94 = arith.mulf %81, %93 : vector<8x128xf32>
    %95 = arith.addf %90, %94 : vector<8x128xf32>
    %96 = math.tanh %95 : vector<8x128xf32>
    %cst_48 = arith.constant 1.000000e+00 : f32
    %97 = vector.broadcast %cst_48 : f32 to vector<8x128xf32>
    %98 = arith.subf %97, %89 : vector<8x128xf32>
    %99 = arith.mulf %98, %96 : vector<8x128xf32>
    %100 = arith.mulf %89, %70 : vector<8x128xf32>
    %101 = arith.addf %99, %100 : vector<8x128xf32>
    %c3_i32 = arith.constant 3 : i32
    %102 = arith.addi %22, %c3_i32 : i32
    %103 = vector.broadcast %102 : i32 to vector<8x1xi32>
    %104 = arith.cmpi sgt, %3, %103 : vector<8x1xi32>
    %105 = vector.shape_cast %104 : vector<8x1xi1> to vector<8x1xi1>
    %106 = vector.broadcast %105 : vector<8x1xi1> to vector<8x128xi1>
    %107 = arith.select %106, %101, %70 : vector<8x128xi1>, vector<8x128xf32>
    %c0_49 = arith.constant 0 : index
    %c0_50 = arith.constant 0 : index
    %108 = vector.load %arg19[%c0_49, %c0_50] : memref<8x128xf32, #tpu.memory_space<vmem>>, vector<8x128xf32>
    tpu.vector_store %arg19[%c0_49, %c0_50], %107 {strides = array<i32>} : memref<8x128xf32, #tpu.memory_space<vmem>>, vector<8x128xf32>,
    %cst_51 = arith.constant 0.000000e+00 : f32
    %109 = vector.shape_cast %104 : vector<8x1xi1> to vector<8x1xi1>
    %110 = vector.broadcast %109 : vector<8x1xi1> to vector<8x128xi1>
    %111 = vector.broadcast %cst_51 : f32 to vector<8x128xf32>
    %112 = arith.select %110, %101, %111 : vector<8x128xi1>, vector<8x128xf32>
    %113 = arith.truncf %112 : vector<8x128xf32> to vector<8x128xbf16>
    %c24_52 = arith.constant 24 : index
    %c0_53 = arith.constant 0 : index
    %114 = vector.load %arg13[%c24_52, %c0_53] : memref<32x128xbf16, #tpu.memory_space<vmem>>, vector<8x128xbf16>
    tpu.vector_store %arg13[%c24_52, %c0_53], %113 {strides = array<i32>} : memref<32x128xbf16, #tpu.memory_space<vmem>>, vector<8x128xbf16>,
    %c8 = arith.constant 8 : index
    %c0_54 = arith.constant 0 : index
    %115 = vector.load %arg20[%c8, %c0_54] : memref<32x384xf32, #tpu.memory_space<vmem>>, vector<8x384xf32>
    %c0_55 = arith.constant 0 : index
    %c0_56 = arith.constant 0 : index
    %116 = vector.load %arg18[%c0_55, %c0_56] : memref<8x128xf32, #tpu.memory_space<vmem>>, vector<8x128xf32>
    %117 = arith.truncf %116 : vector<8x128xf32> to vector<8x128xbf16>
    %c0_57 = arith.constant 0 : index
    %c0_58 = arith.constant 0 : index
    %118 = vector.load %arg16[%c0_57, %c0_58] : memref<128x384xbf16, #tpu.memory_space<vmem>>, vector<128x384xbf16>
    %cst_59 = arith.constant dense<0.000000e+00> : vector<8x384xf32>
    %119 = tpu.matmul %117, %118, %cst_59 {dimension_numbers = #tpu.dot_dimension_numbers<[1], [0], [0], [1], [0, 0, 1, 1], [], []>} : vector<8x128xbf16>, vector<128x384xbf16>, vector<8x384xf32> -> vector<8x384xf32>
    %120 = vector.extract_strided_slice %115 {offsets = [0, 0], sizes = [8, 128], strides = [1, 1]} : vector<8x384xf32> to vector<8x128xf32>
    %121 = vector.extract_strided_slice %119 {offsets = [0, 0], sizes = [8, 128], strides = [1, 1]} : vector<8x384xf32> to vector<8x128xf32>
    %122 = arith.addf %120, %121 : vector<8x128xf32>
    %123 = arith.negf %122 : vector<8x128xf32>
    %124 = math.exp %123 : vector<8x128xf32>
    %cst_60 = arith.constant 1.000000e+00 : f32
    %125 = vector.broadcast %cst_60 : f32 to vector<8x128xf32>
    %126 = arith.addf %125, %124 : vector<8x128xf32>
    %127 = arith.divf %125, %126 : vector<8x128xf32>
    %128 = vector.extract_strided_slice %115 {offsets = [0, 128], sizes = [8, 128], strides = [1, 1]} : vector<8x384xf32> to vector<8x128xf32>
    %129 = vector.extract_strided_slice %119 {offsets = [0, 128], sizes = [8, 128], strides = [1, 1]} : vector<8x384xf32> to vector<8x128xf32>
    %130 = arith.addf %128, %129 : vector<8x128xf32>
    %131 = arith.negf %130 : vector<8x128xf32>
    %132 = math.exp %131 : vector<8x128xf32>
    %cst_61 = arith.constant 1.000000e+00 : f32
    %133 = vector.broadcast %cst_61 : f32 to vector<8x128xf32>
    %134 = arith.addf %133, %132 : vector<8x128xf32>
    %135 = arith.divf %133, %134 : vector<8x128xf32>
    %136 = vector.extract_strided_slice %115 {offsets = [0, 256], sizes = [8, 128], strides = [1, 1]} : vector<8x384xf32> to vector<8x128xf32>
    %137 = vector.extract_strided_slice %119 {offsets = [0, 256], sizes = [8, 128], strides = [1, 1]} : vector<8x384xf32> to vector<8x128xf32>
    %138 = vector.broadcast %18 : vector<1x128xf32> to vector<8x128xf32>
    %139 = arith.addf %137, %138 : vector<8x128xf32>
    %140 = arith.mulf %127, %139 : vector<8x128xf32>
    %141 = arith.addf %136, %140 : vector<8x128xf32>
    %142 = math.tanh %141 : vector<8x128xf32>
    %cst_62 = arith.constant 1.000000e+00 : f32
    %143 = vector.broadcast %cst_62 : f32 to vector<8x128xf32>
    %144 = arith.subf %143, %135 : vector<8x128xf32>
    %145 = arith.mulf %144, %142 : vector<8x128xf32>
    %146 = arith.mulf %135, %116 : vector<8x128xf32>
    %147 = arith.addf %145, %146 : vector<8x128xf32>
    %c1_i32_63 = arith.constant 1 : i32
    %148 = arith.addi %20, %c1_i32_63 : i32
    %149 = vector.broadcast %148 : i32 to vector<8x1xi32>
    %150 = arith.cmpi sgt, %3, %149 : vector<8x1xi32>
    %151 = vector.shape_cast %150 : vector<8x1xi1> to vector<8x1xi1>
    %152 = vector.broadcast %151 : vector<8x1xi1> to vector<8x128xi1>
    %153 = arith.select %152, %147, %116 : vector<8x128xi1>, vector<8x128xf32>
    %c0_64 = arith.constant 0 : index
    %c0_65 = arith.constant 0 : index
    %154 = vector.load %arg18[%c0_64, %c0_65] : memref<8x128xf32, #tpu.memory_space<vmem>>, vector<8x128xf32>
    tpu.vector_store %arg18[%c0_64, %c0_65], %153 {strides = array<i32>} : memref<8x128xf32, #tpu.memory_space<vmem>>, vector<8x128xf32>,
    %cst_66 = arith.constant 0.000000e+00 : f32
    %155 = vector.shape_cast %150 : vector<8x1xi1> to vector<8x1xi1>
    %156 = vector.broadcast %155 : vector<8x1xi1> to vector<8x128xi1>
    %157 = vector.broadcast %cst_66 : f32 to vector<8x128xf32>
    %158 = arith.select %156, %147, %157 : vector<8x128xi1>, vector<8x128xf32>
    %159 = arith.truncf %158 : vector<8x128xf32> to vector<8x128xbf16>
    %c8_67 = arith.constant 8 : index
    %c0_68 = arith.constant 0 : index
    %160 = vector.load %arg12[%c8_67, %c0_68] : memref<32x128xbf16, #tpu.memory_space<vmem>>, vector<8x128xbf16>
    tpu.vector_store %arg12[%c8_67, %c0_68], %159 {strides = array<i32>} : memref<32x128xbf16, #tpu.memory_space<vmem>>, vector<8x128xbf16>,
    %c16 = arith.constant 16 : index
    %c0_69 = arith.constant 0 : index
    %161 = vector.load %arg21[%c16, %c0_69] : memref<32x384xf32, #tpu.memory_space<vmem>>, vector<8x384xf32>
    %c0_70 = arith.constant 0 : index
    %c0_71 = arith.constant 0 : index
    %162 = vector.load %arg19[%c0_70, %c0_71] : memref<8x128xf32, #tpu.memory_space<vmem>>, vector<8x128xf32>
    %163 = arith.truncf %162 : vector<8x128xf32> to vector<8x128xbf16>
    %c0_72 = arith.constant 0 : index
    %c0_73 = arith.constant 0 : index
    %164 = vector.load %arg17[%c0_72, %c0_73] : memref<128x384xbf16, #tpu.memory_space<vmem>>, vector<128x384xbf16>
    %cst_74 = arith.constant dense<0.000000e+00> : vector<8x384xf32>
    %165 = tpu.matmul %163, %164, %cst_74 {dimension_numbers = #tpu.dot_dimension_numbers<[1], [0], [0], [1], [0, 0, 1, 1], [], []>} : vector<8x128xbf16>, vector<128x384xbf16>, vector<8x384xf32> -> vector<8x384xf32>
    %166 = vector.extract_strided_slice %161 {offsets = [0, 0], sizes = [8, 128], strides = [1, 1]} : vector<8x384xf32> to vector<8x128xf32>
    %167 = vector.extract_strided_slice %165 {offsets = [0, 0], sizes = [8, 128], strides = [1, 1]} : vector<8x384xf32> to vector<8x128xf32>
    %168 = arith.addf %166, %167 : vector<8x128xf32>
    %169 = arith.negf %168 : vector<8x128xf32>
    %170 = math.exp %169 : vector<8x128xf32>
    %cst_75 = arith.constant 1.000000e+00 : f32
    %171 = vector.broadcast %cst_75 : f32 to vector<8x128xf32>
    %172 = arith.addf %171, %170 : vector<8x128xf32>
    %173 = arith.divf %171, %172 : vector<8x128xf32>
    %174 = vector.extract_strided_slice %161 {offsets = [0, 128], sizes = [8, 128], strides = [1, 1]} : vector<8x384xf32> to vector<8x128xf32>
    %175 = vector.extract_strided_slice %165 {offsets = [0, 128], sizes = [8, 128], strides = [1, 1]} : vector<8x384xf32> to vector<8x128xf32>
    %176 = arith.addf %174, %175 : vector<8x128xf32>
    %177 = arith.negf %176 : vector<8x128xf32>
    %178 = math.exp %177 : vector<8x128xf32>
    %cst_76 = arith.constant 1.000000e+00 : f32
    %179 = vector.broadcast %cst_76 : f32 to vector<8x128xf32>
    %180 = arith.addf %179, %178 : vector<8x128xf32>
    %181 = arith.divf %179, %180 : vector<8x128xf32>
    %182 = vector.extract_strided_slice %161 {offsets = [0, 256], sizes = [8, 128], strides = [1, 1]} : vector<8x384xf32> to vector<8x128xf32>
    %183 = vector.extract_strided_slice %165 {offsets = [0, 256], sizes = [8, 128], strides = [1, 1]} : vector<8x384xf32> to vector<8x128xf32>
    %184 = vector.broadcast %19 : vector<1x128xf32> to vector<8x128xf32>
    %185 = arith.addf %183, %184 : vector<8x128xf32>
    %186 = arith.mulf %173, %185 : vector<8x128xf32>
    %187 = arith.addf %182, %186 : vector<8x128xf32>
    %188 = math.tanh %187 : vector<8x128xf32>
    %cst_77 = arith.constant 1.000000e+00 : f32
    %189 = vector.broadcast %cst_77 : f32 to vector<8x128xf32>
    %190 = arith.subf %189, %181 : vector<8x128xf32>
    %191 = arith.mulf %190, %188 : vector<8x128xf32>
    %192 = arith.mulf %181, %162 : vector<8x128xf32>
    %193 = arith.addf %191, %192 : vector<8x128xf32>
    %c2_i32 = arith.constant 2 : i32
    %194 = arith.addi %22, %c2_i32 : i32
    %195 = vector.broadcast %194 : i32 to vector<8x1xi32>
    %196 = arith.cmpi sgt, %3, %195 : vector<8x1xi32>
    %197 = vector.shape_cast %196 : vector<8x1xi1> to vector<8x1xi1>
    %198 = vector.broadcast %197 : vector<8x1xi1> to vector<8x128xi1>
    %199 = arith.select %198, %193, %162 : vector<8x128xi1>, vector<8x128xf32>
    %c0_78 = arith.constant 0 : index
    %c0_79 = arith.constant 0 : index
    %200 = vector.load %arg19[%c0_78, %c0_79] : memref<8x128xf32, #tpu.memory_space<vmem>>, vector<8x128xf32>
    tpu.vector_store %arg19[%c0_78, %c0_79], %199 {strides = array<i32>} : memref<8x128xf32, #tpu.memory_space<vmem>>, vector<8x128xf32>,
    %cst_80 = arith.constant 0.000000e+00 : f32
    %201 = vector.shape_cast %196 : vector<8x1xi1> to vector<8x1xi1>
    %202 = vector.broadcast %201 : vector<8x1xi1> to vector<8x128xi1>
    %203 = vector.broadcast %cst_80 : f32 to vector<8x128xf32>
    %204 = arith.select %202, %193, %203 : vector<8x128xi1>, vector<8x128xf32>
    %205 = arith.truncf %204 : vector<8x128xf32> to vector<8x128xbf16>
    %c16_81 = arith.constant 16 : index
    %c0_82 = arith.constant 0 : index
    %206 = vector.load %arg13[%c16_81, %c0_82] : memref<32x128xbf16, #tpu.memory_space<vmem>>, vector<8x128xbf16>
    tpu.vector_store %arg13[%c16_81, %c0_82], %205 {strides = array<i32>} : memref<32x128xbf16, #tpu.memory_space<vmem>>, vector<8x128xbf16>,
    %c16_83 = arith.constant 16 : index
    %c0_84 = arith.constant 0 : index
    %207 = vector.load %arg20[%c16_83, %c0_84] : memref<32x384xf32, #tpu.memory_space<vmem>>, vector<8x384xf32>
    %c0_85 = arith.constant 0 : index
    %c0_86 = arith.constant 0 : index
    %208 = vector.load %arg18[%c0_85, %c0_86] : memref<8x128xf32, #tpu.memory_space<vmem>>, vector<8x128xf32>
    %209 = arith.truncf %208 : vector<8x128xf32> to vector<8x128xbf16>
    %c0_87 = arith.constant 0 : index
    %c0_88 = arith.constant 0 : index
    %210 = vector.load %arg16[%c0_87, %c0_88] : memref<128x384xbf16, #tpu.memory_space<vmem>>, vector<128x384xbf16>
    %cst_89 = arith.constant dense<0.000000e+00> : vector<8x384xf32>
    %211 = tpu.matmul %209, %210, %cst_89 {dimension_numbers = #tpu.dot_dimension_numbers<[1], [0], [0], [1], [0, 0, 1, 1], [], []>} : vector<8x128xbf16>, vector<128x384xbf16>, vector<8x384xf32> -> vector<8x384xf32>
    %212 = vector.extract_strided_slice %207 {offsets = [0, 0], sizes = [8, 128], strides = [1, 1]} : vector<8x384xf32> to vector<8x128xf32>
    %213 = vector.extract_strided_slice %211 {offsets = [0, 0], sizes = [8, 128], strides = [1, 1]} : vector<8x384xf32> to vector<8x128xf32>
    %214 = arith.addf %212, %213 : vector<8x128xf32>
    %215 = arith.negf %214 : vector<8x128xf32>
    %216 = math.exp %215 : vector<8x128xf32>
    %cst_90 = arith.constant 1.000000e+00 : f32
    %217 = vector.broadcast %cst_90 : f32 to vector<8x128xf32>
    %218 = arith.addf %217, %216 : vector<8x128xf32>
    %219 = arith.divf %217, %218 : vector<8x128xf32>
    %220 = vector.extract_strided_slice %207 {offsets = [0, 128], sizes = [8, 128], strides = [1, 1]} : vector<8x384xf32> to vector<8x128xf32>
    %221 = vector.extract_strided_slice %211 {offsets = [0, 128], sizes = [8, 128], strides = [1, 1]} : vector<8x384xf32> to vector<8x128xf32>
    %222 = arith.addf %220, %221 : vector<8x128xf32>
    %223 = arith.negf %222 : vector<8x128xf32>
    %224 = math.exp %223 : vector<8x128xf32>
    %cst_91 = arith.constant 1.000000e+00 : f32
    %225 = vector.broadcast %cst_91 : f32 to vector<8x128xf32>
    %226 = arith.addf %225, %224 : vector<8x128xf32>
    %227 = arith.divf %225, %226 : vector<8x128xf32>
    %228 = vector.extract_strided_slice %207 {offsets = [0, 256], sizes = [8, 128], strides = [1, 1]} : vector<8x384xf32> to vector<8x128xf32>
    %229 = vector.extract_strided_slice %211 {offsets = [0, 256], sizes = [8, 128], strides = [1, 1]} : vector<8x384xf32> to vector<8x128xf32>
    %230 = vector.broadcast %18 : vector<1x128xf32> to vector<8x128xf32>
    %231 = arith.addf %229, %230 : vector<8x128xf32>
    %232 = arith.mulf %219, %231 : vector<8x128xf32>
    %233 = arith.addf %228, %232 : vector<8x128xf32>
    %234 = math.tanh %233 : vector<8x128xf32>
    %cst_92 = arith.constant 1.000000e+00 : f32
    %235 = vector.broadcast %cst_92 : f32 to vector<8x128xf32>
    %236 = arith.subf %235, %227 : vector<8x128xf32>
    %237 = arith.mulf %236, %234 : vector<8x128xf32>
    %238 = arith.mulf %227, %208 : vector<8x128xf32>
    %239 = arith.addf %237, %238 : vector<8x128xf32>
    %c2_i32_93 = arith.constant 2 : i32
    %240 = arith.addi %20, %c2_i32_93 : i32
    %241 = vector.broadcast %240 : i32 to vector<8x1xi32>
    %242 = arith.cmpi sgt, %3, %241 : vector<8x1xi32>
    %243 = vector.shape_cast %242 : vector<8x1xi1> to vector<8x1xi1>
    %244 = vector.broadcast %243 : vector<8x1xi1> to vector<8x128xi1>
    %245 = arith.select %244, %239, %208 : vector<8x128xi1>, vector<8x128xf32>
    %c0_94 = arith.constant 0 : index
    %c0_95 = arith.constant 0 : index
    %246 = vector.load %arg18[%c0_94, %c0_95] : memref<8x128xf32, #tpu.memory_space<vmem>>, vector<8x128xf32>
    tpu.vector_store %arg18[%c0_94, %c0_95], %245 {strides = array<i32>} : memref<8x128xf32, #tpu.memory_space<vmem>>, vector<8x128xf32>,
    %cst_96 = arith.constant 0.000000e+00 : f32
    %247 = vector.shape_cast %242 : vector<8x1xi1> to vector<8x1xi1>
    %248 = vector.broadcast %247 : vector<8x1xi1> to vector<8x128xi1>
    %249 = vector.broadcast %cst_96 : f32 to vector<8x128xf32>
    %250 = arith.select %248, %239, %249 : vector<8x128xi1>, vector<8x128xf32>
    %251 = arith.truncf %250 : vector<8x128xf32> to vector<8x128xbf16>
    %c16_97 = arith.constant 16 : index
    %c0_98 = arith.constant 0 : index
    %252 = vector.load %arg12[%c16_97, %c0_98] : memref<32x128xbf16, #tpu.memory_space<vmem>>, vector<8x128xbf16>
    tpu.vector_store %arg12[%c16_97, %c0_98], %251 {strides = array<i32>} : memref<32x128xbf16, #tpu.memory_space<vmem>>, vector<8x128xbf16>,
    %c8_99 = arith.constant 8 : index
    %c0_100 = arith.constant 0 : index
    %253 = vector.load %arg21[%c8_99, %c0_100] : memref<32x384xf32, #tpu.memory_space<vmem>>, vector<8x384xf32>
    %c0_101 = arith.constant 0 : index
    %c0_102 = arith.constant 0 : index
    %254 = vector.load %arg19[%c0_101, %c0_102] : memref<8x128xf32, #tpu.memory_space<vmem>>, vector<8x128xf32>
    %255 = arith.truncf %254 : vector<8x128xf32> to vector<8x128xbf16>
    %c0_103 = arith.constant 0 : index
    %c0_104 = arith.constant 0 : index
    %256 = vector.load %arg17[%c0_103, %c0_104] : memref<128x384xbf16, #tpu.memory_space<vmem>>, vector<128x384xbf16>
    %cst_105 = arith.constant dense<0.000000e+00> : vector<8x384xf32>
    %257 = tpu.matmul %255, %256, %cst_105 {dimension_numbers = #tpu.dot_dimension_numbers<[1], [0], [0], [1], [0, 0, 1, 1], [], []>} : vector<8x128xbf16>, vector<128x384xbf16>, vector<8x384xf32> -> vector<8x384xf32>
    %258 = vector.extract_strided_slice %253 {offsets = [0, 0], sizes = [8, 128], strides = [1, 1]} : vector<8x384xf32> to vector<8x128xf32>
    %259 = vector.extract_strided_slice %257 {offsets = [0, 0], sizes = [8, 128], strides = [1, 1]} : vector<8x384xf32> to vector<8x128xf32>
    %260 = arith.addf %258, %259 : vector<8x128xf32>
    %261 = arith.negf %260 : vector<8x128xf32>
    %262 = math.exp %261 : vector<8x128xf32>
    %cst_106 = arith.constant 1.000000e+00 : f32
    %263 = vector.broadcast %cst_106 : f32 to vector<8x128xf32>
    %264 = arith.addf %263, %262 : vector<8x128xf32>
    %265 = arith.divf %263, %264 : vector<8x128xf32>
    %266 = vector.extract_strided_slice %253 {offsets = [0, 128], sizes = [8, 128], strides = [1, 1]} : vector<8x384xf32> to vector<8x128xf32>
    %267 = vector.extract_strided_slice %257 {offsets = [0, 128], sizes = [8, 128], strides = [1, 1]} : vector<8x384xf32> to vector<8x128xf32>
    %268 = arith.addf %266, %267 : vector<8x128xf32>
    %269 = arith.negf %268 : vector<8x128xf32>
    %270 = math.exp %269 : vector<8x128xf32>
    %cst_107 = arith.constant 1.000000e+00 : f32
    %271 = vector.broadcast %cst_107 : f32 to vector<8x128xf32>
    %272 = arith.addf %271, %270 : vector<8x128xf32>
    %273 = arith.divf %271, %272 : vector<8x128xf32>
    %274 = vector.extract_strided_slice %253 {offsets = [0, 256], sizes = [8, 128], strides = [1, 1]} : vector<8x384xf32> to vector<8x128xf32>
    %275 = vector.extract_strided_slice %257 {offsets = [0, 256], sizes = [8, 128], strides = [1, 1]} : vector<8x384xf32> to vector<8x128xf32>
    %276 = vector.broadcast %19 : vector<1x128xf32> to vector<8x128xf32>
    %277 = arith.addf %275, %276 : vector<8x128xf32>
    %278 = arith.mulf %265, %277 : vector<8x128xf32>
    %279 = arith.addf %274, %278 : vector<8x128xf32>
    %280 = math.tanh %279 : vector<8x128xf32>
    %cst_108 = arith.constant 1.000000e+00 : f32
    %281 = vector.broadcast %cst_108 : f32 to vector<8x128xf32>
    %282 = arith.subf %281, %273 : vector<8x128xf32>
    %283 = arith.mulf %282, %280 : vector<8x128xf32>
    %284 = arith.mulf %273, %254 : vector<8x128xf32>
    %285 = arith.addf %283, %284 : vector<8x128xf32>
    %c1_i32_109 = arith.constant 1 : i32
    %286 = arith.addi %22, %c1_i32_109 : i32
    %287 = vector.broadcast %286 : i32 to vector<8x1xi32>
    %288 = arith.cmpi sgt, %3, %287 : vector<8x1xi32>
    %289 = vector.shape_cast %288 : vector<8x1xi1> to vector<8x1xi1>
    %290 = vector.broadcast %289 : vector<8x1xi1> to vector<8x128xi1>
    %291 = arith.select %290, %285, %254 : vector<8x128xi1>, vector<8x128xf32>
    %c0_110 = arith.constant 0 : index
    %c0_111 = arith.constant 0 : index
    %292 = vector.load %arg19[%c0_110, %c0_111] : memref<8x128xf32, #tpu.memory_space<vmem>>, vector<8x128xf32>
    tpu.vector_store %arg19[%c0_110, %c0_111], %291 {strides = array<i32>} : memref<8x128xf32, #tpu.memory_space<vmem>>, vector<8x128xf32>,
    %cst_112 = arith.constant 0.000000e+00 : f32
    %293 = vector.shape_cast %288 : vector<8x1xi1> to vector<8x1xi1>
    %294 = vector.broadcast %293 : vector<8x1xi1> to vector<8x128xi1>
    %295 = vector.broadcast %cst_112 : f32 to vector<8x128xf32>
    %296 = arith.select %294, %285, %295 : vector<8x128xi1>, vector<8x128xf32>
    %297 = arith.truncf %296 : vector<8x128xf32> to vector<8x128xbf16>
    %c8_113 = arith.constant 8 : index
    %c0_114 = arith.constant 0 : index
    %298 = vector.load %arg13[%c8_113, %c0_114] : memref<32x128xbf16, #tpu.memory_space<vmem>>, vector<8x128xbf16>
    tpu.vector_store %arg13[%c8_113, %c0_114], %297 {strides = array<i32>} : memref<32x128xbf16, #tpu.memory_space<vmem>>, vector<8x128xbf16>,
    %c24_115 = arith.constant 24 : index
    %c0_116 = arith.constant 0 : index
    %299 = vector.load %arg20[%c24_115, %c0_116] : memref<32x384xf32, #tpu.memory_space<vmem>>, vector<8x384xf32>
    %c0_117 = arith.constant 0 : index
    %c0_118 = arith.constant 0 : index
    %300 = vector.load %arg18[%c0_117, %c0_118] : memref<8x128xf32, #tpu.memory_space<vmem>>, vector<8x128xf32>
    %301 = arith.truncf %300 : vector<8x128xf32> to vector<8x128xbf16>
    %c0_119 = arith.constant 0 : index
    %c0_120 = arith.constant 0 : index
    %302 = vector.load %arg16[%c0_119, %c0_120] : memref<128x384xbf16, #tpu.memory_space<vmem>>, vector<128x384xbf16>
    %cst_121 = arith.constant dense<0.000000e+00> : vector<8x384xf32>
    %303 = tpu.matmul %301, %302, %cst_121 {dimension_numbers = #tpu.dot_dimension_numbers<[1], [0], [0], [1], [0, 0, 1, 1], [], []>} : vector<8x128xbf16>, vector<128x384xbf16>, vector<8x384xf32> -> vector<8x384xf32>
    %304 = vector.extract_strided_slice %299 {offsets = [0, 0], sizes = [8, 128], strides = [1, 1]} : vector<8x384xf32> to vector<8x128xf32>
    %305 = vector.extract_strided_slice %303 {offsets = [0, 0], sizes = [8, 128], strides = [1, 1]} : vector<8x384xf32> to vector<8x128xf32>
    %306 = arith.addf %304, %305 : vector<8x128xf32>
    %307 = arith.negf %306 : vector<8x128xf32>
    %308 = math.exp %307 : vector<8x128xf32>
    %cst_122 = arith.constant 1.000000e+00 : f32
    %309 = vector.broadcast %cst_122 : f32 to vector<8x128xf32>
    %310 = arith.addf %309, %308 : vector<8x128xf32>
    %311 = arith.divf %309, %310 : vector<8x128xf32>
    %312 = vector.extract_strided_slice %299 {offsets = [0, 128], sizes = [8, 128], strides = [1, 1]} : vector<8x384xf32> to vector<8x128xf32>
    %313 = vector.extract_strided_slice %303 {offsets = [0, 128], sizes = [8, 128], strides = [1, 1]} : vector<8x384xf32> to vector<8x128xf32>
    %314 = arith.addf %312, %313 : vector<8x128xf32>
    %315 = arith.negf %314 : vector<8x128xf32>
    %316 = math.exp %315 : vector<8x128xf32>
    %cst_123 = arith.constant 1.000000e+00 : f32
    %317 = vector.broadcast %cst_123 : f32 to vector<8x128xf32>
    %318 = arith.addf %317, %316 : vector<8x128xf32>
    %319 = arith.divf %317, %318 : vector<8x128xf32>
    %320 = vector.extract_strided_slice %299 {offsets = [0, 256], sizes = [8, 128], strides = [1, 1]} : vector<8x384xf32> to vector<8x128xf32>
    %321 = vector.extract_strided_slice %303 {offsets = [0, 256], sizes = [8, 128], strides = [1, 1]} : vector<8x384xf32> to vector<8x128xf32>
    %322 = vector.broadcast %18 : vector<1x128xf32> to vector<8x128xf32>
    %323 = arith.addf %321, %322 : vector<8x128xf32>
    %324 = arith.mulf %311, %323 : vector<8x128xf32>
    %325 = arith.addf %320, %324 : vector<8x128xf32>
    %326 = math.tanh %325 : vector<8x128xf32>
    %cst_124 = arith.constant 1.000000e+00 : f32
    %327 = vector.broadcast %cst_124 : f32 to vector<8x128xf32>
    %328 = arith.subf %327, %319 : vector<8x128xf32>
    %329 = arith.mulf %328, %326 : vector<8x128xf32>
    %330 = arith.mulf %319, %300 : vector<8x128xf32>
    %331 = arith.addf %329, %330 : vector<8x128xf32>
    %c3_i32_125 = arith.constant 3 : i32
    %332 = arith.addi %20, %c3_i32_125 : i32
    %333 = vector.broadcast %332 : i32 to vector<8x1xi32>
    %334 = arith.cmpi sgt, %3, %333 : vector<8x1xi32>
    %335 = vector.shape_cast %334 : vector<8x1xi1> to vector<8x1xi1>
    %336 = vector.broadcast %335 : vector<8x1xi1> to vector<8x128xi1>
    %337 = arith.select %336, %331, %300 : vector<8x128xi1>, vector<8x128xf32>
    %c0_126 = arith.constant 0 : index
    %c0_127 = arith.constant 0 : index
    %338 = vector.load %arg18[%c0_126, %c0_127] : memref<8x128xf32, #tpu.memory_space<vmem>>, vector<8x128xf32>
    tpu.vector_store %arg18[%c0_126, %c0_127], %337 {strides = array<i32>} : memref<8x128xf32, #tpu.memory_space<vmem>>, vector<8x128xf32>,
    %cst_128 = arith.constant 0.000000e+00 : f32
    %339 = vector.shape_cast %334 : vector<8x1xi1> to vector<8x1xi1>
    %340 = vector.broadcast %339 : vector<8x1xi1> to vector<8x128xi1>
    %341 = vector.broadcast %cst_128 : f32 to vector<8x128xf32>
    %342 = arith.select %340, %331, %341 : vector<8x128xi1>, vector<8x128xf32>
    %343 = arith.truncf %342 : vector<8x128xf32> to vector<8x128xbf16>
    %c24_129 = arith.constant 24 : index
    %c0_130 = arith.constant 0 : index
    %344 = vector.load %arg12[%c24_129, %c0_130] : memref<32x128xbf16, #tpu.memory_space<vmem>>, vector<8x128xbf16>
    tpu.vector_store %arg12[%c24_129, %c0_130], %343 {strides = array<i32>} : memref<32x128xbf16, #tpu.memory_space<vmem>>, vector<8x128xbf16>,
    %c0_131 = arith.constant 0 : index
    %c0_132 = arith.constant 0 : index
    %345 = vector.load %arg21[%c0_131, %c0_132] : memref<32x384xf32, #tpu.memory_space<vmem>>, vector<8x384xf32>
    %c0_133 = arith.constant 0 : index
    %c0_134 = arith.constant 0 : index
    %346 = vector.load %arg19[%c0_133, %c0_134] : memref<8x128xf32, #tpu.memory_space<vmem>>, vector<8x128xf32>
    %347 = arith.truncf %346 : vector<8x128xf32> to vector<8x128xbf16>
    %c0_135 = arith.constant 0 : index
    %c0_136 = arith.constant 0 : index
    %348 = vector.load %arg17[%c0_135, %c0_136] : memref<128x384xbf16, #tpu.memory_space<vmem>>, vector<128x384xbf16>
    %cst_137 = arith.constant dense<0.000000e+00> : vector<8x384xf32>
    %349 = tpu.matmul %347, %348, %cst_137 {dimension_numbers = #tpu.dot_dimension_numbers<[1], [0], [0], [1], [0, 0, 1, 1], [], []>} : vector<8x128xbf16>, vector<128x384xbf16>, vector<8x384xf32> -> vector<8x384xf32>
    %350 = vector.extract_strided_slice %345 {offsets = [0, 0], sizes = [8, 128], strides = [1, 1]} : vector<8x384xf32> to vector<8x128xf32>
    %351 = vector.extract_strided_slice %349 {offsets = [0, 0], sizes = [8, 128], strides = [1, 1]} : vector<8x384xf32> to vector<8x128xf32>
    %352 = arith.addf %350, %351 : vector<8x128xf32>
    %353 = arith.negf %352 : vector<8x128xf32>
    %354 = math.exp %353 : vector<8x128xf32>
    %cst_138 = arith.constant 1.000000e+00 : f32
    %355 = vector.broadcast %cst_138 : f32 to vector<8x128xf32>
    %356 = arith.addf %355, %354 : vector<8x128xf32>
    %357 = arith.divf %355, %356 : vector<8x128xf32>
    %358 = vector.extract_strided_slice %345 {offsets = [0, 128], sizes = [8, 128], strides = [1, 1]} : vector<8x384xf32> to vector<8x128xf32>
    %359 = vector.extract_strided_slice %349 {offsets = [0, 128], sizes = [8, 128], strides = [1, 1]} : vector<8x384xf32> to vector<8x128xf32>
    %360 = arith.addf %358, %359 : vector<8x128xf32>
    %361 = arith.negf %360 : vector<8x128xf32>
    %362 = math.exp %361 : vector<8x128xf32>
    %cst_139 = arith.constant 1.000000e+00 : f32
    %363 = vector.broadcast %cst_139 : f32 to vector<8x128xf32>
    %364 = arith.addf %363, %362 : vector<8x128xf32>
    %365 = arith.divf %363, %364 : vector<8x128xf32>
    %366 = vector.extract_strided_slice %345 {offsets = [0, 256], sizes = [8, 128], strides = [1, 1]} : vector<8x384xf32> to vector<8x128xf32>
    %367 = vector.extract_strided_slice %349 {offsets = [0, 256], sizes = [8, 128], strides = [1, 1]} : vector<8x384xf32> to vector<8x128xf32>
    %368 = vector.broadcast %19 : vector<1x128xf32> to vector<8x128xf32>
    %369 = arith.addf %367, %368 : vector<8x128xf32>
    %370 = arith.mulf %357, %369 : vector<8x128xf32>
    %371 = arith.addf %366, %370 : vector<8x128xf32>
    %372 = math.tanh %371 : vector<8x128xf32>
    %cst_140 = arith.constant 1.000000e+00 : f32
    %373 = vector.broadcast %cst_140 : f32 to vector<8x128xf32>
    %374 = arith.subf %373, %365 : vector<8x128xf32>
    %375 = arith.mulf %374, %372 : vector<8x128xf32>
    %376 = arith.mulf %365, %346 : vector<8x128xf32>
    %377 = arith.addf %375, %376 : vector<8x128xf32>
    %c0_i32_141 = arith.constant 0 : i32
    %378 = arith.addi %22, %c0_i32_141 : i32
    %379 = vector.broadcast %378 : i32 to vector<8x1xi32>
    %380 = arith.cmpi sgt, %3, %379 : vector<8x1xi32>
    %381 = vector.shape_cast %380 : vector<8x1xi1> to vector<8x1xi1>
    %382 = vector.broadcast %381 : vector<8x1xi1> to vector<8x128xi1>
    %383 = arith.select %382, %377, %346 : vector<8x128xi1>, vector<8x128xf32>
    %c0_142 = arith.constant 0 : index
    %c0_143 = arith.constant 0 : index
    %384 = vector.load %arg19[%c0_142, %c0_143] : memref<8x128xf32, #tpu.memory_space<vmem>>, vector<8x128xf32>
    tpu.vector_store %arg19[%c0_142, %c0_143], %383 {strides = array<i32>} : memref<8x128xf32, #tpu.memory_space<vmem>>, vector<8x128xf32>,
    %cst_144 = arith.constant 0.000000e+00 : f32
    %385 = vector.shape_cast %380 : vector<8x1xi1> to vector<8x1xi1>
    %386 = vector.broadcast %385 : vector<8x1xi1> to vector<8x128xi1>
    %387 = vector.broadcast %cst_144 : f32 to vector<8x128xf32>
    %388 = arith.select %386, %377, %387 : vector<8x128xi1>, vector<8x128xf32>
    %389 = arith.truncf %388 : vector<8x128xf32> to vector<8x128xbf16>
    %c0_145 = arith.constant 0 : index
    %c0_146 = arith.constant 0 : index
    %390 = vector.load %arg13[%c0_145, %c0_146] : memref<32x128xbf16, #tpu.memory_space<vmem>>, vector<8x128xbf16>
    tpu.vector_store %arg13[%c0_145, %c0_146], %389 {strides = array<i32>} : memref<32x128xbf16, #tpu.memory_space<vmem>>, vector<8x128xbf16>,
    return
  }
  func.func @transform_0(%arg0: i32) -> (i32, i32) {
    %c0_i32 = arith.constant 0 : i32
    %c0_i32_0 = arith.constant 0 : i32
    return %arg0, %c0_i32 : i32, i32
  }
  func.func @transform_1(%arg0: i32) -> (i32, i32) {
    %c1_i32 = arith.constant 1 : i32
    %0 = arith.subi %c1_i32, %arg0 : i32
    %c0_i32 = arith.constant 0 : i32
    %c0_i32_0 = arith.constant 0 : i32
    return %0, %c0_i32 : i32, i32
  }
  func.func @transform_2(%arg0: i32) -> (i32, i32) {
    %c0_i32 = arith.constant 0 : i32
    %c0_i32_0 = arith.constant 0 : i32
    %c0_i32_1 = arith.constant 0 : i32
    return %c0_i32, %c0_i32_0 : i32, i32
  }
  func.func @transform_5(%arg0: i32) -> (i32, i32) {
    %c0_i32 = arith.constant 0 : i32
    %c0_i32_0 = arith.constant 0 : i32
    %c0_i32_1 = arith.constant 0 : i32
    return %c0_i32, %c0_i32_0 : i32, i32
  }
  func.func @transform_6(%arg0: i32) -> (i32, i32) {
    %c0_i32 = arith.constant 0 : i32
    %c0_i32_0 = arith.constant 0 : i32
    %c0_i32_1 = arith.constant 0 : i32
    return %c0_i32, %c0_i32_0 : i32, i32
  }
  func.func @transform_9(%arg0: i32) -> (i32, i32) {
    %c0_i32 = arith.constant 0 : i32
    %c0_i32_0 = arith.constant 0 : i32
    %c0_i32_1 = arith.constant 0 : i32
    return %c0_i32, %c0_i32_0 : i32, i32
  }
  func.func @transform_10(%arg0: i32) -> (i32, i32) {
    %c0_i32 = arith.constant 0 : i32
    %c0_i32_0 = arith.constant 0 : i32
    %c0_i32_1 = arith.constant 0 : i32
    return %c0_i32, %c0_i32_0 : i32, i32
  }
  func.func @transform_11(%arg0: i32) -> (i32, i32) {
    %c0_i32 = arith.constant 0 : i32
    %c0_i32_0 = arith.constant 0 : i32
    return %arg0, %c0_i32 : i32, i32
  }
  func.func @transform_12(%arg0: i32) -> (i32, i32) {
    %c1_i32 = arith.constant 1 : i32
    %0 = arith.subi %c1_i32, %arg0 : i32
    %c0_i32 = arith.constant 0 : i32
    %c0_i32_0 = arith.constant 0 : i32
    return %0, %c0_i32 : i32, i32
  }
}

</mosaic_0001>

<bundles_post_ra>
// kernel: tpu_custom_call.1
= control target key start
LH: loop header
LB: loop body
LE: loop exit
PB: predicated region body
PF: predicated region fallthrough
CT: control target
= control target key end

     0   :  { %s5794_s0 = inlined_call_operand.hbm [shape: bf16[64,128], index: 0, kind: input, shape index: {}]   ;;  %s5795_s1 = inlined_call_operand.hbm [shape: bf16[64,128], index: 1, kind: input, shape index: {}]   ;;  %s5796_s2 = inlined_call_operand.vmem [shape: s32[8,1], index: 2, kind: input, shape index: {}]   ;;  %s5797_s3 = inlined_call_operand.hbm [shape: bf16[128,384], index: 3, kind: input, shape index: {}]   ;;  %s5798_s4 = inlined_call_operand.hbm [shape: bf16[128,384], index: 4, kind: input, shape index: {}]   ;;  %s5799_s5 = inlined_call_operand.vmem [shape: f32[1,384], index: 5, kind: input, shape index: {}]   ;;  %s5800_s6 = inlined_call_operand.vmem [shape: f32[1,128], index: 6, kind: input, shape index: {}]   ;;  %s5801_s7 = inlined_call_operand.hbm [shape: bf16[128,384], index: 7, kind: input, shape index: {}]   ;;  %s5802_s8 = inlined_call_operand.hbm [shape: bf16[128,384], index: 8, kind: input, shape index: {}]   ;;  %s5803_s9 = inlined_call_operand.vmem [shape: f32[1,384], index: 9, kind: input, shape index: {}]   ;;  %s5804_s10 = inlined_call_operand.vmem [shape: f32[1,128], index: 10, kind: input, shape index: {}]   ;;  %s5805_s11 = inlined_call_operand.hbm [shape: bf16[64,128], index: 11, kind: output, shape index: {0}]   ;;  %s5806_s12 = inlined_call_operand.hbm [shape: bf16[64,128], index: 12, kind: output, shape index: {1}]  }
   0x1   :  { %5827 = sst [smem:[#allocation47_spill]] %s5794_s0 }
   0x2   :  { %5828 = sst [smem:[#allocation48_spill]] %s5795_s1 }
   0x3   :  { %5829 = sst [smem:[#allocation49_spill]] %s5797_s3 }
   0x4   :  { %5830 = sst [smem:[#allocation50_spill]] %s5799_s5 }
   0x5   :  { %5831 = sst [smem:[#allocation51_spill]] %s5800_s6 }
   0x6   :  { %5832 = sst [smem:[#allocation52_spill]] %s5804_s10 }
   0x7   :  { %5833 = sst [smem:[#allocation53_spill]] %s5805_s11 }
   0x8   :  { %5834 = sst [smem:[#allocation54_spill]] %s5806_s12 }
   0x9   :  { %18 = vsyncpa [#allocation12], 0 }
   0xa   :  { %20 = vsyncpa [#allocation12 + $0x1], 0 }
   0xb   :  { %21 = vsyncpa [#allocation15], 0 }
   0xc   :  { %23 = vsyncpa [#allocation15 + $0x1], 0 }
   0xd   :  { %24 = vsyncpa [#allocation13], 0 }
   0xe   :  { %26 = vsyncpa [#allocation13 + $0x1], 0 }
   0xf   :  { %27 = vsyncpa [#allocation18], 0 }
  0x10   :  { %29 = vsyncpa [#allocation18 + $0x1], 0  ;;  %s5110_s21 = smov 0   ;;  %s5112_s22 = smov 0  }
  0x11   :  { %s5114_s23 = smov 0   ;;  %s5116_s24 = smov 0  }
  0x12   :  { %s5118_s25 = smov 0   ;;  %s5120_s26 = smov 0  }
  0x13   :  { %s5122_s27 = smov 0  }
  0x14 LB: > { %5835 = sst [smem:[#allocation37_spill]] %s5013_s22  ;;  %s5146_s28 = sadd.s32 4294967295, %s5033_s27   ;;  %s5033_s27 = sphi %s5122_s27, %s5884_s27   ;;  %s5029_s26 = sphi %s5120_s26, %s5890_s26   ;;  %s5025_s25 = sphi %s5118_s25, %s5889_s25   ;;  %s5021_s24 = sphi %s5116_s24, %s5888_s24   ;;  %s5017_s23 = sphi %s5114_s23, %s5887_s23   ;;  %s5013_s22 = sphi %s5112_s22, %s5886_s22   ;;  %s5009_s21 = sphi %s5110_s21, %s5885_s21  }
  0x15   : > { %5836 = sst [smem:[#allocation38_spill]] %s5017_s23  ;;  %s3296_s29 = sadd.s32 4294967294, %s5033_s27  }
  0x16   : > { %5837 = sst [smem:[#allocation39_spill]] %s5021_s24  ;;  %p49_p0 = scmp.ne.s32.totalorder %s5029_s26, %s5025_s25 }
  0x17   : > { %5838 = sst [smem:[#allocation40_spill]] %s5025_s25  ;;  %p5815_p1 = scmp.eq.s32.totalorder %s5033_s27, 0 }
  0x18   : > { %5839 = sst [smem:[#allocation41_spill]] %s5029_s26  ;;  %p55_p2 = scmp.ne.s32.totalorder %s5025_s25, %s5021_s24 }
  0x19   : > { %p5818_p3 = scmp.eq.s32.totalorder %s5146_s28, 0  ;;  %p5817_p4 = scmp.eq.s32.totalorder %s5146_s28, 1 }
  0x1a   : > { %p5159_p5 = por %p5815_p1, %p49_p0  ;;  %p5163_p6 = scmp.eq.s32.totalorder %s3296_s29, 1 }
  0x1b   : > { %p5169_p7 = por %p5818_p3, %p55_p2  ;;  %p5175_p8 = por %p5817_p4, %p49_p0 }
  0x1c   : > { %p5181_p9 = por %p5163_p6, %p55_p2  ;;  %p5816_p11 = scmp.lt.s32.totalorder %s5033_s27, 2 }
  0x1d   : > { %s5843_s16 = scalar_select %p5175_p8, 1, 0 }
  0x1e   : > { %s5845_s17 = scalar_select %p5181_p9, 1, 0 }
  0x1f   : > { %5844 = sst [smem:[#allocation42_spill]] %s5843_s16  ;;  %s281_s18 = sand.u32 1, %s5029_s26  }
  0x20   : > { %5846 = sst [smem:[#allocation43_spill]] %s5845_s17  ;;  %s3299_s19 = sshll.u32 %s281_s18, 4 }
  0x21   : > { %s4317_s20 = sshll.u32 %s5033_s27, 4  ;;  %s5847_s0 = sld [smem:[#allocation47_spill]] }
  0x22   : > { %s285_s12 = scalar_lea.vmem [#allocation11], %s3299_s19  ;;  %p5196_p12 = pnand %p5816_p11, %p5159_p5 }
  0x23   : > { %s293_s11 = sshll.u32 %s285_s12, 4  ;;  %p3305_p13 = scmp.ge.s32.totalorder %s5033_s27, 1  ;;  %s294_s11 = int_to_ptr.vmem [resolvable:$true] %s293_s11 }
  0x24   : > { %s282_s17 = scalar_lea.sflag [#allocation12], %s281_s18  ;;  %p4747_p2 = pneg %p5196_p12 }
  0x27   : > { %s290_s24 = scalar_lea.hbm %s5847_s0, %s4317_s20  ;;  %s4750_s30 = scalar_lea.hbm %s5847_s0, 32 }
  0x28   : > { %s291_s10 = sshll.u32 %s290_s24, 4  ;;  %s292_s10 = int_to_ptr.hbm [resolvable:$true] %s291_s10 }
  0x29   : > { %s4743_s6 = sshra.s32 %s292_s10, 4  ;;  %s4744_s6 = int_to_ptr.hbm [resolvable:$true] %s4743_s6 }
  0x2a   : > { %s4745_s5 = scalar_lea.hbm %s4744_s6, 16  ;;  %p4751_p5 = scmp.lt.s32.totalorder %s4744_s6, %s5847_s0 }
  0x2b   : > { %p4746_p0 = scmp.ne.s32.totalorder %s4744_s6, %s4745_s5  ;;  %p4752_p11 = scmp.lt.s32.totalorder %s4750_s30, %s4745_s5 }
  0x2d   : > { %p4748_p10 = pnand %p4747_p2, %p4746_p0  ;;  %p4753_p4 = por %p4752_p11, %p4751_p5 }
  0x2f   : > { %p4749_p1 = pneg %p4748_p10 }
  0x31   : > { %p4754_p3 = pnand %p4753_p4, %p4749_p1 }
  0x33   : > { %4757 = shalt.err (!%p4754_p3)
}
  0x34   : > { %s5819_s18 = smov 64   ;;  %s5820_s6 = smov 4  }
  0x35   : > { %4576 = dma.hbm_to_vmem [thread:$0]  (!%p5196_p12), %s292_s10, 256, %s294_s11, %s282_s17, %s5819_s18, %s5819_s18, %s5820_s6  }
  0x36   : > { %p324_p1 = scmp.lt.s32.totalorder %s5033_s27, 3  ;;  %s5222_s20 = sadd.s32 1, %s5033_s27  }
  0x37   : > { %5850 = sst [smem:[#allocation44_spill]] %s5222_s20  ;;  %s65_s29 = ssub.s32 1, %s5033_s27 }
  0x38   : > { %p5217_p3 = pnand %p3305_p13, %p324_p1  ;;  %s39_s16 = ssub.s32 %s5033_s27, %s5222_s20 }
  0x39   : > { %s66_s12 = ssub.s32 1, %s5222_s20  ;;  %p40_p4 = scmp.eq.s32.totalorder %s39_s16, 0 }
  0x3a   : > { %s67_s24 = ssub.s32 %s65_s29, %s66_s12  ;;  %s70_s10 = sadd.s32 1, %s5017_s23 }
  0x3b   : > { %p68_p10 = scmp.eq.s32.totalorder %s67_s24, 0  ;;  %s5851_s11 = sadd.s32 1, %s5029_s26 }
  0x3c   : > { %s5232_s17 = scalar_select %p40_p4, %s5029_s26, %s5851_s11  }
  0x3d   : > { %s5235_s30 = scalar_select %p68_p10, %s5017_s23, %s70_s10  }
  0x3e   : > { %5852 = sst [smem:[#allocation45_spill]] %s5232_s17  ;;  %p77_p11 = scmp.ne.s32.totalorder %s5017_s23, %s5013_s22 }
  0x3f   : > { %5853 = sst [smem:[#allocation46_spill]] %s5235_s30  ;;  %p83_p12 = scmp.ne.s32.totalorder %s5013_s22, %s5009_s21 }
  0x40   : > { %s303_s13 = sand.u32 1, %s5017_s23   ;;  %p5854_p13 = scmp.eq.s32.totalorder %s5146_s28, 0 }
  0x41   : > { %s4318_s18 = sshll.u32 %s65_s29, 4  ;;  %p5856_p2 = scmp.eq.s32.totalorder %s5146_s28, 1 }
  0x42   : > { %p5244_p0 = por %p83_p12, %p5854_p13  ;;  %p5256_p1 = por %p5163_p6, %p83_p12 }
  0x43   : > { %p5250_p5 = por %p5856_p2, %p77_p11  ;;  %p5859_p4 = scmp.eq.s32.totalorder %s5033_s27, 0 }
  0x44   : > { %s5858_s12 = scalar_select %p5256_p1, 1, 0 }
  0x45   : > { %p79_p10 = por %p77_p11, %p5859_p4  ;;  %s3302_s24 = sshll.u32 %s303_s13, 4 }
  0x46   : > { %s5860_s1 = sld [smem:[#allocation48_spill]]  ;;  %s307_s17 = scalar_lea.vmem [#allocation14], %s3302_s24 }
  0x47   : > { %s316_s29 = sshll.u32 %s307_s17, 4  ;;  %p5861_p13 = scmp.lt.s32.totalorder %s5033_s27, 2  ;;  %s317_s29 = int_to_ptr.vmem [resolvable:$true] %s316_s29 }
  0x48   : > { %s304_s14 = scalar_lea.sflag [#allocation15], %s303_s13 }
  0x49   : > { %p5267_p2 = pnand %p5861_p13, %p79_p10 }
  0x4b   : > { %p4777_p11 = pneg %p5267_p2 }
  0x4c   : > { %s313_s6 = scalar_lea.hbm %s5860_s1, %s4318_s18  ;;  %s4780_s17 = scalar_lea.hbm %s5860_s1, 32 }
  0x4d   : > { %s314_s0 = sshll.u32 %s313_s6, 4  ;;  %s315_s0 = int_to_ptr.hbm [resolvable:$true] %s314_s0 }
  0x4e   : > { %s4773_s30 = sshra.s32 %s315_s0, 4  ;;  %s4774_s30 = int_to_ptr.hbm [resolvable:$true] %s4773_s30 }
  0x4f   : > { %s4775_s23 = scalar_lea.hbm %s4774_s30, 16  ;;  %p4781_p10 = scmp.lt.s32.totalorder %s4774_s30, %s5860_s1 }
  0x50   : > { %p4776_p6 = scmp.ne.s32.totalorder %s4774_s30, %s4775_s23  ;;  %p4782_p13 = scmp.lt.s32.totalorder %s4780_s17, %s4775_s23 }
  0x52   : > { %p4778_p12 = pnand %p4777_p11, %p4776_p6  ;;  %p4783_p1 = por %p4782_p13, %p4781_p10 }
  0x54   : > { %p4779_p4 = pneg %p4778_p12 }
  0x56   : > { %p4784_p9 = pnand %p4783_p1, %p4779_p4 }
  0x58   : > { %4787 = shalt.err (!%p4784_p9)
}
  0x59   : > { %s5863_s13 = smov 4   ;;  %s5864_s11 = smov 64  }
  0x5a   : > { %4579 = dma.hbm_to_vmem [thread:$0]  (!%p5267_p2), %s315_s0, 256, %s317_s29, %s304_s14, %s5864_s11, %s5864_s11, %s5863_s13  }
  0x5b   : > { %328 = sbr.rel (%p5217_p3) target bundleno = 938 (0x3aa), region = 48  ;;  %s5287_s18 = sand.u32 (!%p5217_p3), 1, %s5025_s25  }
  0x5c   : > { %s3306_s30 = sshll.u32 (!%p5217_p3), %s5287_s18, 4  ;;  %s331_s23 = scalar_lea.sflag (!%p5217_p3), [#allocation12], %s5287_s18 }
  0x5d   : > { %s5291_s6 = scalar_lea.vmem (!%p5217_p3), [#allocation11], %s3306_s30 }
  0x60   : > { %4984 = dma.done.wait (%p5169_p7), %s331_s23, 256  }
  0x61   : > { %4986 = vsyncadd (%p5169_p7), %s331_s23, 4294967040  ;;  %s5298_s0 = sand.u32 1, %s5013_s22  }
  0x62   : > { %s3307_s26 = sshll.u32 %s5298_s0, 4  ;;  %s341_s5 = scalar_lea.sflag [#allocation15], %s5298_s0 }
  0x63   : > { %s5302_s29 = scalar_lea.vmem [#allocation14], %s3307_s26 }
  0x64   : > { %4988 = dma.done.wait (%p5244_p0), %s341_s5, 256  }
  0x65   : > { %4990 = vsyncadd (%p5244_p0), %s341_s5, 4294967040  ;;  %s5308_s14 = scalar_lea.vmem [#allocation16], %s3306_s30  ;;  %s5310_s17 = scalar_lea.vmem [#allocation17], %s3307_s26 }
  0x66   : > { %p3310_p7 = scmp.ne.s32.totalorder %s5146_s28, 0 }
  0x67   : > { %s5865_s3 = sld [smem:[#allocation49_spill]] (!%p3310_p7)  ;;  %s5037_s13 = smov (!%p3310_p7), [#allocation2]  }
  0x68   : > { %397 = sbr.rel (%p3310_p7) target bundleno = 125 (0x7d), region = 60  ;;  %s407_s11 = sshll.u32 (!%p3310_p7), %s5037_s13, 4  ;;  %s408_s11 = int_to_ptr.vmem [resolvable:$true] %s407_s11 }
  0x69   : > { %s419_s19 = sshll.u32 (!%p3310_p7), %s5798_s4, 4  ;;  %s5038_s30 = smov (!%p3310_p7), [#allocation4]   ;;  %s420_s19 = int_to_ptr.hbm [resolvable:$true] %s419_s19 }
  0x6a   : > { %s421_s26 = sshll.u32 (!%p3310_p7), %s5038_s30, 4  ;;  %s433_s22 = sshll.u32 (!%p3310_p7), %s5801_s7, 4  ;;  %s422_s26 = int_to_ptr.vmem [resolvable:$true] %s421_s26  ;;  %s434_s22 = int_to_ptr.hbm [resolvable:$true] %s433_s22 }
  0x6b   : > { %s447_s13 = sshll.u32 (!%p3310_p7), %s5802_s8, 4  ;;  %s5040_s1 = smov (!%p3310_p7), [#allocation5]   ;;  %s448_s13 = int_to_ptr.hbm [resolvable:$true] %s447_s13 }
  0x6d   : > { %s405_s10 = sshll.u32 %s5865_s3, 4  ;;  %s5039_s3 = smov [#allocation3]   ;;  %s406_s10 = int_to_ptr.hbm [resolvable:$true] %s405_s10 }
  0x6e   : > { %410 = dma.hbm_to_vmem [thread:$0]  %s406_s10, 3072, %s408_s11, [#allocation10] }
  0x6f   : > { %424 = dma.hbm_to_vmem [thread:$0]  %s420_s19, 3072, %s422_s26, [#allocation10 + $0x1] }
  0x70   : > { %s435_s20 = sshll.u32 %s5039_s3, 4  ;;  %s449_s10 = sshll.u32 %s5040_s1, 4  ;;  %s436_s20 = int_to_ptr.vmem [resolvable:$true] %s435_s20  ;;  %s450_s10 = int_to_ptr.vmem [resolvable:$true] %s449_s10 }
  0x71   : > { %438 = dma.hbm_to_vmem [thread:$0]  %s434_s22, 3072, %s436_s20, [#allocation10 + $0x2] }
  0x72   : > { %452 = dma.hbm_to_vmem [thread:$0]  %s448_s13, 3072, %s450_s10, [#allocation10 + $0x3] }
  0x73   : > { %4991 = dma.done.wait [#allocation10], 3072 }
  0x74   : > { %4992 = vsyncadd [#allocation10], 4294964224 }
  0x75   : > { %4993 = dma.done.wait [#allocation10 + $0x1], 3072 }
  0x76   : > { %4994 = vsyncadd [#allocation10 + $0x1], 4294964224 }
  0x77   : > { %4995 = dma.done.wait [#allocation10 + $0x2], 3072 }
  0x78   : > { %4996 = vsyncadd [#allocation10 + $0x2], 4294964224 }
  0x79   : > { %4997 = dma.done.wait [#allocation10 + $0x3], 3072 }
  0x7a   : > { %4998 = vsyncadd [#allocation10 + $0x3], 4294964224  ;;  %v5041_v0 = vmov 0.0  }
  0x7b   : > { %463 = vst [vmem:[#allocation6] sm:$0xff] %v5041_v0 }
  0x7c   : > { %464 = vst [vmem:[#allocation7] sm:$0xff] %v5041_v0 }
  0x7d PF: > { %v4342_v1 = vld [vmem:[#allocation2 + $0xac] sm:$0xf]  ;;  %v3407_v2 = vld [vmem:[#allocation2 + $0xb4] sm:$0xf0]  ;;  %v3413_v3 = vld [vmem:[#allocation2 + $0xb0] sm:$0xf] }
  0x7e   : > { %v3410_v4 = vor.u32 %v4342_v1, %v3407_v2  ;;  %v4344_v5 = vld [vmem:[#allocation2 + $0xb8] sm:$0xf0]  ;;  %v3509_v6 = vld [vmem:[#allocation3 + $0xa8] sm:$0xf]  ;;  %v4369_v7 = vld [vmem:[#allocation3 + $0xb0] sm:$0xf0] }
  0x7f   : > { %v3414_v8 = vor.u32 %v4344_v5, %v3413_v3  ;;  %v3510_v9 = vor.u32 %v4369_v7, %v3509_v6  ;;  %v3405_v10 = vld [vmem:[#allocation2 + $0xa8] sm:$0xf]  ;;  %v4343_v11 = vld [vmem:[#allocation2 + $0xb0] sm:$0xf0]  ;;  %v3395_v14 = vld [vmem:[#allocation2 + $0x9c] sm:$0xf0] }
  0x80   : > { %v4339_v12 = vld [vmem:[#allocation2 + $0x94] sm:$0xf]  ;;  %669 = vmatpush.bf16.msra.mxu1 %v3410_v4  ;;  %v3406_v13 = vor.u32 %v4343_v11, %v3405_v10  ;;  %v3401_v15 = vld [vmem:[#allocation2 + $0x98] sm:$0xf]  ;;  %v4341_v16 = vld [vmem:[#allocation2 + $0xa0] sm:$0xf0] }
  0x81   : > { %688 = vmatpush.bf16.msra.mxu2 %v3414_v8  ;;  %903 = vmatpush.bf16.msra.mxu3 %v3510_v9  ;;  %v3398_v17 = vor.u32 %v4339_v12, %v3395_v14  ;;  %v3402_v18 = vor.u32 %v4341_v16, %v3401_v15  ;;  %v3497_v19 = vld [vmem:[#allocation3 + $0x90] sm:$0xf]  ;;  %v4366_v20 = vld [vmem:[#allocation3 + $0x98] sm:$0xf0]  ;;  %v3383_v25 = vld [vmem:[#allocation2 + $0x84] sm:$0xf0] }
  0x82   : > { %v3393_v21 = vld [vmem:[#allocation2 + $0x90] sm:$0xf]  ;;  %650 = vmatpush.bf16.msra.mxu0 %v3406_v13  ;;  %v3498_v22 = vor.u32 %v4366_v20, %v3497_v19  ;;  %v4340_v23 = vld [vmem:[#allocation2 + $0x98] sm:$0xf0]  ;;  %v3389_v27 = vld [vmem:[#allocation2 + $0x80] sm:$0xf] }
  0x83   : > { %v4336_v24 = vld [vmem:[#allocation2 + $0x7c] sm:$0xf]  ;;  %v3394_v26 = vor.u32 %v4340_v23, %v3393_v21  ;;  %v4338_v28 = vld [vmem:[#allocation2 + $0x88] sm:$0xf0]  ;;  %v3485_v29 = vld [vmem:[#allocation3 + $0x78] sm:$0xf] }
  0x84   : > { %670 = vmatpush.bf16.msra.mxu1 %v3398_v17  ;;  %v3386_v30 = vor.u32 %v4336_v24, %v3383_v25  ;;  %v4363_v31 = vld [vmem:[#allocation3 + $0x80] sm:$0xf0]  ;;  %v3381_v32 = vld [vmem:[#allocation2 + $0x78] sm:$0xf]  ;;  %v3390_v34 = vor.u32 %v4338_v28, %v3389_v27  ;;  %v3371_v37 = vld [vmem:[#allocation2 + $0x6c] sm:$0xf0] }
  0x85   : > { %v4337_v33 = vld [vmem:[#allocation2 + $0x80] sm:$0xf0]  ;;  %689 = vmatpush.bf16.msra.mxu2 %v3402_v18  ;;  %904 = vmatpush.bf16.msra.mxu3 %v3498_v22  ;;  %v3486_v35 = vor.u32 %v4363_v31, %v3485_v29  ;;  %v3377_v38 = vld [vmem:[#allocation2 + $0x68] sm:$0xf]  ;;  %v4335_v40 = vld [vmem:[#allocation2 + $0x70] sm:$0xf0] }
  0x86   : > { %v4333_v36 = vld [vmem:[#allocation2 + $0x64] sm:$0xf]  ;;  %651 = vmatpush.bf16.msra.mxu0 %v3394_v26  ;;  %v3382_v39 = vor.u32 %v4337_v33, %v3381_v32  ;;  %v3473_v41 = vld [vmem:[#allocation3 + $0x60] sm:$0xf]  ;;  %v4360_v42 = vld [vmem:[#allocation3 + $0x68] sm:$0xf0]  ;;  %v3378_v46 = vor.u32 %v4335_v40, %v3377_v38 }
  0x87   : > { %v3369_v43 = vld [vmem:[#allocation2 + $0x60] sm:$0xf]  ;;  %v4334_v44 = vld [vmem:[#allocation2 + $0x68] sm:$0xf0]  ;;  %v3374_v45 = vor.u32 %v4333_v36, %v3371_v37  ;;  %v3474_v47 = vor.u32 %v4360_v42, %v3473_v41  ;;  %v3359_v49 = vld [vmem:[#allocation2 + $0x54] sm:$0xf0] }
  0x88   : > { %671 = vmatpush.bf16.msra.mxu1 %v3386_v30  ;;  %v4330_v48 = vld [vmem:[#allocation2 + $0x4c] sm:$0xf]  ;;  %v3365_v50 = vld [vmem:[#allocation2 + $0x50] sm:$0xf]  ;;  %v3370_v51 = vor.u32 %v4334_v44, %v3369_v43  ;;  %v4332_v52 = vld [vmem:[#allocation2 + $0x58] sm:$0xf0] }
  0x89   : > { %690 = vmatpush.bf16.msra.mxu2 %v3390_v34  ;;  %905 = vmatpush.bf16.msra.mxu3 %v3486_v35  ;;  %v3461_v53 = vld [vmem:[#allocation3 + $0x48] sm:$0xf]  ;;  %v4357_v54 = vld [vmem:[#allocation3 + $0x50] sm:$0xf0]  ;;  %v3362_v57 = vor.u32 %v4330_v48, %v3359_v49  ;;  %v3366_v58 = vor.u32 %v4332_v52, %v3365_v50  ;;  %v3347_v61 = vld [vmem:[#allocation2 + $0x3c] sm:$0xf0] }
  0x8a   : > { %652 = vmatpush.bf16.msra.mxu0 %v3382_v39  ;;  %v3357_v55 = vld [vmem:[#allocation2 + $0x48] sm:$0xf]  ;;  %v4331_v56 = vld [vmem:[#allocation2 + $0x50] sm:$0xf0]  ;;  %v3462_v59 = vor.u32 %v4357_v54, %v3461_v53  ;;  %v3353_v62 = vld [vmem:[#allocation2 + $0x38] sm:$0xf] }
  0x8b   : > { %v4327_v60 = vld [vmem:[#allocation2 + $0x34] sm:$0xf]  ;;  %v3358_v63 = vor.u32 %v4331_v56, %v3357_v55  ;;  %v4329_v0 = vld [vmem:[#allocation2 + $0x40] sm:$0xf0]  ;;  %v3449_v1 = vld [vmem:[#allocation3 + $0x30] sm:$0xf] }
  0x8c   : > { %672 = vmatpush.bf16.msra.mxu1 %v3374_v45  ;;  %v4354_v2 = vld [vmem:[#allocation3 + $0x38] sm:$0xf0]  ;;  %v3345_v3 = vld [vmem:[#allocation2 + $0x30] sm:$0xf]  ;;  %v3350_v5 = vor.u32 %v4327_v60, %v3347_v61  ;;  %v3354_v6 = vor.u32 %v4329_v0, %v3353_v62  ;;  %v3335_v9 = vld [vmem:[#allocation2 + $0x24] sm:$0xf0] }
  0x8d   : > { %691 = vmatpush.bf16.msra.mxu2 %v3378_v46  ;;  %906 = vmatpush.bf16.msra.mxu3 %v3474_v47  ;;  %v4328_v4 = vld [vmem:[#allocation2 + $0x38] sm:$0xf0]  ;;  %v3450_v7 = vor.u32 %v4354_v2, %v3449_v1  ;;  %v3341_v10 = vld [vmem:[#allocation2 + $0x20] sm:$0xf]  ;;  %v4326_v12 = vld [vmem:[#allocation2 + $0x28] sm:$0xf0] }
  0x8e   : > { %653 = vmatpush.bf16.msra.mxu0 %v3370_v51  ;;  %v4324_v8 = vld [vmem:[#allocation2 + $0x1c] sm:$0xf]  ;;  %v3346_v11 = vor.u32 %v4328_v4, %v3345_v3  ;;  %v3437_v13 = vld [vmem:[#allocation3 + $0x18] sm:$0xf]  ;;  %v4351_v14 = vld [vmem:[#allocation3 + $0x20] sm:$0xf0]  ;;  %v3342_v19 = vor.u32 %v4326_v12, %v3341_v10 }
  0x8f   : > { %v3333_v15 = vld [vmem:[#allocation2 + $0x18] sm:$0xf]  ;;  %v4325_v16 = vld [vmem:[#allocation2 + $0x20] sm:$0xf0]  ;;  %v3338_v17 = vor.u32 %v4324_v8, %v3335_v9  ;;  %v3438_v20 = vor.u32 %v4351_v14, %v3437_v13  ;;  %v3323_v21 = vld [vmem:[#allocation2 + $0xc] sm:$0xf0] }
  0x90   : > { %673 = vmatpush.bf16.msra.mxu1 %v3362_v57  ;;  %v4321_v18 = vld [vmem:[#allocation2 + $0x4] sm:$0xf]  ;;  %v3329_v22 = vld [vmem:[#allocation2 + $0x8] sm:$0xf]  ;;  %v4323_v23 = vld [vmem:[#allocation2 + $0x10] sm:$0xf0]  ;;  %v3334_v24 = vor.u32 %v4325_v16, %v3333_v15 }
  0x91   : > { %692 = vmatpush.bf16.msra.mxu2 %v3366_v58  ;;  %907 = vmatpush.bf16.msra.mxu3 %v3462_v59  ;;  %v3425_v25 = vld [vmem:[#allocation3] sm:$0xf]  ;;  %v4348_v26 = vld [vmem:[#allocation3 + $0x8] sm:$0xf0]  ;;  %v3607_v27 = vld [vmem:[#allocation4 + $0xa8] sm:$0xf]  ;;  %v3326_v31 = vor.u32 %v4321_v18, %v3323_v21  ;;  %v3330_v34 = vor.u32 %v4323_v23, %v3329_v22 }
  0x92   : > { %654 = vmatpush.bf16.msra.mxu0 %v3358_v63  ;;  %v4393_v28 = vld [vmem:[#allocation4 + $0xb0] sm:$0xf0]  ;;  %v3321_v29 = vld [vmem:[#allocation2] sm:$0xf]  ;;  %v4322_v30 = vld [vmem:[#allocation2 + $0x8] sm:$0xf0]  ;;  %v3426_v35 = vor.u32 %v4348_v26, %v3425_v25 }
  0x93   : > { %v4392_v32 = vld [vmem:[#allocation4 + $0xac] sm:$0xf]  ;;  %v3609_v33 = vld [vmem:[#allocation4 + $0xb4] sm:$0xf0]  ;;  %v4319_v36 = vld [vmem:[%s5291_s6] sm:$0xff]  ;;  %v3608_v37 = vor.u32 %v4393_v28, %v3607_v27  ;;  %v3322_v38 = vor.u32 %v4322_v30, %v3321_v29  ;;  %s975_s3 = ssub.s32 1, %s5146_s28 }
  0x94   : > { %674 = vmatpush.bf16.msra.mxu1 %v3350_v5  ;;  %v3517_v39 = vld [vmem:[#allocation3 + $0xb0] sm:$0xf]  ;;  %v4370_v40 = vld [vmem:[#allocation3 + $0xb8] sm:$0xf0]  ;;  %v3612_v42 = vor.u32 %v4392_v32, %v3609_v33  ;;  %v4368_v44 = vld [vmem:[#allocation3 + $0xac] sm:$0xf] }
  0x95   : > { %693 = vmatpush.bf16.msra.mxu2 %v3354_v6  ;;  %908 = vmatpush.bf16.msra.mxu3 %v3450_v7  ;;  %v3595_v41 = vld [vmem:[#allocation4 + $0x90] sm:$0xf]  ;;  %v4390_v43 = vld [vmem:[#allocation4 + $0x98] sm:$0xf0]  ;;  %v3511_v45 = vld [vmem:[#allocation3 + $0xb4] sm:$0xf0]  ;;  %v3518_v49 = vor.u32 %v4370_v40, %v3517_v39 }
  0x96   : > { %655 = vmatpush.bf16.msra.mxu0 %v3346_v11  ;;  %v5327_v46 = vld [vmem:[%s5302_s29] sm:$0xff]  ;;  %v3596_v50 = vor.u32 %v4390_v43, %v3595_v41  ;;  %v3514_v51 = vor.u32 %v4368_v44, %v3511_v45  ;;  %v3505_v52 = vld [vmem:[#allocation3 + $0x98] sm:$0xf]  ;;  %v4386_v59 = vld [vmem:[#allocation4 + $0x7c] sm:$0xf]  ;;  %s5343_s22 = sshll.u32 %s5146_s28, 2 }
  0x97   : > { %v4389_v47 = vld [vmem:[#allocation4 + $0x94] sm:$0xf]  ;;  %v3597_v48 = vld [vmem:[#allocation4 + $0x9c] sm:$0xf0]  ;;  %v4367_v53 = vld [vmem:[#allocation3 + $0xa0] sm:$0xf0] }
  0x98   : > { %675 = vmatpush.bf16.msra.mxu1 %v3338_v17  ;;  %v3583_v54 = vld [vmem:[#allocation4 + $0x78] sm:$0xf]  ;;  %v3600_v55 = vor.u32 %v4389_v47, %v3597_v48  ;;  %v4387_v56 = vld [vmem:[#allocation4 + $0x80] sm:$0xf0]  ;;  %v4365_v57 = vld [vmem:[#allocation3 + $0x94] sm:$0xf]  ;;  %v3506_v61 = vor.u32 %v4367_v53, %v3505_v52 }
  0x99   : > { %694 = vmatpush.bf16.msra.mxu2 %v3342_v19  ;;  %909 = vmatpush.bf16.msra.mxu3 %v3438_v20  ;;  %v3499_v58 = vld [vmem:[#allocation3 + $0x9c] sm:$0xf0]  ;;  %v3585_v60 = vld [vmem:[#allocation4 + $0x84] sm:$0xf0]  ;;  %v3584_v62 = vor.u32 %v4387_v56, %v3583_v54  ;;  %v4364_v1 = vld [vmem:[#allocation3 + $0x88] sm:$0xf0] }
  0x9a   : > { %656 = vmatpush.bf16.msra.mxu0 %v3334_v24  ;;  %v3502_v63 = vor.u32 %v4365_v57, %v3499_v58  ;;  %v3493_v0 = vld [vmem:[#allocation3 + $0x80] sm:$0xf]  ;;  %v3588_v3 = vor.u32 %v4386_v59, %v3585_v60  ;;  %v4384_v4 = vld [vmem:[#allocation4 + $0x68] sm:$0xf0]  ;;  %v4362_v5 = vld [vmem:[#allocation3 + $0x7c] sm:$0xf] }
  0x9b   : > { %v3571_v2 = vld [vmem:[#allocation4 + $0x60] sm:$0xf]  ;;  %v3487_v6 = vld [vmem:[#allocation3 + $0x84] sm:$0xf0]  ;;  %v4383_v7 = vld [vmem:[#allocation4 + $0x64] sm:$0xf]  ;;  %v3494_v9 = vor.u32 %v4364_v1, %v3493_v0 }
  0x9c   : > { %676 = vmatpush.bf16.msra.mxu1 %v3326_v31  ;;  %v3573_v8 = vld [vmem:[#allocation4 + $0x6c] sm:$0xf0]  ;;  %v3572_v10 = vor.u32 %v4384_v4, %v3571_v2  ;;  %v3490_v11 = vor.u32 %v4362_v5, %v3487_v6  ;;  %v3481_v12 = vld [vmem:[#allocation3 + $0x68] sm:$0xf]  ;;  %v4361_v13 = vld [vmem:[#allocation3 + $0x70] sm:$0xf0] }
  0x9d   : > { %695 = vmatpush.bf16.msra.mxu2 %v3330_v34  ;;  %910 = vmatpush.bf16.msra.mxu3 %v3426_v35  ;;  %v3559_v14 = vld [vmem:[#allocation4 + $0x48] sm:$0xf]  ;;  %v3576_v15 = vor.u32 %v4383_v7, %v3573_v8  ;;  %v4381_v16 = vld [vmem:[#allocation4 + $0x50] sm:$0xf0]  ;;  %v4359_v17 = vld [vmem:[#allocation3 + $0x64] sm:$0xf]  ;;  %v3482_v21 = vor.u32 %v4361_v13, %v3481_v12 }
  0x9e   : > { %657 = vmatpush.bf16.msra.mxu0 %v3322_v38  ;;  %v3475_v18 = vld [vmem:[#allocation3 + $0x6c] sm:$0xf0]  ;;  %v4380_v19 = vld [vmem:[#allocation4 + $0x4c] sm:$0xf]  ;;  %v3561_v20 = vld [vmem:[#allocation4 + $0x54] sm:$0xf0]  ;;  %v3560_v23 = vor.u32 %v4381_v16, %v3559_v14 }
  0x9f   : > { %677 = vmatmul.bf16.vlgmr.msra.gmra.mxu1 %v4319_v36  ;;  %v4320_v22 = vld [vmem:[%s5291_s6 + $0x8] sm:$0xff]  ;;  %v3478_v24 = vor.u32 %v4359_v17, %v3475_v18  ;;  %v3469_v25 = vld [vmem:[#allocation3 + $0x50] sm:$0xf]  ;;  %v3564_v28 = vor.u32 %v4380_v19, %v3561_v20  ;;  %v4377_v33 = vld [vmem:[#allocation4 + $0x34] sm:$0xf]  ;;  %s5347_s25 = sshll.u32 %s975_s3, 2 }
  0xa0   : > { %696 = vmatmul.bf16.vlgmr.msra.gmra.mxu2 %v4319_v36  ;;  %911 = vmatmul.bf16.vlgmr.msra.gmra.mxu3 %v5327_v46  ;;  %v4358_v26 = vld [vmem:[#allocation3 + $0x58] sm:$0xf0]  ;;  %v3547_v27 = vld [vmem:[#allocation4 + $0x30] sm:$0xf]  ;;  %v4356_v30 = vld [vmem:[#allocation3 + $0x4c] sm:$0xf] }
  0xa1   : > { %1142 = vmatpush.bf16.msrb.mxu2 %v3608_v37  ;;  %1155 = vmatpush.bf16.msrb.mxu3 %v3612_v42  ;;  %v4378_v29 = vld [vmem:[#allocation4 + $0x38] sm:$0xf0]  ;;  %v3463_v31 = vld [vmem:[#allocation3 + $0x54] sm:$0xf0]  ;;  %v3549_v34 = vld [vmem:[#allocation4 + $0x3c] sm:$0xf0]  ;;  %v3470_v35 = vor.u32 %v4358_v26, %v3469_v25 }
  0xa2   : > { %941 = vmatpush.bf16.msrb.mxu1 %v3518_v49  ;;  %658 = vmatmul.bf16.vlgmr.msra.gmra.mxu0 %v4319_v36  ;;  %v5332_v32 = vld [vmem:[%s5302_s29 + $0x8] sm:$0xff]  ;;  %v3548_v36 = vor.u32 %v4378_v29, %v3547_v27  ;;  %v3466_v37 = vor.u32 %v4356_v30, %v3463_v31  ;;  %v4355_v39 = vld [vmem:[#allocation3 + $0x40] sm:$0xf0]  ;;  %v3552_v41 = vor.u32 %v4377_v33, %v3549_v34  ;;  %v4353_v43 = vld [vmem:[#allocation3 + $0x34] sm:$0xf]  ;;  %s1499_s20 = sadd.s32 3, %s5347_s25 }
  0xa3   : > { %922 = vmatpush.bf16.msrb.mxu0 %v3514_v51  ;;  %v3457_v38 = vld [vmem:[#allocation3 + $0x38] sm:$0xf]  ;;  %v4375_v42 = vld [vmem:[#allocation4 + $0x20] sm:$0xf0]  ;;  %v3451_v44 = vld [vmem:[#allocation3 + $0x3c] sm:$0xf0] }
  0xa4   : > { %v3535_v40 = vld [vmem:[#allocation4 + $0x18] sm:$0xf]  ;;  %v4374_v45 = vld [vmem:[#allocation4 + $0x1c] sm:$0xf]  ;;  %v3537_v47 = vld [vmem:[#allocation4 + $0x24] sm:$0xf0]  ;;  %v3458_v48 = vor.u32 %v4355_v39, %v3457_v38  ;;  %v3454_v51 = vor.u32 %v4353_v43, %v3451_v44  ;;  %v1232_v44 = vstv %s5343_s22 }
  0xa5   : > { %1143 = vmatpush.bf16.msrb.mxu2 %v3596_v50  ;;  %1156 = vmatpush.bf16.msrb.mxu3 %v3600_v55  ;;  %v3445_v49 = vld [vmem:[#allocation3 + $0x20] sm:$0xf]  ;;  %v3536_v50 = vor.u32 %v4375_v42, %v3535_v40  ;;  %v4352_v52 = vld [vmem:[#allocation3 + $0x28] sm:$0xf0]  ;;  %v3540_v55 = vor.u32 %v4374_v45, %v3537_v47  ;;  %v4350_v56 = vld [vmem:[#allocation3 + $0x1c] sm:$0xf] }
  0xa6   : > { %942 = vmatpush.bf16.msrb.mxu1 %v3506_v61  ;;  %v3523_v53 = vld [vmem:[#allocation4] sm:$0xf]  ;;  %v4372_v54 = vld [vmem:[#allocation4 + $0x8] sm:$0xf0]  ;;  %v3439_v57 = vld [vmem:[#allocation3 + $0x24] sm:$0xf0] }
  0xa7   : > { %923 = vmatpush.bf16.msrb.mxu0 %v3502_v63  ;;  %v4416_v58 = vld [vmem:[#allocation5 + $0xac] sm:$0xf]  ;;  %v3707_v59 = vld [vmem:[#allocation5 + $0xb4] sm:$0xf0]  ;;  %v4371_v60 = vld [vmem:[#allocation4 + $0x4] sm:$0xf]  ;;  %v3524_v2 = vor.u32 %v4372_v54, %v3523_v53 }
  0xa8   : > { %v3525_v61 = vld [vmem:[#allocation4 + $0xc] sm:$0xf0]  ;;  %v3433_v63 = vld [vmem:[#allocation3 + $0x8] sm:$0xf]  ;;  %v4418_v1 = vld [vmem:[#allocation5 + $0xb8] sm:$0xf0]  ;;  %v3710_v7 = vor.u32 %v4416_v58, %v3707_v59 }
  0xa9   : > { %1144 = vmatpush.bf16.msrb.mxu2 %v3584_v62  ;;  %1157 = vmatpush.bf16.msrb.mxu3 %v3588_v3  ;;  %v3446_v62 = vor.u32 %v4352_v52, %v3445_v49  ;;  %v3713_v0 = vld [vmem:[#allocation5 + $0xb0] sm:$0xf]  ;;  %v3442_v3 = vor.u32 %v4350_v56, %v3439_v57  ;;  %v4349_v4 = vld [vmem:[#allocation3 + $0x10] sm:$0xf0]  ;;  %v4347_v5 = vld [vmem:[#allocation3 + $0x4] sm:$0xf]  ;;  %v3528_v8 = vor.u32 %v4371_v60, %v3525_v61 }
  0xaa   : > { %943 = vmatpush.bf16.msrb.mxu1 %v3494_v9  ;;  %v3427_v6 = vld [vmem:[#allocation3 + $0xc] sm:$0xf0]  ;;  %v4413_v9 = vld [vmem:[#allocation5 + $0x94] sm:$0xf]  ;;  %v3695_v12 = vld [vmem:[#allocation5 + $0x9c] sm:$0xf0]  ;;  %v3434_v16 = vor.u32 %v4349_v4, %v3433_v63 }
  0xab   : > { %924 = vmatpush.bf16.msrb.mxu0 %v3490_v11  ;;  %v4417_v11 = vld [vmem:[#allocation5 + $0xb0] sm:$0xf0]  ;;  %v3615_v13 = vld [vmem:[#allocation4 + $0xb0] sm:$0xf]  ;;  %v4394_v14 = vld [vmem:[#allocation4 + $0xb8] sm:$0xf0]  ;;  %v3430_v18 = vor.u32 %v4347_v5, %v3427_v6  ;;  %v1500_v5 = vstv %s1499_s20 }
  0xac   : > { %v5335_v17 = vld [vmem:[#allocation6] sm:$0xff]  ;;  %v4410_v20 = vld [vmem:[#allocation5 + $0x7c] sm:$0xf]  ;;  %v3701_v25 = vld [vmem:[#allocation5 + $0x98] sm:$0xf]  ;;  %v5042_v58 = vmov 0  }
  0xad   : > { %1145 = vmatpush.bf16.msrb.mxu2 %v3572_v10  ;;  %1158 = vmatpush.bf16.msrb.mxu3 %v3576_v15  ;;  %v3705_v10 = vld [vmem:[#allocation5 + $0xa8] sm:$0xf]  ;;  %v3714_v15 = vor.u32 %v4418_v1, %v3713_v0  ;;  %v4415_v26 = vld [vmem:[#allocation5 + $0xa0] sm:$0xf0]  ;;  %v5340_v27 = vpack.c.bf16 %v5335_v17, %v5335_v17  ;;  %v3603_v29 = vld [vmem:[#allocation4 + $0x98] sm:$0xf] }
  0xae   : > { %944 = vmatpush.bf16.msrb.mxu1 %v3482_v21  ;;  %v3706_v19 = vor.u32 %v4417_v11, %v3705_v10  ;;  %v3693_v21 = vld [vmem:[#allocation5 + $0x90] sm:$0xf]  ;;  %v4391_v30 = vld [vmem:[#allocation4 + $0xa0] sm:$0xf0]  ;;  %v3681_v34 = vld [vmem:[#allocation5 + $0x78] sm:$0xf]  ;;  %4655 = vset.pattern.permute.xlu0 %v5042_v58 }
  0xaf   : > { %925 = vmatpush.bf16.msrb.mxu0 %v3478_v24  ;;  %682 = vmatmul.bf16.gmra.mxu1 %v4320_v22  ;;  %v4414_v24 = vld [vmem:[#allocation5 + $0x98] sm:$0xf0]  ;;  %v4407_v33 = vld [vmem:[#allocation5 + $0x64] sm:$0xf]  ;;  %v3689_v39 = vld [vmem:[#allocation5 + $0x80] sm:$0xf] }
  0xb0   : > { %701 = vmatmul.bf16.gmra.mxu2 %v4320_v22  ;;  %916 = vmatmul.bf16.gmra.mxu3 %v5332_v32  ;;  %v3694_v31 = vor.u32 %v4414_v24, %v3693_v21  ;;  %v4411_v38 = vld [vmem:[#allocation5 + $0x80] sm:$0xf0]  ;;  %v4412_v40 = vld [vmem:[#allocation5 + $0x88] sm:$0xf0]  ;;  %v3591_v42 = vld [vmem:[#allocation4 + $0x80] sm:$0xf] }
  0xb1   : > { %1146 = vmatpush.bf16.msrb.mxu2 %v3560_v23  ;;  %1159 = vmatpush.bf16.msrb.mxu3 %v3564_v28  ;;  %v3616_v23 = vor.u32 %v4394_v14, %v3615_v13  ;;  %v3683_v28 = vld [vmem:[#allocation5 + $0x84] sm:$0xf0]  ;;  %v4388_v43 = vld [vmem:[#allocation4 + $0x88] sm:$0xf0]  ;;  %v3682_v45 = vor.u32 %v4411_v38, %v3681_v34  ;;  %v4409_v54 = vld [vmem:[#allocation5 + $0x70] sm:$0xf0] }
  0xb2   : > { %945 = vmatpush.bf16.msrb.mxu1 %v3470_v35  ;;  %663 = vmatmul.bf16.gmra.mxu0 %v4320_v22  ;;  %v3698_v22 = vor.u32 %v4413_v9, %v3695_v12  ;;  %v3702_v35 = vor.u32 %v4415_v26, %v3701_v25  ;;  %v4404_v47 = vld [vmem:[#allocation5 + $0x4c] sm:$0xf]  ;;  %v3592_v52 = vor.u32 %v4388_v43, %v3591_v42  ;;  %v3677_v53 = vld [vmem:[#allocation5 + $0x68] sm:$0xf]  ;;  %v4385_v57 = vld [vmem:[#allocation4 + $0x70] sm:$0xf0] }
  0xb3   : > { %926 = vmatpush.bf16.msrb.mxu0 %v3466_v37  ;;  %v3604_v37 = vor.u32 %v4391_v30, %v3603_v29  ;;  %v4408_v49 = vld [vmem:[#allocation5 + $0x68] sm:$0xf0]  ;;  %v3579_v56 = vld [vmem:[#allocation4 + $0x68] sm:$0xf]  ;;  %4656 = vset.pattern.permute.xlu1 %v5042_v58  ;;  %v4401_v61 = vld [vmem:[#allocation5 + $0x34] sm:$0xf]  ;;  %v3678_v63 = vor.u32 %v4409_v54, %v3677_v53 }
  0xb4   : > { %4657 = vset.pattern.permute.xlu2 %v5042_v58  ;;  %v3580_v1 = vor.u32 %v4385_v57, %v3579_v56  ;;  %v4406_v4 = vld [vmem:[#allocation5 + $0x58] sm:$0xf0]  ;;  %v3647_v6 = vld [vmem:[#allocation5 + $0x3c] sm:$0xf0]  ;;  %v3635_v11 = vld [vmem:[#allocation5 + $0x24] sm:$0xf0] }
  0xb5   : > { %1147 = vmatpush.bf16.msrb.mxu2 %v3548_v36  ;;  %1160 = vmatpush.bf16.msrb.mxu3 %v3552_v41  ;;  %v3686_v36 = vor.u32 %v4410_v20, %v3683_v28  ;;  %v3671_v41 = vld [vmem:[#allocation5 + $0x6c] sm:$0xf0]  ;;  %v4398_v10 = vld [vmem:[#allocation5 + $0x1c] sm:$0xf]  ;;  %v3650_v14 = vor.u32 %v4401_v61, %v3647_v6  ;;  %v3555_v20 = vld [vmem:[#allocation4 + $0x38] sm:$0xf] }
  0xb6   : > { %946 = vmatpush.bf16.msrb.mxu1 %v3458_v48  ;;  %v3669_v48 = vld [vmem:[#allocation5 + $0x60] sm:$0xf]  ;;  %v3645_v12 = vld [vmem:[#allocation5 + $0x30] sm:$0xf]  ;;  %v4379_v21 = vld [vmem:[#allocation4 + $0x40] sm:$0xf0]  ;;  %v3638_v28 = vor.u32 %v4398_v10, %v3635_v11 }
  0xb7   : > { %927 = vmatpush.bf16.msrb.mxu0 %v3454_v51  ;;  %v3674_v51 = vor.u32 %v4407_v33, %v3671_v41  ;;  %v3670_v60 = vor.u32 %v4408_v49, %v3669_v48  ;;  %s2824_s11 = sadd.s32 3, %s5343_s22  ;;  %v4395_v24 = vld [vmem:[#allocation5 + $0x4] sm:$0xf]  ;;  %v3633_v25 = vld [vmem:[#allocation5 + $0x18] sm:$0xf]  ;;  %v3556_v29 = vor.u32 %v4379_v21, %v3555_v20  ;;  %s5866_s5 = sld [smem:[#allocation50_spill]] }
  0xb8   : > { %v4399_v30 = vld [vmem:[#allocation5 + $0x20] sm:$0xf0]  ;;  %v4400_v33 = vld [vmem:[#allocation5 + $0x28] sm:$0xf0]  ;;  %v2825_v34 = vstv %s2824_s11  ;;  %v3621_v43 = vld [vmem:[#allocation5] sm:$0xf] }
  0xb9   : > { %1148 = vmatpush.bf16.msrb.mxu2 %v3536_v50  ;;  %1161 = vmatpush.bf16.msrb.mxu3 %v3540_v55  ;;  %v3690_v50 = vor.u32 %v4412_v40, %v3689_v39  ;;  %v5358_v55 = vld [vmem:[%s5796_s2] sm:$0xff]  ;;  %v3634_v38 = vor.u32 %v4399_v30, %v3633_v25  ;;  %v5372_v39 = vld [vmem:[#allocation7] sm:$0xff]  ;;  %v4397_v49 = vld [vmem:[#allocation5 + $0x10] sm:$0xf0]  ;;  %s5867_s13 = sld [smem:[#allocation51_spill]]  ;;  %s1764_s1 = sadd.s32 1, %s5343_s22 }
  0xba   : > { %947 = vmatpush.bf16.msrb.mxu1 %v3446_v62  ;;  %vm1233_vm0 = vcmp.gt.s32.totalorder %v5358_v55, %v1232_v44  ;;  %v3657_v62 = vld [vmem:[#allocation5 + $0x48] sm:$0xf]  ;;  %vm1501_vm1 = vcmp.gt.s32.totalorder %v5358_v55, %v1500_v5  ;;  %vm2826_vm2 = vcmp.gt.s32.totalorder %v5358_v55, %v2825_v34  ;;  %v4396_v44 = vld [vmem:[#allocation5 + $0x8] sm:$0xf0]  ;;  %v719_v56 = vld [vmem:[%s5803_s9] sm:$0x7] }
  0xbb   : > { %928 = vmatpush.bf16.msrb.mxu0 %v3442_v3  ;;  %v1234_v59 = vsel %vm1233_vm0, 1, %v5042_v58  ;;  %v3665_v3 = vld [vmem:[#allocation5 + $0x50] sm:$0xf]  ;;  %v3629_v48 = vld [vmem:[#allocation5 + $0x8] sm:$0xf]  ;;  %s2029_s10 = sadd.s32 2, %s5347_s25 }
  0xbc   : > { %1236 = vperm.xlu0 %4655, %v1234_v59   ;;  %v3666_v13 = vor.u32 %v4406_v4, %v3665_v3  ;;  %v3630_v53 = vor.u32 %v4397_v49, %v3629_v48  ;;  %v5389_v59 = vperm.slane %v719_v56, 0  ;;  %v4438_v30 = vld [vmem:[#allocation4 + $0x98] sm:$0xf0]  ;;  %v3781_v48 = vld [vmem:[#allocation4 + $0x84] sm:$0xf0]  ;;  %v5432_v49 = vperm.slane %v719_v56, 2 }
  0xbd   : > { %1149 = vmatpush.bf16.msrb.mxu2 %v3524_v2  ;;  %1162 = vmatpush.bf16.msrb.mxu3 %v3528_v8  ;;  %v4405_v2 = vld [vmem:[#allocation5 + $0x50] sm:$0xf0]  ;;  %v4382_v8 = vld [vmem:[#allocation4 + $0x58] sm:$0xf0]  ;;  %v466_v57 = vld [vmem:[%s5866_s5] sm:$0x7] }
  0xbe   : > { %948 = vmatpush.bf16.msrb.mxu1 %v3434_v16  ;;  %v3658_v9 = vor.u32 %v4405_v2, %v3657_v62  ;;  %v4402_v16 = vld [vmem:[#allocation5 + $0x38] sm:$0xf0]  ;;  %v5393_v61 = vperm.slane %v466_v57, 0  ;;  %v5406_v4 = vperm.slane %v466_v57, 2  ;;  %s5870_s29 = sld [smem:[#allocation52_spill]]  ;;  %s2294_s11 = sadd.s32 2, %s5343_s22 }
  0xbf   : > { %929 = vmatpush.bf16.msrb.mxu0 %v3430_v18  ;;  %v3653_v18 = vld [vmem:[#allocation5 + $0x38] sm:$0xf]  ;;  %s2559_s23 = sadd.s32 1, %s5347_s25  ;;  %s4563_s15 = sshll.u32 %s5146_s28, 4 }
  0xc0   : > { %1150 = vmatmul.bf16.vlgmr.msrb.gmra.mxu2 %v5340_v27  ;;  %1163 = vmatmul.bf16.vlgmr.msrb.gmra.mxu3 %v5340_v27  ;;  %s3119_s6 = sshll.u32 %s5308_s14, 4  ;;  %s3102_s19 = scalar_lea.sflag [#allocation13], %s5287_s18  ;;  %s3120_s6 = int_to_ptr.vmem [resolvable:$true] %s3119_s6 }
  0xc1   : > { %1422 = vmatpush.bf16.msra.mxu2 %v3710_v7  ;;  %1435 = vmatpush.bf16.msra.mxu3 %v3714_v15  ;;  %v3567_v7 = vld [vmem:[#allocation4 + $0x50] sm:$0xf] }
  0xc2   : > { %1409 = vmatpush.bf16.msra.mxu1 %v3706_v19  ;;  %930 = vmatmul.bf16.vlgmr.msrb.gmra.mxu0 %v5327_v46  ;;  %v3568_v15 = vor.u32 %v4382_v8, %v3567_v7  ;;  %v4403_v19 = vld [vmem:[#allocation5 + $0x40] sm:$0xf0] }
  0xc3   : > { %1168 = vmatpush.bf16.msra.mxu0 %v3616_v23  ;;  %949 = vmatmul.bf16.vlgmr.msrb.gmra.mxu1 %v5327_v46  ;;  %v3659_v46 = vld [vmem:[#allocation5 + $0x54] sm:$0xf0]  ;;  %v3646_v23 = vor.u32 %v4402_v16, %v3645_v12  ;;  %v3654_v26 = vor.u32 %v4403_v19, %v3653_v18 }
  0xc4   : > { %v3662_v0 = vor.u32 %v4404_v47, %v3659_v46  ;;  %v4373_v47 = vld [vmem:[#allocation4 + $0x10] sm:$0xf0]  ;;  %v3805_v18 = vld [vmem:[#allocation4 + $0xb4] sm:$0xf0] }
  0xc5   : > { %1423 = vmatpush.bf16.msra.mxu2 %v3698_v22  ;;  %1436 = vmatpush.bf16.msra.mxu3 %v3702_v35  ;;  %v1502_v22 = vsel %vm1501_vm1, 1, %v5042_v58  ;;  %v3623_v35 = vld [vmem:[#allocation5 + $0xc] sm:$0xf0] }
  0xc6   : > { %1410 = vmatpush.bf16.msra.mxu1 %v3694_v31  ;;  %v3641_v31 = vld [vmem:[#allocation5 + $0x20] sm:$0xf]  ;;  %1504 = vperm.xlu0 %4655, %v1502_v22   ;;  %v3626_v41 = vor.u32 %v4395_v24, %v3623_v35  ;;  %v3811_v22 = vld [vmem:[#allocation4 + $0xb0] sm:$0xf] }
  0xc7   : > { %1169 = vmatpush.bf16.msra.mxu0 %v3604_v37  ;;  %v4376_v37 = vld [vmem:[#allocation4 + $0x28] sm:$0xf0]  ;;  %v3642_v40 = vor.u32 %v4400_v33, %v3641_v31  ;;  %v4437_v31 = vld [vmem:[#allocation4 + $0x94] sm:$0xf]  ;;  %v3793_v35 = vld [vmem:[#allocation4 + $0x9c] sm:$0xf0] }
  0xc9   : > { %1424 = vmatpush.bf16.msra.mxu2 %v3686_v36  ;;  %1437 = vmatpush.bf16.msra.mxu3 %v3690_v50  ;;  %v3543_v36 = vld [vmem:[#allocation4 + $0x20] sm:$0xf]  ;;  %v1248_v50 = vpack.c.bf16 %v5372_v39, %v5372_v39 }
  0xca   : > { %1411 = vmatpush.bf16.msra.mxu1 %v3682_v45  ;;  %v3544_v42 = vor.u32 %v4376_v37, %v3543_v36  ;;  %v3531_v45 = vld [vmem:[#allocation4 + $0x8] sm:$0xf]  ;;  %v3796_v37 = vor.u32 %v4437_v31, %v3793_v35  ;;  %v3763_v35 = vld [vmem:[#allocation4 + $0x50] sm:$0xf] }
  0xcb   : > { %1170 = vmatpush.bf16.msra.mxu0 %v3592_v52  ;;  %v3532_v52 = vor.u32 %v4373_v47, %v3531_v45  ;;  %v4434_v45 = vld [vmem:[#allocation4 + $0x7c] sm:$0xf] }
  0xcd   : > { %1425 = vmatpush.bf16.msra.mxu2 %v3674_v51  ;;  %1438 = vmatpush.bf16.msra.mxu3 %v3678_v63  ;;  %v3622_v51 = vor.u32 %v4396_v44, %v3621_v43  ;;  %v3779_v43 = vld [vmem:[#allocation4 + $0x78] sm:$0xf]  ;;  %v4435_v44 = vld [vmem:[#allocation4 + $0x80] sm:$0xf0] }
  0xce   : > { %1412 = vmatpush.bf16.msra.mxu1 %v3670_v60  ;;  %v5391_v60 = vperm.slane %v466_v57, 1  ;;  %v3780_v47 = vor.u32 %v4435_v44, %v3779_v43  ;;  %v4436_v57 = vld [vmem:[#allocation4 + $0x88] sm:$0xf0]  ;;  %v4426_v43 = vld [vmem:[#allocation4 + $0x38] sm:$0xf0] }
  0xcf   : > { %1171 = vmatpush.bf16.msra.mxu0 %v3580_v1  ;;  %v4425_v44 = vld [vmem:[#allocation4 + $0x34] sm:$0xf] }
  0xd1   : > { %1426 = vmatpush.bf16.msra.mxu2 %v3662_v0  ;;  %1439 = vmatpush.bf16.msra.mxu3 %v3666_v13  ;;  %v3803_v13 = vld [vmem:[#allocation4 + $0xa8] sm:$0xf] }
  0xd2   : > { %1413 = vmatpush.bf16.msra.mxu1 %v3658_v9  ;;  %935 = vmatmul.bf16.gmra.mxu0 %v5332_v32 }
  0xd3   : > { %1172 = vmatpush.bf16.msra.mxu0 %v3568_v15  ;;  %954 = vmatmul.bf16.gmra.mxu1 %v5332_v32  ;;  %v2827_v32 = vsel %vm2826_vm2, 1, %v5042_v58  ;;  %v4440_v15 = vld [vmem:[#allocation4 + $0xac] sm:$0xf] }
  0xd4   : > { %2829 = vperm.xlu0 %4655, %v2827_v32   ;;  %v3808_v19 = vor.u32 %v4440_v15, %v3805_v18  ;;  %v3784_v32 = vor.u32 %v4434_v45, %v3781_v48  ;;  %v3775_v18 = vld [vmem:[#allocation4 + $0x68] sm:$0xf] }
  0xd5   : > { %1427 = vmatpush.bf16.msra.mxu2 %v3650_v14  ;;  %1440 = vmatpush.bf16.msra.mxu3 %v3654_v26  ;;  %v4441_v14 = vld [vmem:[#allocation4 + $0xb0] sm:$0xf0] }
  0xd6   : > { %1414 = vmatpush.bf16.msra.mxu1 %v3646_v23  ;;  %v3804_v16 = vor.u32 %v4441_v14, %v3803_v13  ;;  %v4442_v23 = vld [vmem:[#allocation4 + $0xb8] sm:$0xf0]  ;;  %v3769_v13 = vld [vmem:[#allocation4 + $0x6c] sm:$0xf0] }
  0xd7   : > { %1173 = vmatpush.bf16.msra.mxu0 %v3556_v29  ;;  %v3791_v29 = vld [vmem:[#allocation4 + $0x90] sm:$0xf] }
  0xd8   : > { %v3792_v34 = vor.u32 %v4438_v30, %v3791_v29 }
  0xd9   : > { %1428 = vmatpush.bf16.msra.mxu2 %v3638_v28  ;;  %1441 = vmatpush.bf16.msra.mxu3 %v3642_v40  ;;  %v3812_v28 = vor.u32 %v4442_v23, %v3811_v22  ;;  %v3799_v40 = vld [vmem:[#allocation4 + $0x98] sm:$0xf]  ;;  %v4429_v22 = vld [vmem:[#allocation4 + $0x50] sm:$0xf0]  ;;  %v4428_v23 = vld [vmem:[#allocation4 + $0x4c] sm:$0xf] }
  0xda   : > { %1415 = vmatpush.bf16.msra.mxu1 %v3634_v38 }
  0xdb   : > { %1174 = vmatpush.bf16.msra.mxu0 %v3544_v42 }
  0xdd   : > { %1429 = vmatpush.bf16.msra.mxu2 %v3626_v41  ;;  %1442 = vmatpush.bf16.msra.mxu3 %v3630_v53  ;;  %v4439_v41 = vld [vmem:[#allocation4 + $0xa0] sm:$0xf0]  ;;  %v3787_v53 = vld [vmem:[#allocation4 + $0x80] sm:$0xf] }
  0xde   : > { %1416 = vmatpush.bf16.msra.mxu1 %v3622_v51  ;;  %v3800_v42 = vor.u32 %v4439_v41, %v3799_v40 }
  0xdf   : > { %1175 = vmatpush.bf16.msra.mxu0 %v3532_v52  ;;  %v5436_v52 = vperm.slane %v719_v56, 1 }
  0xe0   : > { %1430 = vmatmul.bf16.vlgmr.msra.gmra.mxu2 %v1248_v50  ;;  %1443 = vmatmul.bf16.vlgmr.msra.gmra.mxu3 %v1248_v50 }
  0xe1   : > { %1703 = vmatpush.bf16.msrb.mxu2 %v3812_v28  ;;  %v3757_v28 = vld [vmem:[#allocation4 + $0x54] sm:$0xf0] }
  0xe2   : > { %1176 = vmatmul.bf16.vlgmr.msra.gmra.mxu0 %v5340_v27  ;;  %1690 = vmatpush.bf16.msrb.mxu1 %v3808_v19  ;;  %v4433_v19 = vld [vmem:[#allocation4 + $0x70] sm:$0xf0]  ;;  %v3760_v30 = vor.u32 %v4428_v23, %v3757_v28  ;;  %v4420_v23 = vld [vmem:[#allocation4 + $0x8] sm:$0xf0] }
  0xe3   : > { %1417 = vmatmul.bf16.vlgmr.msra.gmra.mxu1 %v1248_v50  ;;  %1677 = vmatpush.bf16.msrb.mxu0 %v3804_v16 }
  0xe5   : > { %1704 = vmatpush.bf16.msrb.mxu2 %v3800_v42  ;;  %v3743_v42 = vld [vmem:[#allocation4 + $0x30] sm:$0xf] }
  0xe6   : > { %1691 = vmatpush.bf16.msrb.mxu1 %v3796_v37  ;;  %v3744_v48 = vor.u32 %v4426_v43, %v3743_v42  ;;  %v4464_v42 = vld [vmem:[#allocation5 + $0xac] sm:$0xf]  ;;  %v3903_v43 = vld [vmem:[#allocation5 + $0xb4] sm:$0xf0] }
  0xe7   : > { %1678 = vmatpush.bf16.msrb.mxu0 %v3792_v34 }
  0xea   : > { %1692 = vmatpush.bf16.msrb.mxu1 %v3784_v32 }
  0xeb   : > { %1679 = vmatpush.bf16.msrb.mxu0 %v3780_v47 }
 0x11c   : > { %v5379_v54 = vpop.f32.mrf.mxu1 }
 0x11d   : > { %v679_v31 = vadd.f32 %v5379_v54, %v5391_v60 }
 0x11f   : > { %v5381_v46 = vpop.f32.mrf.mxu0 }
 0x120   : > { %v660_v29 = vadd.f32 %v5381_v46, %v5393_v61  ;;  %v3745_v46 = vld [vmem:[#allocation4 + $0x3c] sm:$0xf0] }
 0x123   : > { %v5395_v62 = vpop.f32.mrf.mxu2  ;;  %v912_v27 = vpop.f32.mrf.mxu3 }
 0x124   : > { %v5398_v63 = vadd.f32 %v912_v27, %v5389_v59  ;;  %v680_v0 = vpop.f32.mrf.mxu1 }
 0x125   : > { %v5401_v1 = vadd.f32 %v680_v0, %v5391_v60  ;;  %v3788_v0 = vor.u32 %v4436_v57, %v3787_v53  ;;  %v3751_v57 = vld [vmem:[#allocation4 + $0x38] sm:$0xf] }
 0x127   : > { %v661_v2 = vpop.f32.mrf.mxu0  ;;  %1705 = vmatpush.bf16.msrb.mxu2 %v3788_v0  ;;  %v4427_v0 = vld [vmem:[#allocation4 + $0x40] sm:$0xf0] }
 0x128   : > { %v5404_v3 = vadd.f32 %v661_v2, %v5393_v61  ;;  %v3767_v2 = vld [vmem:[#allocation4 + $0x60] sm:$0xf] }
 0x12b   : > { %v699_v5 = vpop.f32.mrf.mxu2  ;;  %v914_v6 = vpop.f32.mrf.mxu3 }
 0x12c   : > { %v5409_v7 = vadd.f32 %v699_v5, %v5406_v4  ;;  %v5412_v8 = vadd.f32 %v914_v6, %v5389_v59  ;;  %v683_v9 = vpop.f32.mrf.mxu1  ;;  %v4432_v5 = vld [vmem:[#allocation4 + $0x68] sm:$0xf0]  ;;  %v4431_v6 = vld [vmem:[#allocation4 + $0x64] sm:$0xf] }
 0x12d   : > { %v5415_v10 = vadd.f32 %v683_v9, %v5391_v60  ;;  %v3772_v56 = vor.u32 %v4431_v6, %v3769_v13  ;;  %v4423_v6 = vld [vmem:[#allocation4 + $0x20] sm:$0xf0]  ;;  %v3733_v13 = vld [vmem:[#allocation4 + $0x24] sm:$0xf0] }
 0x12f   : > { %v664_v11 = vpop.f32.mrf.mxu0  ;;  %1693 = vmatpush.bf16.msrb.mxu1 %v3772_v56 }
 0x130   : > { %v5418_v12 = vadd.f32 %v664_v11, %v5393_v61  ;;  %v3768_v11 = vor.u32 %v4432_v5, %v3767_v2  ;;  %v3752_v2 = vor.u32 %v4427_v0, %v3751_v57  ;;  %v3731_v5 = vld [vmem:[#allocation4 + $0x18] sm:$0xf]  ;;  %v4421_v57 = vld [vmem:[#allocation4 + $0x10] sm:$0xf0]  ;;  %v3889_v0 = vld [vmem:[#allocation5 + $0x90] sm:$0xf] }
 0x132   : > { %1680 = vmatpush.bf16.msrb.mxu0 %v3768_v11  ;;  %v3732_v11 = vor.u32 %v4423_v6, %v3731_v5  ;;  %v4461_v6 = vld [vmem:[#allocation5 + $0x94] sm:$0xf] }
 0x133   : > { %v702_v20 = vpop.f32.mrf.mxu2  ;;  %v917_v21 = vpop.f32.mrf.mxu3  ;;  %1694 = vmatpush.bf16.msrb.mxu1 %v3760_v30  ;;  %v3721_v30 = vld [vmem:[#allocation4 + $0xc] sm:$0xf0] }
 0x134   : > { %v5421_v24 = vadd.f32 %v702_v20, %v5406_v4  ;;  %v5424_v25 = vadd.f32 %v917_v21, %v5389_v59  ;;  %v685_v26 = vpop.f32.mrf.mxu1  ;;  %v3776_v20 = vor.u32 %v4433_v19, %v3775_v18  ;;  %v3755_v21 = vld [vmem:[#allocation4 + $0x48] sm:$0xf]  ;;  %v3739_v18 = vld [vmem:[#allocation4 + $0x20] sm:$0xf]  ;;  %v4424_v19 = vld [vmem:[#allocation4 + $0x28] sm:$0xf0] }
 0x135   : > { %v5427_v33 = vadd.f32 %v685_v26, %v5391_v60  ;;  %v3756_v26 = vor.u32 %v4429_v22, %v3755_v21  ;;  %v3748_v60 = vor.u32 %v4425_v44, %v3745_v46  ;;  %v3740_v21 = vor.u32 %v4424_v19, %v3739_v18  ;;  %v3719_v22 = vld [vmem:[#allocation4] sm:$0xf]  ;;  %v3909_v44 = vld [vmem:[#allocation5 + $0xb0] sm:$0xf]  ;;  %v4463_v18 = vld [vmem:[#allocation5 + $0xa0] sm:$0xf0] }
 0x136   : > { %1706 = vmatpush.bf16.msrb.mxu2 %v3776_v20  ;;  %v3906_v46 = vor.u32 %v4464_v42, %v3903_v43  ;;  %v3877_v19 = vld [vmem:[#allocation5 + $0x78] sm:$0xf]  ;;  %v5480_v43 = vld [vmem:[%s5867_s13] ss:$0 sm:$0xff] }
 0x137   : > { %v666_v36 = vpop.f32.mrf.mxu0  ;;  %1681 = vmatpush.bf16.msrb.mxu0 %v3756_v26  ;;  %1695 = vmatpush.bf16.msrb.mxu1 %v3748_v60  ;;  %v4419_v26 = vld [vmem:[#allocation4 + $0x4] sm:$0xf] }
 0x138   : > { %v5430_v38 = vadd.f32 %v666_v36, %v5393_v61  ;;  %v4430_v36 = vld [vmem:[#allocation4 + $0x58] sm:$0xf0] }
 0x139   : > { %v3764_v41 = vor.u32 %v4430_v36, %v3763_v35 }
 0x13b   : > { %v704_v50 = vpop.f32.mrf.mxu2  ;;  %v5434_v51 = vpop.f32.mrf.mxu3  ;;  %1707 = vmatpush.bf16.msrb.mxu2 %v3764_v41  ;;  %1682 = vmatpush.bf16.msrb.mxu0 %v3744_v48 }
 0x13c   : > { %v5439_v27 = vadd.f32 %v704_v50, %v5406_v4 }
 0x13f   : > { %v931_v15 = vpop.f32.mrf.mxu0  ;;  %1708 = vmatpush.bf16.msrb.mxu2 %v3752_v2  ;;  %1683 = vmatpush.bf16.msrb.mxu0 %v3732_v11  ;;  %v4462_v2 = vld [vmem:[#allocation5 + $0x98] sm:$0xf0]  ;;  %v3891_v11 = vld [vmem:[#allocation5 + $0x9c] sm:$0xf0] }
 0x140   : > { %v950_v9 = vpop.f32.mrf.mxu1  ;;  %v5445_v16 = vadd.f32 %v931_v15, %v5436_v52 }
 0x141   : > { %v5442_v14 = vadd.f32 %v950_v9, %v5432_v49  ;;  %v4422_v9 = vld [vmem:[#allocation4 + $0x1c] sm:$0xf] }
 0x142   : > { %v3736_v15 = vor.u32 %v4422_v9, %v3733_v13  ;;  %v3890_v9 = vor.u32 %v4462_v2, %v3889_v0  ;;  %v3897_v13 = vld [vmem:[#allocation5 + $0x98] sm:$0xf] }
 0x143   : > { %v1151_v34 = vpop.f32.mrf.mxu2  ;;  %v1164_v40 = vpop.f32.mrf.mxu3  ;;  %1709 = vmatpush.bf16.msrb.mxu2 %v3740_v21 }
 0x144   : > { %v1181_v37 = vadd.f32 %v1151_v34, %v660_v29  ;;  %v1201_v45 = vadd.f32 %v1164_v40, %v679_v31  ;;  %1696 = vmatpush.bf16.msrb.mxu1 %v3736_v15  ;;  %v3720_v29 = vor.u32 %v4420_v23, %v3719_v22  ;;  %v3901_v31 = vld [vmem:[#allocation5 + $0xa8] sm:$0xf]  ;;  %v4465_v34 = vld [vmem:[#allocation5 + $0xb0] sm:$0xf0]  ;;  %v3724_v40 = vor.u32 %v4419_v26, %v3721_v30  ;;  %v4458_v26 = vld [vmem:[#allocation5 + $0x7c] sm:$0xf] }
 0x145   : > { %v3902_v41 = vor.u32 %v4465_v34, %v3901_v31  ;;  %v3898_v22 = vor.u32 %v4463_v18, %v3897_v13  ;;  %v4460_v34 = vld [vmem:[#allocation5 + $0x88] sm:$0xf0]  ;;  %v4457_v13 = vld [vmem:[#allocation5 + $0x70] sm:$0xf0] }
 0x146   : > { %v3617_v61 = vmul.f32 -1.442695, %v1181_v37  ;;  %v3618_v50 = vmul.f32 -1.442695, %v1201_v45  ;;  %1684 = vmatpush.bf16.msrb.mxu0 %v3720_v29  ;;  %v3885_v29 = vld [vmem:[#allocation5 + $0x80] sm:$0xf] }
 0x147   : > { %v933_v54 = vpop.f32.mrf.mxu0  ;;  %1942 = vmatpush.bf16.msrb.mxu3 %v3902_v41 }
 0x148   : > { %v952_v47 = vpop.f32.mrf.mxu1  ;;  %v5455_v53 = vadd.f32 %v933_v54, %v5436_v52  ;;  %4660 = vpow2.f32 %v3617_v61  ;;  %v4466_v61 = vld [vmem:[#allocation5 + $0xb8] sm:$0xf0]  ;;  %1697 = vmatpush.bf16.msrb.mxu1 %v3724_v40  ;;  %v3886_v40 = vor.u32 %v4460_v34, %v3885_v29  ;;  %v3861_v34 = vld [vmem:[#allocation5 + $0x50] sm:$0xf] }
 0x149   : > { %v5452_v32 = vadd.f32 %v952_v47, %v5432_v49  ;;  %4662 = vpow2.f32 %v3618_v50  ;;  %v3910_v60 = vor.u32 %v4466_v61, %v3909_v44  ;;  %v3727_v50 = vld [vmem:[#allocation4 + $0x8] sm:$0xf]  ;;  %v3865_v44 = vld [vmem:[#allocation5 + $0x60] sm:$0xf]  ;;  %v4456_v61 = vld [vmem:[#allocation5 + $0x68] sm:$0xf0] }
 0x14a   : > { %1955 = vmatpush.bf16.msra.mxu0 %v3906_v46  ;;  %v3728_v5 = vor.u32 %v4421_v57, %v3727_v50  ;;  %v920_v50 = vadd.f32 %v5434_v51, %v5389_v59  ;;  %v3866_v2 = vor.u32 %v4456_v61, %v3865_v44 }
 0x14b   : > { %v1153_v56 = vpop.f32.mrf.mxu2  ;;  %v1166_v20 = vpop.f32.mrf.mxu3  ;;  %1943 = vmatpush.bf16.msrb.mxu3 %v3890_v9 }
 0x14c   : > { %1968 = vmatpush.bf16.msra.mxu1 %v3910_v60  ;;  %1710 = vmatpush.bf16.msrb.mxu2 %v3728_v5  ;;  %v3894_v56 = vor.u32 %v4461_v6, %v3891_v11  ;;  %v4459_v20 = vld [vmem:[#allocation5 + $0x80] sm:$0xf0]  ;;  %v3867_v5 = vld [vmem:[#allocation5 + $0x6c] sm:$0xf0]  ;;  %v3873_v6 = vld [vmem:[#allocation5 + $0x68] sm:$0xf] }
 0x14d   : > { %v3878_v23 = vor.u32 %v4459_v20, %v3877_v19  ;;  %v4455_v60 = vld [vmem:[#allocation5 + $0x64] sm:$0xf]  ;;  %v3874_v51 = vor.u32 %v4457_v13, %v3873_v6  ;;  %v3853_v19 = vld [vmem:[#allocation5 + $0x48] sm:$0xf]  ;;  %v4453_v20 = vld [vmem:[#allocation5 + $0x50] sm:$0xf0] }
 0x14e   : > { %v4661_v35 = vpop.eup %4660  ;;  %1956 = vmatpush.bf16.msra.mxu0 %v3894_v56  ;;  %v3854_v29 = vor.u32 %v4453_v20, %v3853_v19 }
 0x14f   : > { %v936_v37 = vpop.f32.mrf.mxu0  ;;  %v4663_v45 = vpop.eup %4662  ;;  %v5460_v47 = vadd.f32 1.0, %v4661_v35  ;;  %1944 = vmatpush.bf16.msrb.mxu3 %v3878_v23 }
 0x150   : > { %v955_v28 = vpop.f32.mrf.mxu1  ;;  %v5463_v48 = vadd.f32 %v936_v37, %v5436_v52  ;;  %v5465_v54 = vadd.f32 1.0, %v4663_v45  ;;  %1969 = vmatpush.bf16.msra.mxu1 %v3898_v22 }
 0x151   : > { %v5458_v36 = vadd.f32 %v955_v28, %v5432_v49  ;;  %4664 = vrcp.f32 %v5460_v47  ;;  %v3879_v28 = vld [vmem:[#allocation5 + $0x84] sm:$0xf0]  ;;  %v1195_v42 = vand.u32 2147483647, %v5460_v47  ;;  %v1197_v0 = vand.u32 2147483648, %v5460_v47 }
 0x152   : > { %4666 = vrcp.f32 %v5465_v54  ;;  %v3882_v31 = vor.u32 %v4458_v26, %v3879_v28  ;;  %v1217_v11 = vand.u32 2147483648, %v5465_v54  ;;  %vm1191_vm4 = vweird.f32 %v5460_v47 }
 0x153   : > { %1945 = vmatpush.bf16.msrb.mxu3 %v3866_v2  ;;  %vm1196_vm6 = vcmp.eq.f32.partialorder %v1195_v42, 8.507059e+37  ;;  %v4449_v42 = vld [vmem:[#allocation5 + $0x34] sm:$0xf]  ;;  %vm1211_vm8 = vweird.f32 %v5465_v54  ;;  %v1215_v13 = vand.u32 2147483647, %v5465_v54 }
 0x154   : > { %1957 = vmatpush.bf16.msra.mxu0 %v3882_v31  ;;  %1970 = vmatpush.bf16.msra.mxu1 %v3886_v40  ;;  %v3855_v31 = vld [vmem:[#allocation5 + $0x54] sm:$0xf0]  ;;  %v1198_v40 = vor.u32 1.1754944e-38, %v1197_v0  ;;  %v698_v0 = vadd.f32 %v5395_v62, %v5406_v4  ;;  %v1218_v62 = vor.u32 1.1754944e-38, %v1217_v11  ;;  %v4448_v11 = vld [vmem:[#allocation5 + $0x28] sm:$0xf0] }
 0x155   : > { %vm1216_vm10 = vcmp.eq.f32.partialorder %v1215_v13, 8.507059e+37 }
 0x157   : > { %v938_v21 = vpop.f32.mrf.mxu0  ;;  %v4665_v30 = vpop.eup %4664  ;;  %1946 = vmatpush.bf16.msrb.mxu3 %v3854_v29  ;;  %v3831_v29 = vld [vmem:[#allocation5 + $0x24] sm:$0xf0] }
 0x158   : > { %v5469_v15 = vpop.f32.mrf.mxu1  ;;  %v5471_v35 = vpop.eup %4666  ;;  %v1187_v37 = vmul.f32 %v4665_v30, %v5460_v47  ;;  %v939_v45 = vadd.f32 %v938_v21, %v5436_v52  ;;  %vm1192_vm3 = vweird.f32 %v4665_v30  ;;  %v3870_v52 = vor.u32 %v4455_v60, %v3867_v5  ;;  %v4452_v21 = vld [vmem:[#allocation5 + $0x4c] sm:$0xf]  ;;  %1971 = vmatpush.bf16.msra.mxu1 %v3874_v51  ;;  %v3841_v47 = vld [vmem:[#allocation5 + $0x30] sm:$0xf]  ;;  %v4450_v5 = vld [vmem:[#allocation5 + $0x38] sm:$0xf0] }
 0x159   : > { %v1207_v41 = vmul.f32 %v5471_v35, %v5465_v54  ;;  %vm1193_vm5 = vmor %vm1191_vm4, %vm1192_vm3  ;;  %v3858_v44 = vor.u32 %v4452_v21, %v3855_v31  ;;  %vm1212_vm7 = vweird.f32 %v5471_v35  ;;  %v3842_v4 = vor.u32 %v4450_v5, %v3841_v47  ;;  %v3829_v54 = vld [vmem:[#allocation5 + $0x18] sm:$0xf]  ;;  %v3837_v31 = vld [vmem:[#allocation5 + $0x20] sm:$0xf] }
 0x15a   : > { %v1188_v46 = vsub.f32 1.0, %v1187_v37  ;;  %v4454_v37 = vld [vmem:[#allocation5 + $0x58] sm:$0xf0]  ;;  %1958 = vmatpush.bf16.msra.mxu0 %v3870_v52  ;;  %v4451_v52 = vld [vmem:[#allocation5 + $0x40] sm:$0xf0]  ;;  %vm5503_vm9 = vmor %vm1211_vm8, %vm1212_vm7 }
 0x15b   : > { %v1208_v57 = vsub.f32 1.0, %v1207_v41  ;;  %v3862_v60 = vor.u32 %v4454_v37, %v3861_v34  ;;  %1947 = vmatpush.bf16.msrb.mxu3 %v3842_v4  ;;  %v3819_v47 = vld [vmem:[#allocation5 + $0xc] sm:$0xf0] }
 0x15c   : > { %v1189_v9 = vmul.f32 %v4665_v30, %v1188_v46 }
 0x15d   : > { %v1209_v59 = vmul.f32 %v5471_v35, %v1208_v57  ;;  %1972 = vmatpush.bf16.msra.mxu1 %v3862_v60 }
 0x15e   : > { %v1190_v28 = vadd.f32 %v4665_v30, %v1189_v9  ;;  %v3843_v9 = vld [vmem:[#allocation5 + $0x3c] sm:$0xf0]  ;;  %1959 = vmatpush.bf16.msra.mxu0 %v3858_v44 }
 0x15f   : > { %v1177_v26 = vpop.f32.mrf.mxu0  ;;  %v1210_v57 = vadd.f32 %v5471_v35, %v1209_v59  ;;  %v3846_v59 = vor.u32 %v4449_v42, %v3843_v9  ;;  %v1237_v42 = vpop.permute.xlu0 %1236  ;;  %v4445_v9 = vld [vmem:[#allocation5 + $0x10] sm:$0xf0] }
 0x160   : > { %v1418_v56 = vpop.f32.mrf.mxu1  ;;  %v1224_v41 = vadd.f32 %v5480_v43, %v1177_v26  ;;  %vm1238_vm11 = vcmp.eq.s32.totalorder %v1237_v42, 1 }
 0x161   : > { %v1448_v22 = vadd.f32 %v1418_v56, %v920_v50  ;;  %v1214_v20 = vsel %vm5503_vm9, %v5471_v35, %v1210_v57  ;;  %v4443_v57 = vld [vmem:[#allocation5 + $0x4] sm:$0xf] }
 0x162   : > { %1960 = vmatpush.bf16.msra.mxu0 %v3846_v59  ;;  %v3822_v13 = vor.u32 %v4443_v57, %v3819_v47  ;;  %v958_v47 = vadd.f32 %v5469_v15, %v5432_v49 }
 0x163   : > { %v1431_v18 = vpop.f32.mrf.mxu2  ;;  %v3715_v46 = vmul.f32 -1.442695, %v1448_v22  ;;  %v5495_v2 = vpop.f32.mrf.mxu3  ;;  %v4447_v22 = vld [vmem:[#allocation5 + $0x20] sm:$0xf0] }
 0x164   : > { %v1468_v23 = vadd.f32 %v1431_v18, %v939_v45  ;;  %v1194_v45 = vsel %vm1193_vm5, %v4665_v30, %v1190_v28  ;;  %v3849_v30 = vld [vmem:[#allocation5 + $0x38] sm:$0xf]  ;;  %v3830_v28 = vor.u32 %v4447_v22, %v3829_v54 }
 0x165   : > { %v1199_v50 = vsel %vm1196_vm6, %v1198_v40, %v1194_v45  ;;  %4668 = vpow2.f32 %v3715_v46  ;;  %v3850_v21 = vor.u32 %v4451_v52, %v3849_v30  ;;  %v1219_v40 = vsel %vm1216_vm10, %v1218_v62, %v1214_v20  ;;  %v4444_v45 = vld [vmem:[#allocation5 + $0x8] sm:$0xf0] }
 0x166   : > { %v3716_v61 = vmul.f32 -1.442695, %v1468_v23  ;;  %v1225_v6 = vmul.f32 %v1224_v41, %v1199_v50  ;;  %v4446_v23 = vld [vmem:[#allocation5 + $0x1c] sm:$0xf]  ;;  %v3838_v41 = vor.u32 %v4448_v11, %v3837_v31  ;;  %1948 = vmatpush.bf16.msrb.mxu3 %v3830_v28  ;;  %v1228_v5 = vsub.f32 1.0, %v1219_v40 }
 0x167   : > { %v1179_v26 = vpop.f32.mrf.mxu0  ;;  %v3834_v34 = vor.u32 %v4446_v23, %v3831_v29  ;;  %1973 = vmatpush.bf16.msra.mxu1 %v3850_v21  ;;  %v1230_v52 = vmul.f32 %v1219_v40, %v5335_v17  ;;  %v1765_v62 = vstv %s1764_s1  ;;  %v2030_v20 = vstv %s2029_s10  ;;  %s5875_s10 = sld [smem:[#allocation53_spill]] }
 0x168   : > { %4670 = vpow2.f32 %v3716_v61  ;;  %v1226_v56 = vadd.f32 %v1225_v6, %v698_v0  ;;  %v1420_v51 = vpop.f32.mrf.mxu1  ;;  %v3817_v61 = vld [vmem:[#allocation5] sm:$0xf]  ;;  %v3825_v0 = vld [vmem:[#allocation5 + $0x8] sm:$0xf]  ;;  %vm1766_vm12 = vcmp.gt.s32.totalorder %v5358_v55, %v1765_v62  ;;  %vm2031_vm13 = vcmp.gt.s32.totalorder %v5358_v55, %v2030_v20  ;;  %v4488_v20 = vld [vmem:[#allocation4 + $0xac] sm:$0xf] }
 0x169   : > { %v3818_v50 = vor.u32 %v4444_v45, %v3817_v61  ;;  %1961 = vmatpush.bf16.msra.mxu0 %v3834_v34  ;;  %v2032_v40 = vsel %vm2031_vm13, 1, %v5042_v58  ;;  %v3089_v61 = vstv %s5347_s25 }
 0x16a   : > { %4672 = vtanh.f32 %v1226_v56  ;;  %v3826_v56 = vor.u32 %v4445_v9, %v3825_v0  ;;  %vm3090_vm3 = vcmp.gt.s32.totalorder %v5358_v55, %v3089_v61  ;;  %v4483_v61 = vld [vmem:[#allocation4 + $0x80] sm:$0xf0] }
 0x16b   : > { %v1433_v19 = vpop.f32.mrf.mxu2  ;;  %v4669_v37 = vpop.eup %4668  ;;  %1974 = vmatpush.bf16.msra.mxu1 %v3838_v41  ;;  %1949 = vmatpush.bf16.msrb.mxu3 %v3818_v50 }
 0x16c   : > { %v5510_v35 = vadd.f32 1.0, %v4669_v37  ;;  %v1446_v46 = vpop.f32.mrf.mxu3  ;;  %v1767_v19 = vsel %vm1766_vm12, 1, %v5042_v58 }
 0x16d   : > { %1962 = vmatpush.bf16.msra.mxu0 %v3822_v13  ;;  %1769 = vperm.xlu1 %4656, %v1767_v19   ;;  %v4489_v19 = vld [vmem:[#allocation4 + $0xb0] sm:$0xf0]  ;;  %s3118_s20 = scalar_lea.hbm %s5875_s10, %s4563_s15  ;;  %s4919_s5 = scalar_lea.hbm %s5875_s10, 32 }
 0x16e   : > { %v4671_v44 = vpop.eup %4670  ;;  %4674 = vrcp.f32 %v5510_v35  ;;  %v1464_v31 = vand.u32 2147483648, %v5510_v35  ;;  %v1462_v34 = vand.u32 2147483647, %v5510_v35  ;;  %vm1458_vm15 = vweird.f32 %v5510_v35 }
 0x16f   : > { %v5512_v60 = vadd.f32 1.0, %v4671_v44  ;;  %1975 = vmatpush.bf16.msra.mxu1 %v3826_v56  ;;  %v1505_v56 = vpop.permute.xlu0 %1504 }
 0x170   : > { %v4673_v6 = vpop.eup %4672  ;;  %v1465_v46 = vor.u32 1.1754944e-38, %v1464_v31  ;;  %vm1463_vm1 = vcmp.eq.f32.partialorder %v1462_v34, 8.507059e+37  ;;  %vm1506_vm7 = vcmp.eq.s32.totalorder %v1505_v56, 1  ;;  %v4485_v31 = vld [vmem:[#allocation4 + $0x94] sm:$0xf] }
 0x171   : > { %4676 = vrcp.f32 %v5512_v60  ;;  %v1229_v30 = vmul.f32 %v4673_v6, %v1228_v5  ;;  %v1484_v42 = vand.u32 2147483648, %v5512_v60  ;;  %vm1478_vm4 = vweird.f32 %v5512_v60  ;;  %v3989_v34 = vld [vmem:[#allocation4 + $0x9c] sm:$0xf0] }
 0x172   : > { %v3091_v6 = vsel %vm3090_vm3, 1, %v5042_v58 }
 0x173   : > { %v1231_v18 = vadd.f32 %v1230_v52, %v1229_v30  ;;  %v1485_v9 = vor.u32 1.1754944e-38, %v1484_v42 }
 0x174   : > { %v4675_v4 = vpop.eup %4674 }
 0x175   : > { %v5521_v59 = vsel %vm1238_vm11, %v1231_v18, %v5335_v17  ;;  %v1241_v51 = vsel %vm1238_vm11, %v1231_v18, 0.0  ;;  %v1454_v22 = vmul.f32 %v4675_v4, %v5510_v35  ;;  %v5532_v17 = vld [vmem:[%s5870_s29] ss:$0 sm:$0xff]  ;;  %vm1459_vm14 = vweird.f32 %v4675_v4  ;;  %2034 = vperm.xlu1 %4656, %v2032_v40   ;;  %v4487_v40 = vld [vmem:[#allocation4 + $0xa0] sm:$0xf0] }
 0x176   : > { %v1242_v54 = vpack.c.bf16 %v1241_v51, %v1241_v51  ;;  %v1516_v23 = vpack.c.bf16 %v5521_v59, %v5521_v59  ;;  %v1491_v44 = vadd.f32 %v5532_v17, %v5495_v2  ;;  %vm1460_vm0 = vmor %vm1458_vm15, %vm1459_vm14  ;;  %v1482_v2 = vand.u32 2147483647, %v5512_v60  ;;  %v3999_v51 = vld [vmem:[#allocation4 + $0xa8] sm:$0xf] }
 0x177   : > { %v4677_v21 = vpop.eup %4676  ;;  %v1455_v28 = vsub.f32 1.0, %v1454_v22  ;;  %v4007_v22 = vld [vmem:[#allocation4 + $0xb0] sm:$0xf] }
 0x178   : > { %v1474_v26 = vmul.f32 %v4677_v21, %v5512_v60  ;;  %1243 = vst [vmem:[%s5308_s14] sm:$0xf] %v1242_v54  ;;  %1685 = vmatmul.bf16.vlgmr.msrb.gmra.mxu0 %v1516_v23  ;;  %1698 = vmatmul.bf16.vlgmr.msrb.gmra.mxu1 %v1516_v23  ;;  %vm1479_vm2 = vweird.f32 %v4677_v21  ;;  %vm1483_vm6 = vcmp.eq.f32.partialorder %v1482_v2, 8.507059e+37  ;;  %v4001_v54 = vld [vmem:[#allocation4 + $0xb4] sm:$0xf0] }
 0x179   : > { %1711 = vmatmul.bf16.vlgmr.msrb.gmra.mxu2 %v1516_v23  ;;  %v1456_v11 = vmul.f32 %v4675_v4, %v1455_v28  ;;  %vm1480_vm5 = vmor %vm1478_vm4, %vm1479_vm2  ;;  %v4490_v23 = vld [vmem:[#allocation4 + $0xb8] sm:$0xf0] }
 0x17a   : > { %v1475_v29 = vsub.f32 1.0, %v1474_v26  ;;  %v4004_v26 = vor.u32 %v4488_v20, %v4001_v54  ;;  %v4008_v28 = vor.u32 %v4490_v23, %v4007_v22  ;;  %v3959_v54 = vld [vmem:[#allocation4 + $0x50] sm:$0xf]  ;;  %v4478_v22 = vld [vmem:[#allocation4 + $0x58] sm:$0xf0] }
 0x17b   : > { %v1457_v41 = vadd.f32 %v4675_v4, %v1456_v11 }
 0x17c   : > { %v1476_v37 = vmul.f32 %v4677_v21, %v1475_v29  ;;  %2220 = vmatpush.bf16.msra.mxu3 %v4004_v26  ;;  %2233 = vmatpush.bf16.msrb.mxu0 %v4008_v28  ;;  %v4486_v29 = vld [vmem:[#allocation4 + $0x98] sm:$0xf0]  ;;  %v3960_v26 = vor.u32 %v4478_v22, %v3959_v54  ;;  %v4512_v22 = vld [vmem:[#allocation5 + $0xac] sm:$0xf] }
 0x17d   : > { %v1461_v45 = vsel %vm1460_vm0, %v4675_v4, %v1457_v41  ;;  %3093 = vperm.xlu1 %4656, %v3091_v6   ;;  %v3992_v41 = vor.u32 %v4485_v31, %v3989_v34  ;;  %v4479_v6 = vld [vmem:[#allocation4 + $0x64] sm:$0xf]  ;;  %v4474_v31 = vld [vmem:[#allocation4 + $0x38] sm:$0xf0] }
 0x17e   : > { %v1466_v50 = vsel %vm1463_vm1, %v1465_v46, %v1461_v45  ;;  %v1477_v57 = vadd.f32 %v4677_v21, %v1476_v37  ;;  %v3995_v37 = vld [vmem:[#allocation4 + $0x98] sm:$0xf]  ;;  %v4482_v45 = vld [vmem:[#allocation4 + $0x7c] sm:$0xf] }
 0x17f   : > { %v1492_v5 = vmul.f32 %v1491_v44, %v1466_v50  ;;  %v3996_v44 = vor.u32 %v4487_v40, %v3995_v37  ;;  %v3975_v46 = vld [vmem:[#allocation4 + $0x78] sm:$0xf]  ;;  %v3941_v37 = vld [vmem:[#allocation4 + $0x3c] sm:$0xf0]  ;;  %v4475_v40 = vld [vmem:[#allocation4 + $0x40] sm:$0xf0] }
 0x180   : > { %v1481_v0 = vsel %vm1480_vm5, %v4677_v21, %v1477_v57  ;;  %v4000_v21 = vor.u32 %v4489_v19, %v3999_v51  ;;  %2221 = vmatpush.bf16.msra.mxu3 %v3992_v41  ;;  %v3976_v50 = vor.u32 %v4483_v61, %v3975_v46  ;;  %v3977_v57 = vld [vmem:[#allocation4 + $0x84] sm:$0xf0] }
 0x181   : > { %v1493_v35 = vadd.f32 %v1492_v5, %v958_v47  ;;  %v1486_v30 = vsel %vm1483_vm6, %v1485_v9, %v1481_v0  ;;  %2234 = vmatpush.bf16.msrb.mxu0 %v3996_v44  ;;  %v3983_v47 = vld [vmem:[#allocation4 + $0x80] sm:$0xf]  ;;  %v4484_v5 = vld [vmem:[#allocation4 + $0x88] sm:$0xf0]  ;;  %v3980_v42 = vor.u32 %v4482_v45, %v3977_v57  ;;  %v3927_v45 = vld [vmem:[#allocation4 + $0x18] sm:$0xf] }
 0x182   : > { %v1495_v49 = vsub.f32 1.0, %v1486_v30  ;;  %v1497_v55 = vmul.f32 %v1486_v30, %v5372_v39  ;;  %2207 = vmatpush.bf16.msra.mxu2 %v4000_v21  ;;  %v3984_v2 = vor.u32 %v4484_v5, %v3983_v47  ;;  %v4480_v0 = vld [vmem:[#allocation4 + $0x68] sm:$0xf0]  ;;  %v3965_v30 = vld [vmem:[#allocation4 + $0x6c] sm:$0xf0] }
 0x183   : > { %4678 = vtanh.f32 %v1493_v35  ;;  %v3963_v35 = vld [vmem:[#allocation4 + $0x60] sm:$0xf]  ;;  %v3953_v21 = vld [vmem:[#allocation4 + $0x54] sm:$0xf0]  ;;  %v4470_v57 = vld [vmem:[#allocation4 + $0x1c] sm:$0xf] }
 0x184   : > { %2222 = vmatpush.bf16.msra.mxu3 %v3980_v42  ;;  %v3964_v9 = vor.u32 %v4480_v0, %v3963_v35  ;;  %v3929_v5 = vld [vmem:[#allocation4 + $0x24] sm:$0xf0]  ;;  %v3935_v42 = vld [vmem:[#allocation4 + $0x20] sm:$0xf] }
 0x185   : > { %2235 = vmatpush.bf16.msrb.mxu0 %v3984_v2  ;;  %v4472_v2 = vld [vmem:[#allocation4 + $0x28] sm:$0xf0]  ;;  %v3932_v35 = vor.u32 %v4470_v57, %v3929_v5  ;;  %v4511_v57 = vld [vmem:[#allocation5 + $0xa0] sm:$0xf0] }
 0x186   : > { %v3936_v0 = vor.u32 %v4472_v2, %v3935_v42 }
 0x189   : > { %v4679_v15 = vpop.eup %4678 }
 0x18a   : > { %v1496_v52 = vmul.f32 %v4679_v15, %v1495_v49  ;;  %v3971_v49 = vld [vmem:[#allocation4 + $0x68] sm:$0xf]  ;;  %v4481_v15 = vld [vmem:[#allocation4 + $0x70] sm:$0xf0] }
 0x18c   : > { %v1498_v13 = vadd.f32 %v1497_v55, %v1496_v52  ;;  %v3968_v52 = vor.u32 %v4479_v6, %v3965_v30  ;;  %v3972_v55 = vor.u32 %v4481_v15, %v3971_v49  ;;  %v3915_v49 = vld [vmem:[#allocation4] sm:$0xf]  ;;  %v4468_v15 = vld [vmem:[#allocation4 + $0x8] sm:$0xf0] }
 0x18e   : > { %v5551_v60 = vsel %vm1506_vm7, %v1498_v13, %v5372_v39  ;;  %v1509_v18 = vsel %vm1506_vm7, %v1498_v13, 0.0  ;;  %v3987_v39 = vld [vmem:[#allocation4 + $0x90] sm:$0xf]  ;;  %2223 = vmatpush.bf16.msra.mxu3 %v3968_v52  ;;  %2236 = vmatpush.bf16.msrb.mxu0 %v3972_v55  ;;  %v3916_v55 = vor.u32 %v4468_v15, %v3915_v49 }
 0x18f   : > { %v1510_v62 = vpack.c.bf16 %v1509_v18, %v1509_v18  ;;  %v1781_v4 = vpack.c.bf16 %v5551_v60, %v5551_v60  ;;  %v3988_v11 = vor.u32 %v4486_v29, %v3987_v39  ;;  %v3951_v18 = vld [vmem:[#allocation4 + $0x48] sm:$0xf]  ;;  %v3939_v29 = vld [vmem:[#allocation4 + $0x30] sm:$0xf] }
 0x190   : > { %v3940_v34 = vor.u32 %v4474_v31, %v3939_v29 }
 0x191   : > { %1511 = vst [vmem:[%s5310_s17 + $0xc] sm:$0xf] %v1510_v62  ;;  %1950 = vmatmul.bf16.vlgmr.msrb.gmra.mxu3 %v1781_v4  ;;  %1963 = vmatmul.bf16.vlgmr.msra.gmra.mxu0 %v1781_v4  ;;  %v4477_v62 = vld [vmem:[#allocation4 + $0x50] sm:$0xf0] }
 0x192   : > { %1976 = vmatmul.bf16.vlgmr.msra.gmra.mxu1 %v1781_v4  ;;  %2208 = vmatpush.bf16.msra.mxu2 %v3988_v11  ;;  %v4476_v4 = vld [vmem:[#allocation4 + $0x4c] sm:$0xf]  ;;  %v3952_v20 = vor.u32 %v4477_v62, %v3951_v18  ;;  %v4473_v11 = vld [vmem:[#allocation4 + $0x34] sm:$0xf]  ;;  %v3923_v18 = vld [vmem:[#allocation4 + $0x8] sm:$0xf] }
 0x193   : > { %v3956_v23 = vor.u32 %v4476_v4, %v3953_v21  ;;  %2237 = vmatpush.bf16.msrb.mxu0 %v3960_v26  ;;  %v4469_v4 = vld [vmem:[#allocation4 + $0x10] sm:$0xf0]  ;;  %v4105_v26 = vld [vmem:[#allocation5 + $0xb0] sm:$0xf] }
 0x194   : > { %v4513_v21 = vld [vmem:[#allocation5 + $0xb0] sm:$0xf0] }
 0x195   : > { %2224 = vmatpush.bf16.msra.mxu3 %v3956_v23  ;;  %v4099_v23 = vld [vmem:[#allocation5 + $0xb4] sm:$0xf0] }
 0x196   : > { %2209 = vmatpush.bf16.msra.mxu2 %v3976_v50  ;;  %v4471_v50 = vld [vmem:[#allocation4 + $0x20] sm:$0xf0] }
 0x197   : > { %v3928_v47 = vor.u32 %v4471_v50, %v3927_v45 }
 0x19a   : > { %2210 = vmatpush.bf16.msra.mxu2 %v3964_v9 }
 0x19e   : > { %2211 = vmatpush.bf16.msra.mxu2 %v3952_v20  ;;  %v4097_v20 = vld [vmem:[#allocation5 + $0xa8] sm:$0xf] }
 0x19f   : > { %v4098_v54 = vor.u32 %v4513_v21, %v4097_v20 }
 0x1a1   : > { %2472 = vmatpush.bf16.msrb.mxu1 %v4098_v54 }
 0x1a2   : > { %2212 = vmatpush.bf16.msra.mxu2 %v3940_v34 }
 0x1a6   : > { %2213 = vmatpush.bf16.msra.mxu2 %v3928_v47 }
 0x1aa   : > { %2214 = vmatpush.bf16.msra.mxu2 %v3916_v55 }
 0x1f5   : > { %v1686_v13 = vpop.f32.mrf.mxu0  ;;  %v1699_v56 = vpop.f32.mrf.mxu1 }
 0x1f6   : > { %v1716_v51 = vadd.f32 %v1686_v13, %v5404_v3  ;;  %v1736_v19 = vadd.f32 %v1699_v56, %v5401_v1  ;;  %v3947_v3 = vld [vmem:[#allocation4 + $0x38] sm:$0xf]  ;;  %v3944_v1 = vor.u32 %v4473_v11, %v3941_v37  ;;  %v4467_v13 = vld [vmem:[#allocation4 + $0x4] sm:$0xf]  ;;  %v3917_v56 = vld [vmem:[#allocation4 + $0xc] sm:$0xf0] }
 0x1f7   : > { %v3948_v41 = vor.u32 %v4475_v40, %v3947_v3  ;;  %v4085_v37 = vld [vmem:[#allocation5 + $0x90] sm:$0xf]  ;;  %v4510_v3 = vld [vmem:[#allocation5 + $0x98] sm:$0xf0]  ;;  %v4509_v40 = vld [vmem:[#allocation5 + $0x94] sm:$0xf] }
 0x1f8   : > { %v3813_v28 = vmul.f32 -1.442695, %v1716_v51  ;;  %v3814_v39 = vmul.f32 -1.442695, %v1736_v19  ;;  %2225 = vmatpush.bf16.msra.mxu3 %v3944_v1  ;;  %v3920_v51 = vor.u32 %v4467_v13, %v3917_v56  ;;  %v3924_v19 = vor.u32 %v4469_v4, %v3923_v18  ;;  %v4075_v13 = vld [vmem:[#allocation5 + $0x84] sm:$0xf0] }
 0x1f9   : > { %2238 = vmatpush.bf16.msrb.mxu0 %v3948_v41  ;;  %v4086_v41 = vor.u32 %v4510_v3, %v4085_v37  ;;  %v4081_v56 = vld [vmem:[#allocation5 + $0x80] sm:$0xf]  ;;  %v4508_v18 = vld [vmem:[#allocation5 + $0x88] sm:$0xf0]  ;;  %v4063_v37 = vld [vmem:[#allocation5 + $0x6c] sm:$0xf0] }
 0x1fa   : > { %4680 = vpow2.f32 %v3813_v28  ;;  %v4102_v28 = vor.u32 %v4512_v22, %v4099_v23  ;;  %v4082_v20 = vor.u32 %v4508_v18, %v4081_v56  ;;  %v4069_v3 = vld [vmem:[#allocation5 + $0x68] sm:$0xf]  ;;  %v4497_v56 = vld [vmem:[#allocation5 + $0x34] sm:$0xf] }
 0x1fb   : > { %4682 = vpow2.f32 %v3814_v39  ;;  %v4514_v39 = vld [vmem:[#allocation5 + $0xb8] sm:$0xf0]  ;;  %2473 = vmatpush.bf16.msrb.mxu1 %v4086_v41 }
 0x1fc   : > { %v5558_v44 = vpop.f32.mrf.mxu2  ;;  %2226 = vmatpush.bf16.msra.mxu3 %v3932_v35  ;;  %v4106_v31 = vor.u32 %v4514_v39, %v4105_v26  ;;  %2485 = vmatpush.bf16.msrb.mxu2 %v4102_v28  ;;  %v4061_v26 = vld [vmem:[#allocation5 + $0x60] sm:$0xf]  ;;  %v4504_v28 = vld [vmem:[#allocation5 + $0x68] sm:$0xf0] }
 0x1fd   : > { %v1688_v46 = vpop.f32.mrf.mxu0  ;;  %v1701_v61 = vpop.f32.mrf.mxu1  ;;  %2239 = vmatpush.bf16.msrb.mxu0 %v3936_v0  ;;  %v4073_v0 = vld [vmem:[#allocation5 + $0x78] sm:$0xf]  ;;  %v1756_v22 = vadd.f32 %v5480_v43, %v5558_v44 }
 0x1fe   : > { %v4087_v46 = vld [vmem:[#allocation5 + $0x9c] sm:$0xf0]  ;;  %v4093_v61 = vld [vmem:[#allocation5 + $0x98] sm:$0xf] }
 0x1ff   : > { %v4090_v50 = vor.u32 %v4509_v40, %v4087_v46  ;;  %v4094_v2 = vor.u32 %v4511_v57, %v4093_v61  ;;  %v4501_v57 = vld [vmem:[#allocation5 + $0x50] sm:$0xf0] }
 0x200   : > { %v4681_v6 = vpop.eup %4680  ;;  %2227 = vmatpush.bf16.msra.mxu3 %v3920_v51 }
 0x201   : > { %v4683_v9 = vpop.eup %4682  ;;  %v5560_v30 = vadd.f32 1.0, %v4681_v6  ;;  %2240 = vmatpush.bf16.msrb.mxu0 %v3924_v19  ;;  %2486 = vmatpush.bf16.msrb.mxu2 %v4090_v50  ;;  %v4507_v6 = vld [vmem:[#allocation5 + $0x80] sm:$0xf0]  ;;  %v4049_v50 = vld [vmem:[#allocation5 + $0x48] sm:$0xf] }
 0x202   : > { %v5562_v52 = vadd.f32 1.0, %v4683_v9  ;;  %v4506_v9 = vld [vmem:[#allocation5 + $0x7c] sm:$0xf]  ;;  %v4074_v55 = vor.u32 %v4507_v6, %v4073_v0  ;;  %v4057_v6 = vld [vmem:[#allocation5 + $0x50] sm:$0xf] }
 0x203   : > { %4684 = vrcp.f32 %v5560_v30  ;;  %v1730_v5 = vand.u32 2147483647, %v5560_v30  ;;  %v1732_v42 = vand.u32 2147483648, %v5560_v30  ;;  %vm1726_vm9 = vweird.f32 %v5560_v30 }
 0x204   : > { %4686 = vrcp.f32 %v5562_v52  ;;  %v1714_v62 = vpop.f32.mrf.mxu2  ;;  %2498 = vmatpush.bf16.msrb.mxu3 %v4106_v31  ;;  %v4078_v19 = vor.u32 %v4506_v9, %v4075_v13  ;;  %2474 = vmatpush.bf16.msrb.mxu1 %v4074_v55  ;;  %v4062_v31 = vor.u32 %v4504_v28, %v4061_v26  ;;  %vm1746_vm13 = vweird.f32 %v5562_v52  ;;  %v4502_v9 = vld [vmem:[#allocation5 + $0x58] sm:$0xf0]  ;;  %v4037_v13 = vld [vmem:[#allocation5 + $0x30] sm:$0xf]  ;;  %v4025_v28 = vld [vmem:[#allocation5 + $0x18] sm:$0xf] }
 0x205   : > { %vm1731_vm11 = vcmp.eq.f32.partialorder %v1730_v5, 8.507059e+37  ;;  %v1733_v21 = vor.u32 1.1754944e-38, %v1732_v42  ;;  %v1750_v43 = vand.u32 2147483647, %v5562_v52  ;;  %v4050_v42 = vor.u32 %v4501_v57, %v4049_v50  ;;  %v4491_v50 = vld [vmem:[#allocation5 + $0x4] sm:$0xf] }
 0x206   : > { %2487 = vmatpush.bf16.msrb.mxu2 %v4078_v19  ;;  %v4045_v19 = vld [vmem:[#allocation5 + $0x38] sm:$0xf]  ;;  %v4015_v57 = vld [vmem:[#allocation5 + $0xc] sm:$0xf0] }
 0x207   : > { %vm1751_vm15 = vcmp.eq.f32.partialorder %v1750_v43, 8.507059e+37 }
 0x208   : > { %2499 = vmatpush.bf16.msrb.mxu3 %v4094_v2  ;;  %2475 = vmatpush.bf16.msrb.mxu1 %v4062_v31  ;;  %v4051_v2 = vld [vmem:[#allocation5 + $0x54] sm:$0xf0] }
 0x209   : > { %v4685_v29 = vpop.eup %4684 }
 0x20a   : > { %v5566_v11 = vpop.eup %4686  ;;  %v1722_v34 = vmul.f32 %v4685_v29, %v5560_v30  ;;  %vm1727_vm8 = vweird.f32 %v4685_v29  ;;  %v1752_v30 = vand.u32 2147483648, %v5562_v52 }
 0x20b   : > { %v1742_v1 = vmul.f32 %v5566_v11, %v5562_v52  ;;  %vm1728_vm10 = vmor %vm1726_vm9, %vm1727_vm8  ;;  %vm1747_vm12 = vweird.f32 %v5566_v11 }
 0x20c   : > { %v1723_v45 = vsub.f32 1.0, %v1722_v34  ;;  %2500 = vmatpush.bf16.msrb.mxu3 %v4082_v20  ;;  %v4503_v34 = vld [vmem:[#allocation5 + $0x64] sm:$0xf]  ;;  %vm5590_vm14 = vmor %vm1746_vm13, %vm1747_vm12  ;;  %v1753_v5 = vor.u32 1.1754944e-38, %v1752_v30  ;;  %2476 = vmatpush.bf16.msrb.mxu1 %v4050_v42  ;;  %v4021_v42 = vld [vmem:[#allocation5 + $0x8] sm:$0xf] }
 0x20d   : > { %v1743_v47 = vsub.f32 1.0, %v1742_v1  ;;  %v4505_v1 = vld [vmem:[#allocation5 + $0x70] sm:$0xf0] }
 0x20e   : > { %v1724_v35 = vmul.f32 %v4685_v29, %v1723_v45  ;;  %v1964_v49 = vpop.f32.mrf.mxu0  ;;  %v4070_v44 = vor.u32 %v4505_v1, %v4069_v3  ;;  %v4027_v3 = vld [vmem:[#allocation5 + $0x24] sm:$0xf0]  ;;  %v4492_v45 = vld [vmem:[#allocation5 + $0x8] sm:$0xf0] }
 0x20f   : > { %v1744_v15 = vmul.f32 %v5566_v11, %v1743_v47  ;;  %v2001_v4 = vadd.f32 %v1964_v49, %v5463_v48  ;;  %v5576_v51 = vpop.f32.mrf.mxu1  ;;  %v4058_v49 = vor.u32 %v4502_v9, %v4057_v6 }
 0x210   : > { %v1725_v62 = vadd.f32 %v4685_v29, %v1724_v35  ;;  %2501 = vmatpush.bf16.msrb.mxu3 %v4070_v44 }
 0x211   : > { %v3912_v23 = vmul.f32 -1.442695, %v2001_v4  ;;  %v1745_v39 = vadd.f32 %v5566_v11, %v1744_v15  ;;  %v4039_v4 = vld [vmem:[#allocation5 + $0x3c] sm:$0xf0] }
 0x212   : > { %v1729_v54 = vsel %vm1728_vm10, %v4685_v29, %v1725_v62  ;;  %v4066_v29 = vor.u32 %v4503_v34, %v4063_v37  ;;  %v4042_v20 = vor.u32 %v4497_v56, %v4039_v4 }
 0x213   : > { %v1734_v48 = vsel %vm1731_vm11, %v1733_v21, %v1729_v54  ;;  %4688 = vpow2.f32 %v3912_v23  ;;  %v1749_v52 = vsel %vm5590_vm14, %v5566_v11, %v1745_v39  ;;  %v4498_v11 = vld [vmem:[#allocation5 + $0x38] sm:$0xf0]  ;;  %v4499_v21 = vld [vmem:[#allocation5 + $0x40] sm:$0xf0]  ;;  %v1770_v23 = vpop.permute.xlu1 %1769 }
 0x214   : > { %v1757_v40 = vmul.f32 %v1756_v22, %v1734_v48  ;;  %v1951_v41 = vpop.f32.mrf.mxu3  ;;  %2488 = vmatpush.bf16.msrb.mxu2 %v4066_v29  ;;  %v1754_v55 = vsel %vm1751_vm15, %v1753_v5, %v1749_v52  ;;  %2502 = vmatpush.bf16.msrb.mxu3 %v4058_v49  ;;  %v4038_v62 = vor.u32 %v4498_v11, %v4037_v13  ;;  %v4495_v48 = vld [vmem:[#allocation5 + $0x20] sm:$0xf0]  ;;  %v4494_v39 = vld [vmem:[#allocation5 + $0x1c] sm:$0xf]  ;;  %vm1771_vm0 = vcmp.eq.s32.totalorder %v1770_v23, 1 }
 0x215   : > { %v1981_v61 = vadd.f32 %v1951_v41, %v5424_v25  ;;  %v1760_v54 = vsub.f32 1.0, %v1754_v55  ;;  %v4046_v26 = vor.u32 %v4499_v21, %v4045_v19  ;;  %v1762_v34 = vmul.f32 %v1754_v55, %v5521_v59  ;;  %v4496_v41 = vld [vmem:[#allocation5 + $0x28] sm:$0xf0]  ;;  %v4740_v49 = vld [vmem:[%s5796_s2] sm:$0xff] }
 0x216   : > { %v1758_v46 = vadd.f32 %v1757_v40, %v5409_v7  ;;  %v1966_v47 = vpop.f32.mrf.mxu0  ;;  %v4500_v7 = vld [vmem:[#allocation5 + $0x4c] sm:$0xf]  ;;  %2477 = vmatpush.bf16.msrb.mxu1 %v4038_v62  ;;  %v4026_v37 = vor.u32 %v4495_v48, %v4025_v28  ;;  %v4033_v40 = vld [vmem:[#allocation5 + $0x20] sm:$0xf]  ;;  %v4030_v1 = vor.u32 %v4494_v39, %v4027_v3  ;;  %v2560_v13 = vstv %s2559_s23 }
 0x217   : > { %v3911_v25 = vmul.f32 -1.442695, %v1981_v61  ;;  %v1979_v35 = vpop.f32.mrf.mxu1  ;;  %v4054_v0 = vor.u32 %v4500_v7, %v4051_v2  ;;  %v4013_v61 = vld [vmem:[#allocation5] sm:$0xf]  ;;  %v4493_v7 = vld [vmem:[#allocation5 + $0x10] sm:$0xf0]  ;;  %vm2561_vm2 = vcmp.gt.s32.totalorder %v4740_v49, %v2560_v13  ;;  %v2021_v23 = vadd.f32 %v5532_v17, %v5576_v51 }
 0x218   : > { %4690 = vtanh.f32 %v1758_v46  ;;  %2503 = vmatpush.bf16.msrb.mxu3 %v4046_v26  ;;  %v4034_v46 = vor.u32 %v4496_v41, %v4033_v40  ;;  %v4014_v35 = vor.u32 %v4492_v45, %v4013_v61  ;;  %v4022_v6 = vor.u32 %v4493_v7, %v4021_v42  ;;  %v4195_v61 = vld [vmem:[#allocation4 + $0xa8] sm:$0xf]  ;;  %v4537_v45 = vld [vmem:[#allocation4 + $0xb0] sm:$0xf0]  ;;  %v4203_v42 = vld [vmem:[#allocation4 + $0xb0] sm:$0xf] }
 0x219   : > { %v4689_v15 = vpop.eup %4688  ;;  %4692 = vpow2.f32 %v3911_v25  ;;  %2489 = vmatpush.bf16.msrb.mxu2 %v4054_v0  ;;  %v4018_v0 = vor.u32 %v4491_v50, %v4015_v57  ;;  %v4536_v50 = vld [vmem:[#allocation4 + $0xac] sm:$0xf]  ;;  %v4196_v57 = vor.u32 %v4537_v45, %v4195_v61  ;;  %v4538_v7 = vld [vmem:[#allocation4 + $0xb8] sm:$0xf0]  ;;  %v4531_v13 = vld [vmem:[#allocation4 + $0x80] sm:$0xf0] }
 0x21a   : > { %v5597_v18 = vadd.f32 1.0, %v4689_v15  ;;  %2478 = vmatpush.bf16.msrb.mxu1 %v4026_v37  ;;  %v4135_v61 = vld [vmem:[#allocation4 + $0x30] sm:$0xf]  ;;  %v4522_v45 = vld [vmem:[#allocation4 + $0x38] sm:$0xf0] }
 0x21b   : > { %v2035_v41 = vpop.permute.xlu1 %2034  ;;  %2737 = vmatpush.bf16.msra.mxu0 %v4196_v57  ;;  %v4136_v57 = vor.u32 %v4522_v45, %v4135_v61  ;;  %v4559_v45 = vld [vmem:[#allocation5 + $0xa0] sm:$0xf0] }
 0x21c   : > { %v1953_v30 = vpop.f32.mrf.mxu3  ;;  %4694 = vrcp.f32 %v5597_v18  ;;  %2504 = vmatpush.bf16.msrb.mxu3 %v4034_v46  ;;  %v2017_v39 = vand.u32 2147483648, %v5597_v18  ;;  %vm2011_vm8 = vweird.f32 %v5597_v18  ;;  %vm2036_vm11 = vcmp.eq.s32.totalorder %v2035_v41, 1  ;;  %v4155_v41 = vld [vmem:[#allocation4 + $0x50] sm:$0xf] }
 0x21d   : > { %2490 = vmatpush.bf16.msrb.mxu2 %v4042_v20  ;;  %v2562_v30 = vsel %vm2561_vm2, 1, %v5042_v58 }
 0x21e   : > { %v4691_v22 = vpop.eup %4690  ;;  %2479 = vmatpush.bf16.msrb.mxu1 %v4014_v35  ;;  %v2018_v3 = vor.u32 1.1754944e-38, %v2017_v39  ;;  %v4533_v35 = vld [vmem:[#allocation4 + $0x94] sm:$0xf]  ;;  %v4167_v39 = vld [vmem:[#allocation4 + $0x68] sm:$0xf] }
 0x21f   : > { %v1761_v31 = vmul.f32 %v4691_v22, %v1760_v54  ;;  %v4693_v29 = vpop.eup %4692 }
 0x220   : > { %v1985_v43 = vadd.f32 1.0, %v4693_v29  ;;  %2505 = vmatpush.bf16.msrb.mxu3 %v4022_v6  ;;  %v4185_v6 = vld [vmem:[#allocation4 + $0x9c] sm:$0xf0] }
 0x221   : > { %v1763_v44 = vadd.f32 %v1762_v34, %v1761_v31  ;;  %2491 = vmatpush.bf16.msrb.mxu2 %v4030_v1 }
 0x222   : > { %4696 = vrcp.f32 %v1985_v43  ;;  %v4695_v47 = vpop.eup %4694  ;;  %v1997_v4 = vand.u32 2147483648, %v1985_v43  ;;  %v1995_v20 = vand.u32 2147483647, %v1985_v43  ;;  %vm1991_vm4 = vweird.f32 %v1985_v43 }
 0x223   : > { %v5602_v52 = vsel %vm1771_vm0, %v1763_v44, %v5521_v59  ;;  %v1774_v5 = vsel %vm1771_vm0, %v1763_v44, 0.0  ;;  %v2007_v9 = vmul.f32 %v4695_v47, %v5597_v18  ;;  %v2295_v59 = vstv %s2294_s11  ;;  %s3121_s11 = sshll.u32 %s3118_s20, 4  ;;  %s3122_s11 = int_to_ptr.hbm [resolvable:$true] %s3121_s11 }
 0x224   : > { %v1775_v2 = vpack.c.bf16 %v1774_v5, %v1774_v5  ;;  %v2046_v25 = vpack.c.bf16 %v5602_v52, %v5602_v52  ;;  %vm2296_vm1 = vcmp.gt.s32.totalorder %v4740_v49, %v2295_v59  ;;  %v1998_v22 = vor.u32 1.1754944e-38, %v1997_v4  ;;  %v4191_v59 = vld [vmem:[#allocation4 + $0x98] sm:$0xf]  ;;  %v4535_v49 = vld [vmem:[#allocation4 + $0xa0] sm:$0xf0]  ;;  %s4913_s30 = sshra.s32 %s3122_s11, 4  ;;  %s4914_s30 = int_to_ptr.hbm [resolvable:$true] %s4913_s30 }
 0x225   : > { %2492 = vmatpush.bf16.msrb.mxu2 %v4018_v0  ;;  %v2297_v55 = vsel %vm2296_vm1, 1, %v5042_v58  ;;  %v2008_v56 = vsub.f32 1.0, %v2007_v9  ;;  %vm1996_vm6 = vcmp.eq.f32.partialorder %v1995_v20, 8.507059e+37  ;;  %vm2012_vm7 = vweird.f32 %v4695_v47  ;;  %v4532_v20 = vld [vmem:[#allocation4 + $0x88] sm:$0xf0]  ;;  %s4915_s22 = scalar_lea.hbm %s4914_s30, 16  ;;  %p4920_p1 = scmp.lt.s32.totalorder %s4914_s30, %s5875_s10 }
 0x226   : > { %1776 = vst [vmem:[%s5308_s14 + $0x4] sm:$0xf] %v1775_v2  ;;  %2215 = vmatmul.bf16.vlgmr.msra.gmra.mxu2 %v2046_v25  ;;  %2228 = vmatmul.bf16.vlgmr.msra.gmra.mxu3 %v2046_v25  ;;  %v2015_v58 = vand.u32 2147483647, %v5597_v18  ;;  %vm2013_vm9 = vmor %vm2011_vm8, %vm2012_vm7  ;;  %v4183_v2 = vld [vmem:[#allocation4 + $0x90] sm:$0xf]  ;;  %v4188_v9 = vor.u32 %v4533_v35, %v4185_v6  ;;  %p4916_p9 = scmp.ne.s32.totalorder %s4914_s30, %s4915_s22  ;;  %p4921_p2 = scmp.lt.s32.totalorder %s4919_s5, %s4915_s22 }
 0x227   : > { %2241 = vmatmul.bf16.vlgmr.msrb.gmra.mxu0 %v2046_v25  ;;  %2299 = vperm.xlu2 %4657, %v2297_v55   ;;  %v2009_v21 = vmul.f32 %v4695_v47, %v2008_v56  ;;  %v4534_v25 = vld [vmem:[#allocation4 + $0x98] sm:$0xf0]  ;;  %v4171_v55 = vld [vmem:[#allocation4 + $0x78] sm:$0xf] }
 0x228   : > { %v4697_v15 = vpop.eup %4696  ;;  %vm2016_vm10 = vcmp.eq.f32.partialorder %v2015_v58, 8.507059e+37  ;;  %v4184_v0 = vor.u32 %v4534_v25, %v4183_v2  ;;  %v4172_v56 = vor.u32 %v4531_v13, %v4171_v55  ;;  %v4143_v2 = vld [vmem:[#allocation4 + $0x38] sm:$0xf]  ;;  %v4523_v25 = vld [vmem:[#allocation4 + $0x40] sm:$0xf0]  ;;  %p4917_p3 = pnand %p4916_p9, %p5175_p8  ;;  %p4922_p6 = por %p4921_p2, %p4920_p1 }
 0x229   : > { %v1987_v11 = vmul.f32 %v4697_v15, %v1985_v43  ;;  %vm1992_vm3 = vweird.f32 %v4697_v15  ;;  %v2010_v48 = vadd.f32 %v4695_v47, %v2009_v21  ;;  %v4123_v35 = vld [vmem:[#allocation4 + $0x18] sm:$0xf]  ;;  %v4131_v55 = vld [vmem:[#allocation4 + $0x20] sm:$0xf]  ;;  %v4520_v13 = vld [vmem:[#allocation4 + $0x28] sm:$0xf0] }
 0x22a   : > { %vm1993_vm5 = vmor %vm1991_vm4, %vm1992_vm3  ;;  %2738 = vmatpush.bf16.msra.mxu0 %v4184_v0  ;;  %v4518_v0 = vld [vmem:[#allocation4 + $0x1c] sm:$0xf]  ;;  %p4918_p0 = pneg %p4917_p3 }
 0x22b   : > { %v1988_v62 = vsub.f32 1.0, %v1987_v11  ;;  %v2014_v37 = vsel %vm2013_vm9, %v4695_v47, %v2010_v48  ;;  %v4197_v47 = vld [vmem:[#allocation4 + $0xb4] sm:$0xf0]  ;;  %v4530_v11 = vld [vmem:[#allocation4 + $0x7c] sm:$0xf] }
 0x22c   : > { %v2019_v17 = vsel %vm2016_vm10, %v2018_v3, %v2014_v37  ;;  %v4200_v5 = vor.u32 %v4536_v50, %v4197_v47  ;;  %v4525_v37 = vld [vmem:[#allocation4 + $0x50] sm:$0xf0]  ;;  %v4524_v3 = vld [vmem:[#allocation4 + $0x4c] sm:$0xf]  ;;  %v4137_v47 = vld [vmem:[#allocation4 + $0x3c] sm:$0xf0]  ;;  %p4923_p11 = pnand %p4922_p6, %p4918_p0 }
 0x22d   : > { %v1989_v19 = vmul.f32 %v4697_v15, %v1988_v62  ;;  %v2025_v51 = vsub.f32 1.0, %v2019_v17  ;;  %v2027_v1 = vmul.f32 %v2019_v17, %v5551_v60  ;;  %v4173_v62 = vld [vmem:[#allocation4 + $0x84] sm:$0xf0]  ;;  %v4521_v50 = vld [vmem:[#allocation4 + $0x34] sm:$0xf] }
 0x22e   : > { %2750 = vmatpush.bf16.msra.mxu1 %v4200_v5  ;;  %v4176_v4 = vor.u32 %v4530_v11, %v4173_v62  ;;  %2739 = vmatpush.bf16.msra.mxu0 %v4172_v56  ;;  %v4132_v11 = vor.u32 %v4520_v13, %v4131_v55  ;;  %v4111_v56 = vld [vmem:[#allocation4] sm:$0xf]  ;;  %v4516_v62 = vld [vmem:[#allocation4 + $0x8] sm:$0xf0]  ;;  %v4551_v55 = vld [vmem:[#allocation5 + $0x64] sm:$0xf] }
 0x22f   : > { %v1990_v54 = vadd.f32 %v4697_v15, %v1989_v19  ;;  %2564 = vperm.xlu2 %4657, %v2562_v30   ;;  %v4179_v19 = vld [vmem:[#allocation4 + $0x80] sm:$0xf]  ;;  %v4259_v13 = vld [vmem:[#allocation5 + $0x6c] sm:$0xf0] }
 0x230   : > { %v4180_v21 = vor.u32 %v4532_v20, %v4179_v19  ;;  %v4159_v30 = vld [vmem:[#allocation4 + $0x60] sm:$0xf]  ;;  %v4112_v19 = vor.u32 %v4516_v62, %v4111_v56  ;;  %v4113_v20 = vld [vmem:[#allocation4 + $0xc] sm:$0xf0]  ;;  %v4262_v62 = vor.u32 %v4551_v55, %v4259_v13  ;;  %v4542_v13 = vld [vmem:[#allocation5 + $0x1c] sm:$0xf] }
 0x231   : > { %v1994_v26 = vsel %vm1993_vm5, %v4697_v15, %v1990_v54  ;;  %v4192_v15 = vor.u32 %v4535_v49, %v4191_v59  ;;  %v4528_v54 = vld [vmem:[#allocation4 + $0x68] sm:$0xf0] }
 0x232   : > { %v1999_v28 = vsel %vm1996_vm6, %v1998_v22, %v1994_v26  ;;  %2751 = vmatpush.bf16.msra.mxu1 %v4188_v9  ;;  %v4527_v22 = vld [vmem:[#allocation4 + $0x64] sm:$0xf]  ;;  %v4161_v26 = vld [vmem:[#allocation4 + $0x6c] sm:$0xf0]  ;;  %v4125_v9 = vld [vmem:[#allocation4 + $0x24] sm:$0xf0] }
 0x233   : > { %v2022_v31 = vmul.f32 %v2021_v23, %v1999_v28  ;;  %v4160_v23 = vor.u32 %v4528_v54, %v4159_v30  ;;  %v4164_v48 = vor.u32 %v4527_v22, %v4161_v26  ;;  %v4128_v59 = vor.u32 %v4518_v0, %v4125_v9  ;;  %v4561_v30 = vld [vmem:[#allocation5 + $0xb0] sm:$0xf0]  ;;  %v4560_v26 = vld [vmem:[#allocation5 + $0xac] sm:$0xf]  ;;  %v4257_v9 = vld [vmem:[#allocation5 + $0x60] sm:$0xf] }
 0x235   : > { %v2023_v34 = vadd.f32 %v2022_v31, %v5458_v36  ;;  %2740 = vmatpush.bf16.msra.mxu0 %v4160_v23  ;;  %v4529_v31 = vld [vmem:[#allocation4 + $0x70] sm:$0xf0] }
 0x236   : > { %2752 = vmatpush.bf16.msra.mxu1 %v4176_v4  ;;  %v4168_v58 = vor.u32 %v4529_v31, %v4167_v39  ;;  %v4515_v4 = vld [vmem:[#allocation4 + $0x4] sm:$0xf]  ;;  %v4301_v39 = vld [vmem:[#allocation5 + $0xb0] sm:$0xf] }
 0x237   : > { %4698 = vtanh.f32 %v2023_v34  ;;  %v4147_v34 = vld [vmem:[#allocation4 + $0x48] sm:$0xf]  ;;  %v4116_v22 = vor.u32 %v4515_v4, %v4113_v20 }
 0x238   : > { %v4148_v17 = vor.u32 %v4525_v37, %v4147_v34  ;;  %v4562_v37 = vld [vmem:[#allocation5 + $0xb8] sm:$0xf0]  ;;  %v4265_v4 = vld [vmem:[#allocation5 + $0x68] sm:$0xf] }
 0x23a   : > { %2753 = vmatpush.bf16.msra.mxu1 %v4164_v48  ;;  %2741 = vmatpush.bf16.msra.mxu0 %v4148_v17  ;;  %v4295_v48 = vld [vmem:[#allocation5 + $0xb4] sm:$0xf0]  ;;  %v4302_v17 = vor.u32 %v4562_v37, %v4301_v39  ;;  %v4548_v39 = vld [vmem:[#allocation5 + $0x4c] sm:$0xf] }
 0x23b   : > { %v4298_v34 = vor.u32 %v4560_v26, %v4295_v48  ;;  %v4245_v26 = vld [vmem:[#allocation5 + $0x48] sm:$0xf]  ;;  %v4549_v48 = vld [vmem:[#allocation5 + $0x50] sm:$0xf0]  ;;  %v4247_v37 = vld [vmem:[#allocation5 + $0x54] sm:$0xf0] }
 0x23d   : > { %v4699_v40 = vpop.eup %4698 }
 0x23e   : > { %v2026_v29 = vmul.f32 %v4699_v40, %v2025_v51  ;;  %v4149_v51 = vld [vmem:[#allocation4 + $0x54] sm:$0xf0]  ;;  %2742 = vmatpush.bf16.msra.mxu0 %v4136_v57  ;;  %v4555_v57 = vld [vmem:[#allocation5 + $0x80] sm:$0xf0] }
 0x23f   : > { %v4152_v40 = vor.u32 %v4524_v3, %v4149_v51  ;;  %v4119_v51 = vld [vmem:[#allocation4 + $0x8] sm:$0xf] }
 0x240   : > { %v2028_v43 = vadd.f32 %v2027_v1, %v2026_v29 }
 0x241   : > { %2754 = vmatpush.bf16.msra.mxu1 %v4152_v40  ;;  %v4517_v40 = vld [vmem:[#allocation4 + $0x10] sm:$0xf0] }
 0x242   : > { %v5623_v44 = vsel %vm2036_vm11, %v2028_v43, %v5551_v60  ;;  %v2039_v18 = vsel %vm2036_vm11, %v2028_v43, 0.0  ;;  %v4204_v60 = vor.u32 %v4538_v7, %v4203_v42  ;;  %v4526_v43 = vld [vmem:[#allocation4 + $0x58] sm:$0xf0] }
 0x243   : > { %v2040_v46 = vpack.c.bf16 %v2039_v18, %v2039_v18  ;;  %v2311_v36 = vpack.c.bf16 %v5623_v44, %v5623_v44 }
 0x244   : > { %2763 = vmatpush.bf16.msra.mxu2 %v4204_v60  ;;  %v4140_v60 = vor.u32 %v4521_v50, %v4137_v47  ;;  %v4269_v50 = vld [vmem:[#allocation5 + $0x78] sm:$0xf] }
 0x245   : > { %2041 = vst [vmem:[%s5310_s17 + $0x8] sm:$0xf] %v2040_v46  ;;  %2480 = vmatmul.bf16.vlgmr.msrb.gmra.mxu1 %v2311_v36  ;;  %2493 = vmatmul.bf16.vlgmr.msrb.gmra.mxu2 %v2311_v36 }
 0x246   : > { %2506 = vmatmul.bf16.vlgmr.msrb.gmra.mxu3 %v2311_v36  ;;  %v4156_v36 = vor.u32 %v4526_v43, %v4155_v41  ;;  %2755 = vmatpush.bf16.msra.mxu1 %v4140_v60  ;;  %v4120_v41 = vor.u32 %v4517_v40, %v4119_v51  ;;  %v4557_v43 = vld [vmem:[#allocation5 + $0x94] sm:$0xf]  ;;  %v4277_v60 = vld [vmem:[#allocation5 + $0x80] sm:$0xf]  ;;  %v4550_v51 = vld [vmem:[#allocation5 + $0x58] sm:$0xf0] }
 0x247   : > { %v5651_v40 = vld [vmem:[%s5867_s13] ss:$0 sm:$0xff] }
 0x248   : > { %2764 = vmatpush.bf16.msra.mxu2 %v4192_v15 }
 0x24a   : > { %2756 = vmatpush.bf16.msra.mxu1 %v4128_v59  ;;  %v4552_v59 = vld [vmem:[#allocation5 + $0x68] sm:$0xf0] }
 0x24c   : > { %2765 = vmatpush.bf16.msra.mxu2 %v4180_v21  ;;  %v4293_v21 = vld [vmem:[#allocation5 + $0xa8] sm:$0xf] }
 0x24d   : > { %v4294_v23 = vor.u32 %v4561_v30, %v4293_v21 }
 0x24e   : > { %2757 = vmatpush.bf16.msra.mxu1 %v4116_v22 }
 0x24f   : > { %3002 = vmatpush.bf16.msra.mxu3 %v4294_v23 }
 0x250   : > { %2766 = vmatpush.bf16.msra.mxu2 %v4168_v58 }
 0x252   : > { %3028 = vmatpush.bf16.msrb.mxu1 %v4302_v17  ;;  %v4253_v17 = vld [vmem:[#allocation5 + $0x50] sm:$0xf] }
 0x254   : > { %2767 = vmatpush.bf16.msra.mxu2 %v4156_v36  ;;  %v4289_v36 = vld [vmem:[#allocation5 + $0x98] sm:$0xf] }
 0x255   : > { %v4290_v47 = vor.u32 %v4559_v45, %v4289_v36  ;;  %v4545_v45 = vld [vmem:[#allocation5 + $0x34] sm:$0xf] }
 0x257   : > { %3029 = vmatpush.bf16.msrb.mxu1 %v4290_v47 }
 0x2a4   : > { %v5628_v28 = vpop.f32.mrf.mxu0 }
 0x2a9   : > { %v2216_v29 = vpop.f32.mrf.mxu2  ;;  %v2229_v1 = vpop.f32.mrf.mxu3 }
 0x2aa   : > { %v2246_v18 = vadd.f32 %v2216_v29, %v5418_v12  ;;  %v2266_v46 = vadd.f32 %v2229_v1, %v5415_v10  ;;  %v4144_v12 = vor.u32 %v4523_v25, %v4143_v2  ;;  %v4519_v10 = vld [vmem:[#allocation4 + $0x20] sm:$0xf0]  ;;  %v4281_v29 = vld [vmem:[#allocation5 + $0x90] sm:$0xf]  ;;  %v4558_v1 = vld [vmem:[#allocation5 + $0x98] sm:$0xf0] }
 0x2ab   : > { %v4124_v6 = vor.u32 %v4519_v10, %v4123_v35 }
 0x2ac   : > { %v4009_v5 = vmul.f32 -1.442695, %v2246_v18  ;;  %v4010_v42 = vmul.f32 -1.442695, %v2266_v46  ;;  %v2244_v7 = vpop.f32.mrf.mxu0  ;;  %2768 = vmatpush.bf16.msra.mxu2 %v4144_v12  ;;  %v4282_v18 = vor.u32 %v4558_v1, %v4281_v29  ;;  %v4283_v46 = vld [vmem:[#allocation5 + $0x9c] sm:$0xf0] }
 0x2ad   : > { %2743 = vmatpush.bf16.msra.mxu0 %v4124_v6  ;;  %v4286_v61 = vor.u32 %v4557_v43, %v4283_v46  ;;  %v4271_v7 = vld [vmem:[#allocation5 + $0x84] sm:$0xf0]  ;;  %v4556_v12 = vld [vmem:[#allocation5 + $0x88] sm:$0xf0] }
 0x2ae   : > { %4700 = vpow2.f32 %v4009_v5  ;;  %3003 = vmatpush.bf16.msra.mxu3 %v4282_v18  ;;  %v4270_v5 = vor.u32 %v4555_v57, %v4269_v50  ;;  %v4278_v0 = vor.u32 %v4556_v12, %v4277_v60  ;;  %v4254_v18 = vor.u32 %v4550_v51, %v4253_v17  ;;  %v4541_v17 = vld [vmem:[#allocation5 + $0x10] sm:$0xf0] }
 0x2af   : > { %4702 = vpow2.f32 %v4010_v42  ;;  %v4554_v42 = vld [vmem:[#allocation5 + $0x7c] sm:$0xf] }
 0x2b0   : > { %2769 = vmatpush.bf16.msra.mxu2 %v4132_v11  ;;  %v4274_v25 = vor.u32 %v4554_v42, %v4271_v7  ;;  %3030 = vmatpush.bf16.msrb.mxu1 %v4278_v0  ;;  %v4241_v42 = vld [vmem:[#allocation5 + $0x38] sm:$0xf]  ;;  %v4547_v7 = vld [vmem:[#allocation5 + $0x40] sm:$0xf0] }
 0x2b1   : > { %v2218_v49 = vpop.f32.mrf.mxu2  ;;  %v2231_v15 = vpop.f32.mrf.mxu3  ;;  %2744 = vmatpush.bf16.msra.mxu0 %v4112_v19  ;;  %v4553_v19 = vld [vmem:[#allocation5 + $0x70] sm:$0xf0] }
 0x2b2   : > { %3004 = vmatpush.bf16.msra.mxu3 %v4270_v5  ;;  %v4258_v15 = vor.u32 %v4552_v59, %v4257_v9  ;;  %v4235_v5 = vld [vmem:[#allocation5 + $0x3c] sm:$0xf0] }
 0x2b3   : > { %v4238_v9 = vor.u32 %v4545_v45, %v4235_v5 }
 0x2b4   : > { %v4701_v54 = vpop.eup %4700  ;;  %2770 = vmatpush.bf16.msra.mxu2 %v4120_v41  ;;  %v4250_v41 = vor.u32 %v4548_v39, %v4247_v37  ;;  %v4217_v37 = vld [vmem:[#allocation5 + $0x8] sm:$0xf] }
 0x2b5   : > { %v4703_v31 = vpop.eup %4702  ;;  %v5632_v58 = vadd.f32 1.0, %v4701_v54  ;;  %3015 = vmatpush.bf16.msrb.mxu0 %v4298_v34  ;;  %v4266_v54 = vor.u32 %v4553_v19, %v4265_v4  ;;  %v4246_v34 = vor.u32 %v4549_v48, %v4245_v26  ;;  %v4544_v4 = vld [vmem:[#allocation5 + $0x28] sm:$0xf0]  ;;  %v2300_v48 = vpop.permute.xlu2 %2299 }
 0x2b6   : > { %v5634_v3 = vadd.f32 1.0, %v4703_v31  ;;  %3005 = vmatpush.bf16.msra.mxu3 %v4258_v15  ;;  %v4543_v15 = vld [vmem:[#allocation5 + $0x20] sm:$0xf0]  ;;  %vm2301_vm4 = vcmp.eq.s32.totalorder %v2300_v48, 1 }
 0x2b7   : > { %4704 = vrcp.f32 %v5632_v58  ;;  %v2262_v11 = vand.u32 2147483648, %v5632_v58  ;;  %v2260_v21 = vand.u32 2147483647, %v5632_v58  ;;  %vm2256_vm13 = vweird.f32 %v5632_v58  ;;  %3031 = vmatpush.bf16.msrb.mxu1 %v4266_v54  ;;  %v4539_v54 = vld [vmem:[#allocation5 + $0x4] sm:$0xf] }
 0x2b8   : > { %4706 = vrcp.f32 %v5634_v3  ;;  %v2282_v43 = vand.u32 2147483648, %v5634_v3  ;;  %vm2276_vm1 = vweird.f32 %v5634_v3 }
 0x2b9   : > { %3016 = vmatpush.bf16.msrb.mxu0 %v4286_v61  ;;  %v2263_v29 = vor.u32 1.1754944e-38, %v2262_v11  ;;  %vm2261_vm15 = vcmp.eq.f32.partialorder %v2260_v21, 8.507059e+37  ;;  %v4233_v61 = vld [vmem:[#allocation5 + $0x30] sm:$0xf]  ;;  %v4223_v11 = vld [vmem:[#allocation5 + $0x24] sm:$0xf0] }
 0x2ba   : > { %3006 = vmatpush.bf16.msra.mxu3 %v4246_v34  ;;  %v2283_v0 = vor.u32 1.1754944e-38, %v2282_v43 }
 0x2bb   : > { %3032 = vmatpush.bf16.msrb.mxu1 %v4254_v18 }
 0x2bd   : > { %v4705_v2 = vpop.eup %4704  ;;  %3017 = vmatpush.bf16.msrb.mxu0 %v4274_v25  ;;  %v2280_v25 = vand.u32 2147483647, %v5634_v3 }
 0x2be   : > { %v5638_v35 = vpop.eup %4706  ;;  %v2252_v10 = vmul.f32 %v4705_v2, %v5632_v58  ;;  %vm2257_vm12 = vweird.f32 %v4705_v2 }
 0x2bf   : > { %v2272_v6 = vmul.f32 %v5638_v35, %v5634_v3  ;;  %vm2258_vm14 = vmor %vm2256_vm13, %vm2257_vm12  ;;  %vm2277_vm0 = vweird.f32 %v5638_v35  ;;  %v4221_v3 = vld [vmem:[#allocation5 + $0x18] sm:$0xf]  ;;  %vm2281_vm3 = vcmp.eq.f32.partialorder %v2280_v25, 8.507059e+37 }
 0x2c0   : > { %v2253_v49 = vsub.f32 1.0, %v2252_v10  ;;  %vm5666_vm2 = vmor %vm2276_vm1, %vm2277_vm0  ;;  %v4222_v55 = vor.u32 %v4543_v15, %v4221_v3  ;;  %v5684_v10 = vld [vmem:[%s5870_s29] ss:$0 sm:$0xff] }
 0x2c1   : > { %v2273_v56 = vsub.f32 1.0, %v2272_v6  ;;  %3018 = vmatpush.bf16.msrb.mxu0 %v4262_v62 }
 0x2c2   : > { %v2254_v20 = vmul.f32 %v4705_v2, %v2253_v49  ;;  %v2481_v30 = vpop.f32.mrf.mxu1 }
 0x2c3   : > { %v2511_v22 = vadd.f32 %v2481_v30, %v5412_v8  ;;  %v2274_v23 = vmul.f32 %v5638_v35, %v2273_v56  ;;  %v2286_v8 = vadd.f32 %v5651_v40, %v5628_v28  ;;  %v4546_v28 = vld [vmem:[#allocation5 + $0x38] sm:$0xf0]  ;;  %v4229_v56 = vld [vmem:[#allocation5 + $0x20] sm:$0xf] }
 0x2c4   : > { %v2255_v31 = vadd.f32 %v4705_v2, %v2254_v20  ;;  %v4234_v47 = vor.u32 %v4546_v28, %v4233_v61  ;;  %v4230_v21 = vor.u32 %v4544_v4, %v4229_v56  ;;  %v4209_v30 = vld [vmem:[#allocation5] sm:$0xf] }
 0x2c5   : > { %v4107_v1 = vmul.f32 -1.442695, %v2511_v22  ;;  %v2275_v36 = vadd.f32 %v5638_v35, %v2274_v23  ;;  %3019 = vmatpush.bf16.msrb.mxu0 %v4250_v41  ;;  %v4211_v23 = vld [vmem:[#allocation5 + $0xc] sm:$0xf0] }
 0x2c6   : > { %v2259_v58 = vsel %vm2258_vm14, %v4705_v2, %v2255_v31  ;;  %3007 = vmatpush.bf16.msra.mxu3 %v4234_v47  ;;  %v4214_v34 = vor.u32 %v4539_v54, %v4211_v23 }
 0x2c7   : > { %4708 = vpow2.f32 %v4107_v1  ;;  %v2264_v46 = vsel %vm2261_vm15, %v2263_v29, %v2259_v58  ;;  %v2279_v49 = vsel %vm5666_vm2, %v5638_v35, %v2275_v36  ;;  %v4540_v35 = vld [vmem:[#allocation5 + $0x8] sm:$0xf0] }
 0x2c8   : > { %v2494_v50 = vpop.f32.mrf.mxu2  ;;  %v2287_v57 = vmul.f32 %v2286_v8, %v2264_v46  ;;  %v2284_v20 = vsel %vm2281_vm3, %v2283_v0, %v2279_v49  ;;  %v4210_v31 = vor.u32 %v4540_v35, %v4209_v30  ;;  %v4218_v8 = vor.u32 %v4541_v17, %v4217_v37 }
 0x2c9   : > { %v2531_v60 = vadd.f32 %v2494_v50, %v5455_v53  ;;  %v5660_v2 = vpop.f32.mrf.mxu3  ;;  %v4242_v53 = vor.u32 %v4547_v7, %v4241_v42  ;;  %3020 = vmatpush.bf16.msrb.mxu0 %v4238_v9  ;;  %v2290_v39 = vsub.f32 1.0, %v2284_v20  ;;  %v2292_v41 = vmul.f32 %v2284_v20, %v5602_v52 }
 0x2ca   : > { %v2483_v12 = vpop.f32.mrf.mxu1  ;;  %v2288_v6 = vadd.f32 %v2287_v57, %v5421_v24  ;;  %v4226_v24 = vor.u32 %v4542_v13, %v4223_v11  ;;  %3008 = vmatpush.bf16.msra.mxu3 %v4222_v55  ;;  %v2551_v0 = vadd.f32 %v5684_v10, %v5660_v2  ;;  %v2565_v2 = vpop.permute.xlu2 %2564 }
 0x2cb   : > { %v4108_v59 = vmul.f32 -1.442695, %v2531_v60  ;;  %3033 = vmatpush.bf16.msrb.mxu1 %v4242_v53  ;;  %vm2566_vm13 = vcmp.eq.s32.totalorder %v2565_v2, 1 }
 0x2cc   : > { %4710 = vtanh.f32 %v2288_v6 }
 0x2cd   : > { %v4709_v62 = vpop.eup %4708  ;;  %4712 = vpow2.f32 %v4108_v59  ;;  %3021 = vmatpush.bf16.msrb.mxu0 %v4226_v24 }
 0x2ce   : > { %v2515_v19 = vadd.f32 1.0, %v4709_v62  ;;  %3009 = vmatpush.bf16.msra.mxu3 %v4210_v31 }
 0x2cf   : > { %3034 = vmatpush.bf16.msrb.mxu1 %v4230_v21 }
 0x2d0   : > { %4714 = vrcp.f32 %v2515_v19  ;;  %v2496_v22 = vpop.f32.mrf.mxu2  ;;  %v2527_v57 = vand.u32 2147483648, %v2515_v19  ;;  %v2525_v5 = vand.u32 2147483647, %v2515_v19  ;;  %vm2521_vm6 = vweird.f32 %v2515_v19 }
 0x2d1   : > { %v2509_v26 = vpop.f32.mrf.mxu3  ;;  %3022 = vmatpush.bf16.msrb.mxu0 %v4214_v34 }
 0x2d2   : > { %v4711_v51 = vpop.eup %4710  ;;  %vm2526_vm8 = vcmp.eq.f32.partialorder %v2525_v5, 8.507059e+37 }
 0x2d3   : > { %v4713_v29 = vpop.eup %4712  ;;  %v2291_v1 = vmul.f32 %v4711_v51, %v2290_v39  ;;  %3035 = vmatpush.bf16.msrb.mxu1 %v4218_v8 }
 0x2d4   : > { %v2535_v58 = vadd.f32 1.0, %v4713_v29 }
 0x2d5   : > { %v2293_v43 = vadd.f32 %v2292_v41, %v2291_v1 }
 0x2d6   : > { %v4715_v18 = vpop.eup %4714  ;;  %4716 = vrcp.f32 %v2535_v58  ;;  %v2547_v59 = vand.u32 2147483648, %v2535_v58  ;;  %v2545_v49 = vand.u32 2147483647, %v2535_v58  ;;  %vm2541_vm10 = vweird.f32 %v2535_v58 }
 0x2d7   : > { %v2517_v46 = vmul.f32 %v4715_v18, %v2515_v19  ;;  %v5676_v36 = vsel %vm2301_vm4, %v2293_v43, %v5602_v52  ;;  %v2304_v61 = vsel %vm2301_vm4, %v2293_v43, 0.0  ;;  %vm2522_vm5 = vweird.f32 %v4715_v18 }
 0x2d8   : > { %v2305_v28 = vpack.c.bf16 %v2304_v61, %v2304_v61  ;;  %v2576_v45 = vpack.c.bf16 %v5676_v36, %v5676_v36  ;;  %vm2523_vm7 = vmor %vm2521_vm6, %vm2522_vm5  ;;  %v2528_v52 = vor.u32 1.1754944e-38, %v2527_v57  ;;  %v2548_v13 = vor.u32 1.1754944e-38, %v2547_v59 }
 0x2d9   : > { %v2518_v50 = vsub.f32 1.0, %v2517_v46  ;;  %vm2546_vm12 = vcmp.eq.f32.partialorder %v2545_v49, 8.507059e+37 }
 0x2da   : > { %2306 = vst [vmem:[%s5308_s14 + $0x8] sm:$0xf] %v2305_v28  ;;  %2745 = vmatmul.bf16.vlgmr.msra.gmra.mxu0 %v2576_v45  ;;  %2758 = vmatmul.bf16.vlgmr.msra.gmra.mxu1 %v2576_v45 }
 0x2db   : > { %v2519_v47 = vmul.f32 %v4715_v18, %v2518_v50  ;;  %2771 = vmatmul.bf16.vlgmr.msra.gmra.mxu2 %v2576_v45 }
 0x2dc   : > { %v4717_v42 = vpop.eup %4716 }
 0x2dd   : > { %v2537_v7 = vmul.f32 %v4717_v42, %v2535_v58  ;;  %v2520_v60 = vadd.f32 %v4715_v18, %v2519_v47  ;;  %vm2542_vm9 = vweird.f32 %v4717_v42 }
 0x2de   : > { %vm2543_vm11 = vmor %vm2541_vm10, %vm2542_vm9 }
 0x2df   : > { %v2538_v25 = vsub.f32 1.0, %v2537_v7  ;;  %v2524_v12 = vsel %vm2523_vm7, %v4715_v18, %v2520_v60 }
 0x2e0   : > { %v2529_v6 = vsel %vm2526_vm8, %v2528_v52, %v2524_v12 }
 0x2e1   : > { %v2552_v9 = vmul.f32 %v2551_v0, %v2529_v6  ;;  %v2539_v53 = vmul.f32 %v4717_v42, %v2538_v25 }
 0x2e3   : > { %v2553_v3 = vadd.f32 %v2552_v9, %v5452_v32  ;;  %v2540_v15 = vadd.f32 %v4717_v42, %v2539_v53 }
 0x2e5   : > { %4718 = vtanh.f32 %v2553_v3  ;;  %v2544_v55 = vsel %vm2543_vm11, %v4717_v42, %v2540_v15 }
 0x2e6   : > { %v2549_v11 = vsel %vm2546_vm12, %v2548_v13, %v2544_v55 }
 0x2e7   : > { %v2555_v56 = vsub.f32 1.0, %v2549_v11  ;;  %v2557_v4 = vmul.f32 %v2549_v11, %v5623_v44 }
 0x2eb   : > { %v4719_v62 = vpop.eup %4718 }
 0x2ec   : > { %v2556_v24 = vmul.f32 %v4719_v62, %v2555_v56  ;;  %v2830_v62 = vpop.permute.xlu0 %2829 }
 0x2ed   : > { %vm2831_vm6 = vcmp.eq.s32.totalorder %v2830_v62, 1 }
 0x2ee   : > { %v2558_v19 = vadd.f32 %v2557_v4, %v2556_v24 }
 0x2f0   : > { %v5691_v20 = vsel %vm2566_vm13, %v2558_v19, %v5623_v44  ;;  %v2569_v32 = vsel %vm2566_vm13, %v2558_v19, 0.0 }
 0x2f1   : > { %v2570_v21 = vpack.c.bf16 %v2569_v32, %v2569_v32  ;;  %v2841_v30 = vpack.c.bf16 %v5691_v20, %v5691_v20 }
 0x2f3   : > { %2571 = vst [vmem:[%s5310_s17 + $0x4] sm:$0xf] %v2570_v21  ;;  %3010 = vmatmul.bf16.vlgmr.msra.gmra.mxu3 %v2841_v30  ;;  %3023 = vmatmul.bf16.vlgmr.msrb.gmra.mxu0 %v2841_v30 }
 0x2f4   : > { %3036 = vmatmul.bf16.vlgmr.msrb.gmra.mxu1 %v2841_v30 }
 0x357   : > { %v2746_v35 = vpop.f32.mrf.mxu0  ;;  %v2759_v54 = vpop.f32.mrf.mxu1 }
 0x358   : > { %v2776_v22 = vadd.f32 %v2746_v35, %v5430_v38  ;;  %v2796_v23 = vadd.f32 %v2759_v54, %v5427_v33 }
 0x35a   : > { %v4205_v26 = vmul.f32 -1.442695, %v2776_v22  ;;  %v4206_v48 = vmul.f32 -1.442695, %v2796_v23 }
 0x35c   : > { %4720 = vpow2.f32 %v4205_v26 }
 0x35d   : > { %4722 = vpow2.f32 %v4206_v48 }
 0x35e   : > { %v2772_v44 = vpop.f32.mrf.mxu2 }
 0x35f   : > { %v2748_v39 = vpop.f32.mrf.mxu0  ;;  %v2761_v31 = vpop.f32.mrf.mxu1  ;;  %v2816_v7 = vadd.f32 %v5651_v40, %v2772_v44 }
 0x362   : > { %v4721_v34 = vpop.eup %4720 }
 0x363   : > { %v4723_v37 = vpop.eup %4722  ;;  %v2780_v17 = vadd.f32 1.0, %v4721_v34 }
 0x364   : > { %v2800_v51 = vadd.f32 1.0, %v4723_v37 }
 0x365   : > { %4724 = vrcp.f32 %v2780_v17  ;;  %v2792_v43 = vand.u32 2147483648, %v2780_v17  ;;  %v2790_v46 = vand.u32 2147483647, %v2780_v17  ;;  %vm2786_vm15 = vweird.f32 %v2780_v17 }
 0x366   : > { %4726 = vrcp.f32 %v2800_v51  ;;  %v2774_v8 = vpop.f32.mrf.mxu2  ;;  %v2812_v25 = vand.u32 2147483648, %v2800_v51  ;;  %vm2806_vm3 = vweird.f32 %v2800_v51 }
 0x367   : > { %v2793_v47 = vor.u32 1.1754944e-38, %v2792_v43  ;;  %vm2791_vm1 = vcmp.eq.f32.partialorder %v2790_v46, 8.507059e+37 }
 0x368   : > { %v2813_v40 = vor.u32 1.1754944e-38, %v2812_v25 }
 0x36b   : > { %v4725_v29 = vpop.eup %4724 }
 0x36c   : > { %v4727_v1 = vpop.eup %4726  ;;  %v2782_v41 = vmul.f32 %v4725_v29, %v2780_v17  ;;  %vm2787_vm14 = vweird.f32 %v4725_v29 }
 0x36d   : > { %v2802_v38 = vmul.f32 %v4727_v1, %v2800_v51  ;;  %vm2788_vm0 = vmor %vm2786_vm15, %vm2787_vm14  ;;  %vm2807_vm2 = vweird.f32 %v4727_v1 }
 0x36e   : > { %v2783_v58 = vsub.f32 1.0, %v2782_v41  ;;  %vm2808_vm4 = vmor %vm2806_vm3, %vm2807_vm2 }
 0x36f   : > { %v2803_v33 = vsub.f32 1.0, %v2802_v38 }
 0x370   : > { %v2784_v18 = vmul.f32 %v4725_v29, %v2783_v58  ;;  %v3024_v61 = vpop.f32.mrf.mxu0 }
 0x371   : > { %v2804_v28 = vmul.f32 %v4727_v1, %v2803_v33  ;;  %v3061_v45 = vadd.f32 %v3024_v61, %v5445_v16  ;;  %v5699_v50 = vpop.f32.mrf.mxu1  ;;  %v2810_v16 = vand.u32 2147483647, %v2800_v51 }
 0x372   : > { %v2785_v57 = vadd.f32 %v4725_v29, %v2784_v18 }
 0x373   : > { %v4304_v5 = vmul.f32 -1.442695, %v3061_v45  ;;  %v2805_v60 = vadd.f32 %v4727_v1, %v2804_v28  ;;  %vm2811_vm5 = vcmp.eq.f32.partialorder %v2810_v16, 8.507059e+37 }
 0x374   : > { %v2789_v42 = vsel %vm2788_vm0, %v4725_v29, %v2785_v57 }
 0x375   : > { %v2794_v52 = vsel %vm2791_vm1, %v2793_v47, %v2789_v42  ;;  %4728 = vpow2.f32 %v4304_v5  ;;  %v2809_v59 = vsel %vm2808_vm4, %v4727_v1, %v2805_v60 }
 0x376   : > { %v2817_v12 = vmul.f32 %v2816_v7, %v2794_v52  ;;  %v3011_v0 = vpop.f32.mrf.mxu3  ;;  %v2814_v55 = vsel %vm2811_vm5, %v2813_v40, %v2809_v59 }
 0x377   : > { %v3041_v6 = vadd.f32 %v3011_v0, %v5398_v63  ;;  %v2820_v56 = vsub.f32 1.0, %v2814_v55  ;;  %v2822_v24 = vmul.f32 %v2814_v55, %v5676_v36 }
 0x378   : > { %v2818_v9 = vadd.f32 %v2817_v12, %v5439_v27  ;;  %v3026_v53 = vpop.f32.mrf.mxu0 }
 0x379   : > { %v4303_v49 = vmul.f32 -1.442695, %v3041_v6  ;;  %v3039_v3 = vpop.f32.mrf.mxu1 }
 0x37a   : > { %4730 = vtanh.f32 %v2818_v9 }
 0x37b   : > { %v4729_v15 = vpop.eup %4728  ;;  %4732 = vpow2.f32 %v4303_v49 }
 0x37c   : > { %v5704_v13 = vadd.f32 1.0, %v4729_v15 }
 0x37e   : > { %v3013_v11 = vpop.f32.mrf.mxu3  ;;  %4734 = vrcp.f32 %v5704_v13 }
 0x380   : > { %v4731_v63 = vpop.eup %4730 }
 0x381   : > { %v4733_v27 = vpop.eup %4732  ;;  %v2821_v2 = vmul.f32 %v4731_v63, %v2820_v56 }
 0x382   : > { %v3045_v4 = vadd.f32 1.0, %v4733_v27 }
 0x383   : > { %v2823_v19 = vadd.f32 %v2822_v24, %v2821_v2 }
 0x384   : > { %4736 = vrcp.f32 %v3045_v4  ;;  %v4735_v32 = vpop.eup %4734 }
 0x385   : > { %v2832_v21 = vsel %vm2831_vm6, %v2823_v19, %v5676_v36  ;;  %v2834_v30 = vsel %vm2831_vm6, %v2823_v19, 0.0  ;;  %v3067_v54 = vmul.f32 %v4735_v32, %v5704_v13 }
 0x386   : > { %2833 = vst [vmem:[#allocation6] sm:$0xff] %v2832_v21  ;;  %v2835_v35 = vpack.c.bf16 %v2834_v30, %v2834_v30 }
 0x388   : > { %2836 = vst [vmem:[%s5308_s14 + $0xc] sm:$0xf] %v2835_v35 }
 0x389   : > { %4926 = shalt.err (!%p4923_p11)
}
 0x38a   : > { %s5043_s18 = smov 64   ;;  %s5044_s14 = smov 4   ;;  %v4737_v36 = vpop.eup %4736  ;;  %v3068_v23 = vsub.f32 1.0, %v3067_v54  ;;  %v3057_v48 = vand.u32 2147483648, %v3045_v4  ;;  %v3055_v39 = vand.u32 2147483647, %v3045_v4  ;;  %vm3051_vm8 = vweird.f32 %v3045_v4  ;;  %v3094_v61 = vpop.permute.xlu1 %3093 }
 0x38b   : > { %4569 = dma.vmem_to_hbm [thread:$0]  (%p5175_p8), %s3120_s6, 256, %s3122_s11, %s3102_s19, %s5043_s18, %s5043_s18, %s5044_s14   ;;  %v3047_v22 = vmul.f32 %v4737_v36, %v3045_v4  ;;  %vm3052_vm7 = vweird.f32 %v4737_v36  ;;  %v3081_v17 = vadd.f32 %v5684_v10, %v5699_v50  ;;  %vm3072_vm11 = vweird.f32 %v4735_v32 }
 0x38c   : > { %v3069_v31 = vmul.f32 %v4735_v32, %v3068_v23  ;;  %vm3053_vm9 = vmor %vm3051_vm8, %vm3052_vm7  ;;  %v3058_v37 = vor.u32 1.1754944e-38, %v3057_v48  ;;  %vm3056_vm10 = vcmp.eq.f32.partialorder %v3055_v39, 8.507059e+37  ;;  %v3077_v1 = vand.u32 2147483648, %v5704_v13  ;;  %s4564_s1 = sshll.u32 %s975_s3, 4  ;;  %s5877_s11 = sld [smem:[#allocation54_spill]] }
 0x38d   : > { %v3048_v26 = vsub.f32 1.0, %v3047_v22  ;;  %vm3071_vm12 = vweird.f32 %v5704_v13  ;;  %v3075_v38 = vand.u32 2147483647, %v5704_v13  ;;  %s3137_s28 = sshll.u32 %s5310_s17, 4  ;;  %vm3095_vm15 = vcmp.eq.s32.totalorder %v3094_v61, 1  ;;  %s3107_s3 = scalar_lea.sflag [#allocation18], %s5298_s0  ;;  %s3138_s28 = int_to_ptr.vmem [resolvable:$true] %s3137_s28 }
 0x38e   : > { %v3070_v8 = vadd.f32 %v4735_v32, %v3069_v31  ;;  %vm3073_vm13 = vmor %vm3071_vm12, %vm3072_vm11  ;;  %v3078_v43 = vor.u32 1.1754944e-38, %v3077_v1 }
 0x38f   : > { %v3049_v44 = vmul.f32 %v4737_v36, %v3048_v26  ;;  %vm3076_vm14 = vcmp.eq.f32.partialorder %v3075_v38, 8.507059e+37 }
 0x390   : > { %v3074_v33 = vsel %vm3073_vm13, %v4735_v32, %v3070_v8 }
 0x391   : > { %v3050_v34 = vadd.f32 %v4737_v36, %v3049_v44  ;;  %v3079_v10 = vsel %vm3076_vm14, %v3078_v43, %v3074_v33 }
 0x392   : > { %s3136_s23 = scalar_lea.hbm %s5877_s11, %s4564_s1  ;;  %v3085_v18 = vsub.f32 1.0, %v3079_v10  ;;  %v3087_v28 = vmul.f32 %v3079_v10, %v5691_v20  ;;  %s4947_s5 = scalar_lea.hbm %s5877_s11, 32 }
 0x393   : > { %v3054_v51 = vsel %vm3053_vm9, %v4737_v36, %v3050_v34  ;;  %s5742_s19 = sshll.u32 %s3136_s23, 4  ;;  %s3140_s19 = int_to_ptr.hbm [resolvable:$true] %s5742_s19 }
 0x394   : > { %v3059_v29 = vsel %vm3056_vm10, %v3058_v37, %v3054_v51  ;;  %s4941_s30 = sshra.s32 %s3140_s19, 4  ;;  %s4942_s30 = int_to_ptr.hbm [resolvable:$true] %s4941_s30 }
 0x395   : > { %v3082_v41 = vmul.f32 %v3081_v17, %v3059_v29  ;;  %s4943_s22 = scalar_lea.hbm %s4942_s30, 16  ;;  %p4948_p10 = scmp.lt.s32.totalorder %s4942_s30, %s5877_s11 }
 0x396   : > { %p4944_p8 = scmp.ne.s32.totalorder %s4942_s30, %s4943_s22  ;;  %p4949_p13 = scmp.lt.s32.totalorder %s4947_s5, %s4943_s22 }
 0x397   : > { %v3083_v58 = vadd.f32 %v3082_v41, %v5442_v14 }
 0x398   : > { %p4945_p12 = pnand %p4944_p8, %p5250_p5  ;;  %p4950_p7 = por %p4949_p13, %p4948_p10 }
 0x399   : > { %4738 = vtanh.f32 %v3083_v58 }
 0x39a   : > { %p4946_p4 = pneg %p4945_p12 }
 0x39c   : > { %p4951_p9 = pnand %p4950_p7, %p4946_p4 }
 0x39f   : > { %v4739_v46 = vpop.eup %4738 }
 0x3a0   : > { %v3086_v45 = vmul.f32 %v4739_v46, %v3085_v18 }
 0x3a2   : > { %v3088_v14 = vadd.f32 %v3087_v28, %v3086_v45 }
 0x3a4   : > { %v3096_v50 = vsel %vm3095_vm15, %v3088_v14, %v5691_v20  ;;  %v3098_v57 = vsel %vm3095_vm15, %v3088_v14, 0.0 }
 0x3a5   : > { %3097 = vst [vmem:[#allocation7] sm:$0xff] %v3096_v50  ;;  %v3099_v47 = vpack.c.bf16 %v3098_v57, %v3098_v57 }
 0x3a7   : > { %3100 = vst [vmem:[%s5310_s17] sm:$0xf] %v3099_v47 }
 0x3a8   : > { %4954 = shalt.err (!%p4951_p9)
}
 0x3a9   : > { %4570 = dma.vmem_to_hbm [thread:$0]  (%p5250_p5), %s3138_s28, 256, %s3140_s19, %s3107_s3, %s5043_s18, %s5043_s18, %s5044_s14  }
 0x3aa PF: > { %s5878_s0 = sld [smem:[#allocation39_spill]]  ;;  %p5881_p0 = scmp.ge.s32.totalorder %s5033_s27, 2 }
 0x3ab   : > { %s5879_s17 = sld [smem:[#allocation43_spill]] }
 0x3b0   : > { %s3154_s1 = sand.u32 1, %s5878_s0  }
 0x3b1   : > { %p5880_p3 = scmp.ne.s32.totalorder %s5879_s17, 0  ;;  %s3155_s20 = scalar_lea.sflag [#allocation13], %s3154_s1 }
 0x3b3   : > { %p4581_p1 = pnand %p5881_p0, %p5880_p3 }
 0x3b5   : > { %p4582_p2 = pneg %p4581_p1 }
 0x3b7   : > { %5000 = dma.done.wait (%p4582_p2), %s3155_s20, 256  }
 0x3b8   : > { %5002 = vsyncadd (%p4582_p2), %s3155_s20, 4294967040  ;;  %s3164_s16 = sand.u32 1, %s5009_s21   ;;  %p5882_p6 = scmp.ne.s32.totalorder %s5858_s12, 0 }
 0x3b9   : > { %p5883_p11 = pmov %p5881_p0  ;;  %s3165_s18 = scalar_lea.sflag [#allocation18], %s3164_s16 }
 0x3bb   : > { %p4584_p8 = pnand %p5883_p11, %p5882_p6 }
 0x3bd   : > { %p4585_p5 = pneg %p4584_p8 }
 0x3bf   : > { %5004 = dma.done.wait (%p4585_p5), %s3165_s18, 256  }
 0x3c0   : > { %5006 = vsyncadd (%p4585_p5), %s3165_s18, 4294967040  ;;  %s5884_s27 = sld [smem:[#allocation44_spill]] }
 0x3c1   : > { %s5885_s21 = sld [smem:[#allocation37_spill]] }
 0x3c2   : > { %s5886_s22 = sld [smem:[#allocation38_spill]] }
 0x3c3   : > { %s5887_s23 = sld [smem:[#allocation46_spill]] }
 0x3c4   : > { %s5888_s24 = sld [smem:[#allocation40_spill]] }
 0x3c5   : > { %s5889_s25 = sld [smem:[#allocation41_spill]] }
 0x3c6   : > { %s5890_s26 = sld [smem:[#allocation45_spill]]  ;;  %p32_p12 = scmp.ge.s32.totalorder %s5884_s27, 4  }
 0x3c8   :  { %34 = sbr.rel (!%p32_p12) target bundleno = 20 (0x14), region = 149 }
 0x3cd   :  { %3171 = vsyncpa [#allocation12], 1 }
 0x3ce   :  { %3173 = vsyncpa [#allocation12 + $0x1], 1 }
 0x3cf   :  { %3174 = vsyncpa [#allocation15], 1 }
 0x3d0   :  { %3176 = vsyncpa [#allocation15 + $0x1], 1 }
 0x3d1   :  { %3177 = vsyncpa [#allocation13], 1 }
 0x3d2   :  { %3179 = vsyncpa [#allocation13 + $0x1], 1 }
 0x3d3   :  { %3180 = vsyncpa [#allocation18], 1 }
 0x3d4   :  { %3182 = vsyncpa [#allocation18 + $0x1], 1 }
 0x3d5   :  { %3183 = vsyncmov [#allocation10] }
 0x3d8   :  { %s3184_s12 = vpop.sfrf %3183 }
 0x3d9   :  { %p4313_p4 = scmp.ne.s32.totalorder %s3184_s12, 0 }
 0x3db   :  { %3188 = shalt.err (%p4313_p4)  }
 0x3dc   :  { %3190 = vsyncmov [#allocation10 + $0x1] }
 0x3df   :  { %s3191_s14 = vpop.sfrf %3190 }
 0x3e0   :  { %p4314_p10 = scmp.ne.s32.totalorder %s3191_s14, 0 }
 0x3e2   :  { %3195 = shalt.err (%p4314_p10)  }
 0x3e3   :  { %3197 = vsyncmov [#allocation10 + $0x2] }
 0x3e6   :  { %s3198_s6 = vpop.sfrf %3197 }
 0x3e7   :  { %p4315_p13 = scmp.ne.s32.totalorder %s3198_s6, 0 }
 0x3e9   :  { %3202 = shalt.err (%p4315_p13)  }
 0x3ea   :  { %3204 = vsyncmov [#allocation10 + $0x3] }
 0x3ed   :  { %s3205_s2 = vpop.sfrf %3204 }
 0x3ee   :  { %p4316_p7 = scmp.ne.s32.totalorder %s3205_s2, 0 }
 0x3f0   :  { %3209 = shalt.err (%p4316_p7)  }

</bundles_post_ra>
